<compile_context>
chip_gen: v5e
topology: v5e:2x2
jax: 0.10.0
libtpu: 0.0.40
codegen_flags: <defaults>
</compile_context>

<pallas_src>
import functools

import jax
import jax.numpy as jnp
from jax import lax
from jax.experimental import pallas as pl
from jax.experimental.pallas import tpu as pltpu


def _round_up(x, m):
    return (x + m - 1) // m * m


def _vmem_capacity_bytes():
    """Physical VMEM per TensorCore (generation-aware, conservative fallback)."""
    try:
        cap = getattr(pltpu.get_tpu_info(), "vmem_capacity_bytes", None)
        if cap:
            return int(cap)
    except Exception:
        pass
    return 64 * 1024 * 1024  # v7x per-core VMEM; safe lower bound for v5e/v6e


def _news_encoder_kernel(e_ref, wconv_ref, bconv_ref, wa_ref, ba_ref, q_ref,
                         out_ref, *, S, K):
    # e_ref:     (TB, Sp, Hp) bf16   zero-padded ('same' + sublane-align) embeddings
    # wconv_ref: (K, Hp, Cp)  bf16   conv weight, wconv[k] == W_torch[:, :, k].T (padded)
    # bconv_ref: (1, Cp)      f32
    # wa_ref:    (Cp, Qp)     bf16   additive-attention projection
    # ba_ref:    (1, Qp)      f32
    # q_ref:     (1, Qp)      f32    attention query (row vector)
    # out_ref:   (TB, Cp)     f32
    TB, Sp, Hp = e_ref.shape
    Cp = out_ref.shape[-1]
    N = TB * Sp

    e = e_ref[...].reshape(N, Hp)                    # layout-free: Sp % 8 == 0

    # ---- Conv1d(padding='same'): K full-M matmuls, bf16 operands, f32 acc.
    # Tap shifts are XLU sublane rolls of the f32 partials (no unaligned slices);
    # wrapped rows land in masked padding because Sp >= S + K - 1.
    c = jnp.dot(e, wconv_ref[0], preferred_element_type=jnp.float32)     # tap k = 0
    for k in range(1, K):                            # K is small & static
        y = jnp.dot(e, wconv_ref[k], preferred_element_type=jnp.float32)
        c = c + pltpu.roll(y, shift=N - k, axis=0)   # rolled[p] == y[p + k]
    c = c + bconv_ref[...]                           # bias added once  (N, Cp) f32

    # ---- Additive attention: softmax(tanh(c Wa + ba) . q) over valid seq rows.
    t = jnp.tanh(jnp.dot(c.astype(jnp.bfloat16), wa_ref[...],
                         preferred_element_type=jnp.float32) + ba_ref[...])   # (N, Qp)
    # scores on VPU/XLU (elementwise mul + lane reduce) instead of a 1-lane matmul
    scores = jnp.sum(t * q_ref[...], axis=-1, keepdims=True)                  # (N, 1)

    scores3 = scores.reshape(TB, Sp, 1)
    pidx = lax.broadcasted_iota(jnp.int32, (TB, Sp, 1), 1)
    scores3 = jnp.where(pidx < S, scores3, jnp.float32(-1e30))    # mask pad rows
    m = jnp.max(scores3, axis=1, keepdims=True)                   # (TB, 1, 1)
    ex = jnp.exp(scores3 - m)
    # approx reciprocal (EUP, ~1e-3 rel) -- fine at the stated tolerance; use
    # approx=False if feeding a numerically sensitive downstream loss.
    alpha = ex * pl.reciprocal(jnp.sum(ex, axis=1, keepdims=True), approx=True)

    c3 = c.reshape(TB, Sp, Cp)
    out_ref[...] = jnp.sum(c3 * alpha, axis=1)                    # (TB, Cp) f32


def plm_news_encoder(tokens, emb_table, w_conv, b_conv, w_attn, b_attn, q_attn,
                     *, kernel_size, batch_tile=None):
    """tokens: int32 [B, S].  Returns float32 [B, C]."""
    B, S = tokens.shape
    K = kernel_size
    V, H = emb_table.shape
    C = w_conv.shape[2]
    Q = w_attn.shape[1]

    # Lane/sublane-dense padded sizes (zero padding keeps the math exact).
    Hp = _round_up(H, 128)
    Cp = _round_up(C, 128)
    Qp = _round_up(Q, 128)
    pad_l = (K - 1) // 2                       # matches PyTorch padding='same'
    Sp = _round_up(S + K - 1, 8)               # sublane-aligned padded seq length
    # Invariant required by the circular rolls in the conv tap loop: wrapped
    # rows must fall in attention-masked padding rows.
    assert Sp >= S + K - 1, (Sp, S, K)

    # ---- Generation-aware VMEM budget & batch-tile sizing --------------------
    phys_vmem = _vmem_capacity_bytes()
    vmem_limit = max(32 * 1024 * 1024,
                     min((phys_vmem * 3) // 4, 100 * 1024 * 1024))
    # Per-step working set: double-buffered e input, f32 intermediates (c, y, t),
    # double-buffered output slab; weights are single-buffered (Buffered(1)).
    act_bytes_per_b = Sp * (2 * Hp * 2 + (2 * Cp + Qp) * 4) + 2 * Cp * 4
    weight_bytes = K * Hp * Cp * 2 + Cp * 4 + Cp * Qp * 2 + 2 * Qp * 4
    headroom = 4 * 1024 * 1024
    budget = max(0, vmem_limit - weight_bytes - headroom)

    if batch_tile is None:
        tb_vmem = max(8, (budget // act_bytes_per_b) // 8 * 8)
        TB = min(tb_vmem, _round_up(B, 8))
        # Re-balance so the last tile isn't mostly padding.
        steps = -(-B // TB)
        TB = _round_up(-(-B // steps), 8)
        # Keep >= 2 grid steps (v7x: 2 TensorCores share the "parallel" axis),
        # but only if each step still has >= 512 MXU rows of real work.
        if _round_up(B, TB) // TB < 2:
            tb_half = _round_up((_round_up(B, 8) + 1) // 2, 8)
            if 8 <= tb_half < TB and tb_half * Sp >= 512:
                TB = tb_half
    else:
        TB = max(8, _round_up(batch_tile, 8))
    Bp = _round_up(B, TB)

    # "PLM" stand-in: embedding lookup with an explicit zero PAD row; padding is
    # done on the int32 tokens (no jnp.pad of a full f32 activation tensor).
    # TODO(synk): replace with the real pretrained PLM's last_hidden_state.
    PAD = V
    emb_p = jnp.zeros((V + 1, Hp), jnp.bfloat16).at[:V, :H].set(
        emb_table.astype(jnp.bfloat16))
    tok_p = jnp.full((Bp, Sp), PAD, dtype=jnp.int32)
    tok_p = tok_p.at[:B, pad_l:pad_l + S].set(tokens)
    e_pad = emb_p[tok_p]                                           # (Bp, Sp, Hp) bf16

    # Pad / repack weights; matmul operands bf16, biases/query f32.
    w_conv_p = jnp.zeros((K, Hp, Cp), jnp.bfloat16).at[:, :H, :C].set(
        w_conv.astype(jnp.bfloat16))
    b_conv_p = jnp.zeros((1, Cp), jnp.float32).at[0, :C].set(b_conv.astype(jnp.float32))
    w_attn_p = jnp.zeros((Cp, Qp), jnp.bfloat16).at[:C, :Q].set(
        w_attn.astype(jnp.bfloat16))
    b_attn_p = jnp.zeros((1, Qp), jnp.float32).at[0, :Q].set(b_attn.astype(jnp.float32))
    q_attn_p = jnp.zeros((1, Qp), jnp.float32).at[0, :Q].set(q_attn.astype(jnp.float32))

    kernel = functools.partial(_news_encoder_kernel, S=S, K=K)

    def run(single_buffer_weights):
        # Resident operands (constant index_map): keep them exactly as constant
        # blocks + dense lane widths; single-buffer them to reclaim VMEM.
        res = {"pipeline_mode": pl.Buffered(1)} if single_buffer_weights else {}
        grid_spec = pltpu.PrefetchScalarGridSpec(
            num_scalar_prefetch=0,
            grid=(Bp // TB,),
            in_specs=[
                pl.BlockSpec((TB, Sp, Hp), lambda b: (b, 0, 0)),          # embeddings
                pl.BlockSpec((K, Hp, Cp), lambda b: (0, 0, 0), **res),    # conv weight
                pl.BlockSpec((1, Cp), lambda b: (0, 0), **res),           # conv bias
                pl.BlockSpec((Cp, Qp), lambda b: (0, 0), **res),          # attn proj W
                pl.BlockSpec((1, Qp), lambda b: (0, 0), **res),           # attn proj b
                pl.BlockSpec((1, Qp), lambda b: (0, 0), **res),           # attn query
            ],
            out_specs=pl.BlockSpec((TB, Cp), lambda b: (b, 0)),           # dense slab
        )
        return pl.pallas_call(
            kernel,
            out_shape=jax.ShapeDtypeStruct((Bp, Cp), jnp.float32),
            grid_spec=grid_spec,
            compiler_params=pltpu.CompilerParams(
                dimension_semantics=("parallel",),     # batch tiles independent
                vmem_limit_bytes=int(vmem_limit)),
        )(e_pad, w_conv_p, b_conv_p, w_attn_p, b_attn_p, q_attn_p)

    try:
        out = run(True)
    except Exception:
        # Graceful degradation if pipeline_mode=pl.Buffered(1) is unsupported:
        # identical math, weights just default to double buffering.
        out = run(False)

    return out[:B, :C]   # drop batch / channel padding


def _reference(tokens, emb_table, w_conv, b_conv, w_attn, b_attn, q_attn,
               *, kernel_size):
    """Pure-JAX f32 reference mirroring the PyTorch forward."""
    K = kernel_size
    e = emb_table[tokens].astype(jnp.float32)                       # [B,S,H]
    S = tokens.shape[1]
    pad_l = (K - 1) // 2
    e_pad = jnp.pad(e, ((0, 0), (pad_l, K - 1 - pad_l), (0, 0)))
    c = b_conv.reshape(1, 1, -1).astype(jnp.float32)
    for k in range(K):
        c = c + jnp.einsum('bsh,hc->bsc', e_pad[:, k:k + S, :],
                           w_conv[k].astype(jnp.float32))
    t = jnp.tanh(jnp.einsum('bsc,cq->bsq', c, w_attn.astype(jnp.float32))
                 + b_attn.reshape(1, 1, -1).astype(jnp.float32))
    scores = jnp.einsum('bsq,q->bs', t, q_attn.reshape(-1).astype(jnp.float32))
    alpha = jax.nn.softmax(scores, axis=1)
    return jnp.sum(c * alpha[..., None], axis=1)


if __name__ == "__main__":
    # Small, shape-consistent config (B deliberately not a multiple of 8 so
    # the padded-batch path is exercised).
    B, S = 10, 12          # batch of token sequences, sequence length
    H = 32                 # plm_hidden_size
    C = 48                 # conv_kernel_num
    K = 3                  # kernel_size
    Q = 32                 # query_dim (200 in the module default; small here)
    VOCAB = 50

    key = jax.random.PRNGKey(0)
    k_tok, k_emb, k_wc, k_bc, k_wa, k_ba, k_q = jax.random.split(key, 7)

    tokens = jax.random.randint(k_tok, (B, S), 0, VOCAB, dtype=jnp.int32)
    emb_table = jax.random.normal(k_emb, (VOCAB, H), dtype=jnp.float32) * 0.1
    # conv weight stored as (K, H, C) == W_torch[c, h, k] transposed per-tap
    w_conv = jax.random.normal(k_wc, (K, H, C), dtype=jnp.float32) * 0.1
    b_conv = jax.random.normal(k_bc, (C,), dtype=jnp.float32) * 0.1
    w_attn = jax.random.normal(k_wa, (C, Q), dtype=jnp.float32) * 0.1
    b_attn = jax.random.normal(k_ba, (Q,), dtype=jnp.float32) * 0.1
    q_attn = jax.random.normal(k_q, (Q,), dtype=jnp.float32) * 0.1

    ref = _reference(tokens, emb_table, w_conv, b_conv,
                     w_attn, b_attn, q_attn, kernel_size=K)

    # 1) Auto (generation-aware) batch tile -> single big tile at this tiny B.
    out_auto = plm_news_encoder(tokens, emb_table, w_conv, b_conv,
                                w_attn, b_attn, q_attn, kernel_size=K)
    out_auto = jax.block_until_ready(out_auto)
    assert out_auto.shape == (B, C), out_auto.shape
    # bf16 matmul operands (f32 accumulation) => loosened tolerance vs f32 ref.
    assert jnp.allclose(out_auto, ref, atol=2e-2, rtol=2e-2), (
        float(jnp.max(jnp.abs(out_auto - ref))))

    # 2) Forced small tile -> multi-step grid (exercises the pipelined path and
    #    the "parallel" batch-tile sharding used on multi-TensorCore chips).
    out_tiled = plm_news_encoder(tokens, emb_table, w_conv, b_conv,
                                 w_attn, b_attn, q_attn, kernel_size=K,
                                 batch_tile=8)
    out_tiled = jax.block_until_ready(out_tiled)
    assert out_tiled.shape == (B, C), out_tiled.shape
    assert jnp.allclose(out_tiled, ref, atol=2e-2, rtol=2e-2), (
        float(jnp.max(jnp.abs(out_tiled - ref))))

    print("KERNEL_OK")
</pallas_src>

<mosaic_0001>
module attributes {stable_mosaic.version = 11 : i64} {
  func.func @_news_encoder_kernel(%arg0: i32, %arg1: memref<16x16x128xbf16, #tpu.memory_space<vmem>>, %arg2: memref<3x128x128xbf16, #tpu.memory_space<vmem>>, %arg3: memref<1x128xf32, #tpu.memory_space<vmem>>, %arg4: memref<128x128xbf16, #tpu.memory_space<vmem>>, %arg5: memref<1x128xf32, #tpu.memory_space<vmem>>, %arg6: memref<1x128xf32, #tpu.memory_space<vmem>>, %arg7: memref<16x128xf32, #tpu.memory_space<vmem>>) attributes {dimension_semantics = [#tpu.dimension_semantics<parallel>], iteration_bounds = array<i64: 1>, scalar_prefetch = 0 : i64, scratch_operands = 0 : i64, tpu.core_type = #tpu.core_type<tc>, window_params = [{transform_indices = @transform_0, window_bounds = array<i64: 16, 16, 128>}, {pipeline_mode = #tpu.pipeline_mode<synchronous>, transform_indices = @transform_1, window_bounds = array<i64: 3, 128, 128>}, {pipeline_mode = #tpu.pipeline_mode<synchronous>, transform_indices = @transform_2, window_bounds = array<i64: 1, 128>}, {pipeline_mode = #tpu.pipeline_mode<synchronous>, transform_indices = @transform_3, window_bounds = array<i64: 128, 128>}, {pipeline_mode = #tpu.pipeline_mode<synchronous>, transform_indices = @transform_4, window_bounds = array<i64: 1, 128>}, {pipeline_mode = #tpu.pipeline_mode<synchronous>, transform_indices = @transform_5, window_bounds = array<i64: 1, 128>}, {transform_indices = @transform_6, window_bounds = array<i64: 16, 128>}]} {
    %c0 = arith.constant 0 : index
    %c0_0 = arith.constant 0 : index
    %c0_1 = arith.constant 0 : index
    %0 = vector.load %arg1[%c0, %c0_0, %c0_1] : memref<16x16x128xbf16, #tpu.memory_space<vmem>>, vector<16x16x128xbf16>
    %1 = vector.shape_cast %0 : vector<16x16x128xbf16> to vector<256x128xbf16>
    %c0_2 = arith.constant 0 : index
    %c0_3 = arith.constant 0 : index
    %c0_4 = arith.constant 0 : index
    %2 = vector.load %arg2[%c0_2, %c0_3, %c0_4] : memref<3x128x128xbf16, #tpu.memory_space<vmem>>, vector<1x128x128xbf16>
    %3 = vector.shape_cast %2 : vector<1x128x128xbf16> to vector<128x128xbf16>
    %cst = arith.constant dense<0.000000e+00> : vector<256x128xf32>
    %4 = tpu.matmul %1, %3, %cst {dimension_numbers = #tpu.dot_dimension_numbers<[1], [0], [0], [1], [0, 0, 1, 1], [], []>} : vector<256x128xbf16>, vector<128x128xbf16>, vector<256x128xf32> -> vector<256x128xf32>
    %c1 = arith.constant 1 : index
    %c0_5 = arith.constant 0 : index
    %c0_6 = arith.constant 0 : index
    %5 = vector.load %arg2[%c1, %c0_5, %c0_6] : memref<3x128x128xbf16, #tpu.memory_space<vmem>>, vector<1x128x128xbf16>
    %6 = vector.shape_cast %5 : vector<1x128x128xbf16> to vector<128x128xbf16>
    %cst_7 = arith.constant dense<0.000000e+00> : vector<256x128xf32>
    %7 = tpu.matmul %1, %6, %cst_7 {dimension_numbers = #tpu.dot_dimension_numbers<[1], [0], [0], [1], [0, 0, 1, 1], [], []>} : vector<256x128xbf16>, vector<128x128xbf16>, vector<256x128xf32> -> vector<256x128xf32>
    %c255_i32 = arith.constant 255 : i32
    %8 = tpu.dynamic_rotate %7 by %c255_i32 dim 0 : vector<256x128xf32>, i32 -> vector<256x128xf32>
    %9 = arith.addf %4, %8 : vector<256x128xf32>
    %c2 = arith.constant 2 : index
    %c0_8 = arith.constant 0 : index
    %c0_9 = arith.constant 0 : index
    %10 = vector.load %arg2[%c2, %c0_8, %c0_9] : memref<3x128x128xbf16, #tpu.memory_space<vmem>>, vector<1x128x128xbf16>
    %11 = vector.shape_cast %10 : vector<1x128x128xbf16> to vector<128x128xbf16>
    %cst_10 = arith.constant dense<0.000000e+00> : vector<256x128xf32>
    %12 = tpu.matmul %1, %11, %cst_10 {dimension_numbers = #tpu.dot_dimension_numbers<[1], [0], [0], [1], [0, 0, 1, 1], [], []>} : vector<256x128xbf16>, vector<128x128xbf16>, vector<256x128xf32> -> vector<256x128xf32>
    %c254_i32 = arith.constant 254 : i32
    %13 = tpu.dynamic_rotate %12 by %c254_i32 dim 0 : vector<256x128xf32>, i32 -> vector<256x128xf32>
    %14 = arith.addf %9, %13 : vector<256x128xf32>
    %c0_11 = arith.constant 0 : index
    %c0_12 = arith.constant 0 : index
    %15 = vector.load %arg3[%c0_11, %c0_12] : memref<1x128xf32, #tpu.memory_space<vmem>>, vector<1x128xf32>
    %16 = vector.broadcast %15 : vector<1x128xf32> to vector<256x128xf32>
    %17 = arith.addf %14, %16 : vector<256x128xf32>
    %18 = arith.truncf %17 : vector<256x128xf32> to vector<256x128xbf16>
    %c0_13 = arith.constant 0 : index
    %c0_14 = arith.constant 0 : index
    %19 = vector.load %arg4[%c0_13, %c0_14] : memref<128x128xbf16, #tpu.memory_space<vmem>>, vector<128x128xbf16>
    %cst_15 = arith.constant dense<0.000000e+00> : vector<256x128xf32>
    %20 = tpu.matmul %18, %19, %cst_15 {dimension_numbers = #tpu.dot_dimension_numbers<[1], [0], [0], [1], [0, 0, 1, 1], [], []>} : vector<256x128xbf16>, vector<128x128xbf16>, vector<256x128xf32> -> vector<256x128xf32>
    %c0_16 = arith.constant 0 : index
    %c0_17 = arith.constant 0 : index
    %21 = vector.load %arg5[%c0_16, %c0_17] : memref<1x128xf32, #tpu.memory_space<vmem>>, vector<1x128xf32>
    %22 = vector.broadcast %21 : vector<1x128xf32> to vector<256x128xf32>
    %23 = arith.addf %20, %22 : vector<256x128xf32>
    %24 = math.tanh %23 : vector<256x128xf32>
    %c0_18 = arith.constant 0 : index
    %c0_19 = arith.constant 0 : index
    %25 = vector.load %arg6[%c0_18, %c0_19] : memref<1x128xf32, #tpu.memory_space<vmem>>, vector<1x128xf32>
    %26 = vector.broadcast %25 : vector<1x128xf32> to vector<256x128xf32>
    %27 = arith.mulf %24, %26 : vector<256x128xf32>
    %cst_20 = arith.constant dense<0.000000e+00> : vector<256xf32>
    %28 = vector.multi_reduction <add>, %27, %cst_20 [1] : vector<256x128xf32> to vector<256xf32>
    %29 = vector.shape_cast %28 : vector<256xf32> to vector<256x1xf32>
    %30 = vector.shape_cast %29 : vector<256x1xf32> to vector<16x16x1xf32>
    %31 = tpu.iota {dimensions = array<i32: 1>} : vector<16x16x1xi32>
    %c12_i32 = arith.constant 12 : i32
    %32 = vector.broadcast %c12_i32 : i32 to vector<16x16x1xi32>
    %33 = arith.cmpi slt, %31, %32 : vector<16x16x1xi32>
    %cst_21 = arith.constant -1.000000e+30 : f32
    %34 = vector.broadcast %cst_21 : f32 to vector<16x16x1xf32>
    %35 = arith.select %33, %30, %34 : vector<16x16x1xi1>, vector<16x16x1xf32>
    %cst_22 = arith.constant dense<0xFF800000> : vector<16x1xf32>
    %36 = vector.multi_reduction <maximumf>, %35, %cst_22 [1] : vector<16x16x1xf32> to vector<16x1xf32>
    %37 = vector.shape_cast %36 : vector<16x1xf32> to vector<16x1x1xf32>
    %38 = vector.broadcast %37 : vector<16x1x1xf32> to vector<16x16x1xf32>
    %39 = arith.subf %35, %38 : vector<16x16x1xf32>
    %40 = math.exp %39 : vector<16x16x1xf32>
    %cst_23 = arith.constant dense<0.000000e+00> : vector<16x1xf32>
    %41 = vector.multi_reduction <add>, %40, %cst_23 [1] : vector<16x16x1xf32> to vector<16x1xf32>
    %42 = vector.shape_cast %41 : vector<16x1xf32> to vector<16x1x1xf32>
    %43 = tpu.reciprocal %42 {approx = true} : vector<16x1x1xf32> -> vector<16x1x1xf32>
    %44 = vector.broadcast %43 : vector<16x1x1xf32> to vector<16x16x1xf32>
    %45 = arith.mulf %40, %44 : vector<16x16x1xf32>
    %46 = vector.shape_cast %17 : vector<256x128xf32> to vector<16x16x128xf32>
    %47 = vector.broadcast %45 : vector<16x16x1xf32> to vector<16x16x128xf32>
    %48 = arith.mulf %46, %47 : vector<16x16x128xf32>
    %cst_24 = arith.constant dense<0.000000e+00> : vector<16x128xf32>
    %49 = vector.multi_reduction <add>, %48, %cst_24 [1] : vector<16x16x128xf32> to vector<16x128xf32>
    %c0_25 = arith.constant 0 : index
    %c0_26 = arith.constant 0 : index
    %50 = vector.load %arg7[%c0_25, %c0_26] : memref<16x128xf32, #tpu.memory_space<vmem>>, vector<16x128xf32>
    tpu.vector_store %arg7[%c0_25, %c0_26], %49 {strides = array<i32>} : memref<16x128xf32, #tpu.memory_space<vmem>>, vector<16x128xf32>,
    return
  }
  func.func @transform_0(%arg0: i32) -> (i32, i32, i32) {
    %c0_i32 = arith.constant 0 : i32
    %c0_i32_0 = arith.constant 0 : i32
    %c0_i32_1 = arith.constant 0 : i32
    return %arg0, %c0_i32, %c0_i32_0 : i32, i32, i32
  }
  func.func @transform_1(%arg0: i32) -> (i32, i32, i32) {
    %c0_i32 = arith.constant 0 : i32
    %c0_i32_0 = arith.constant 0 : i32
    %c0_i32_1 = arith.constant 0 : i32
    %c0_i32_2 = arith.constant 0 : i32
    return %c0_i32, %c0_i32_0, %c0_i32_1 : i32, i32, i32
  }
  func.func @transform_2(%arg0: i32) -> (i32, i32) {
    %c0_i32 = arith.constant 0 : i32
    %c0_i32_0 = arith.constant 0 : i32
    %c0_i32_1 = arith.constant 0 : i32
    return %c0_i32, %c0_i32_0 : i32, i32
  }
  func.func @transform_3(%arg0: i32) -> (i32, i32) {
    %c0_i32 = arith.constant 0 : i32
    %c0_i32_0 = arith.constant 0 : i32
    %c0_i32_1 = arith.constant 0 : i32
    return %c0_i32, %c0_i32_0 : i32, i32
  }
  func.func @transform_4(%arg0: i32) -> (i32, i32) {
    %c0_i32 = arith.constant 0 : i32
    %c0_i32_0 = arith.constant 0 : i32
    %c0_i32_1 = arith.constant 0 : i32
    return %c0_i32, %c0_i32_0 : i32, i32
  }
  func.func @transform_5(%arg0: i32) -> (i32, i32) {
    %c0_i32 = arith.constant 0 : i32
    %c0_i32_0 = arith.constant 0 : i32
    %c0_i32_1 = arith.constant 0 : i32
    return %c0_i32, %c0_i32_0 : i32, i32
  }
  func.func @transform_6(%arg0: i32) -> (i32, i32) {
    %c0_i32 = arith.constant 0 : i32
    %c0_i32_0 = arith.constant 0 : i32
    return %arg0, %c0_i32 : i32, i32
  }
}

module attributes {stable_mosaic.version = 11 : i64} {
  func.func @_news_encoder_kernel(%arg0: i32, %arg1: memref<16x16x128xbf16, #tpu.memory_space<vmem>>, %arg2: memref<3x128x128xbf16, #tpu.memory_space<vmem>>, %arg3: memref<1x128xf32, #tpu.memory_space<vmem>>, %arg4: memref<128x128xbf16, #tpu.memory_space<vmem>>, %arg5: memref<1x128xf32, #tpu.memory_space<vmem>>, %arg6: memref<1x128xf32, #tpu.memory_space<vmem>>, %arg7: memref<16x128xf32, #tpu.memory_space<vmem>>) attributes {dimension_semantics = [#tpu.dimension_semantics<parallel>], iteration_bounds = array<i64: 1>, scalar_prefetch = 0 : i64, scratch_operands = 0 : i64, tpu.core_type = #tpu.core_type<tc>, window_params = [{transform_indices = @transform_0, window_bounds = array<i64: 16, 16, 128>}, {pipeline_mode = #tpu.pipeline_mode<synchronous>, transform_indices = @transform_1, window_bounds = array<i64: 3, 128, 128>}, {pipeline_mode = #tpu.pipeline_mode<synchronous>, transform_indices = @transform_2, window_bounds = array<i64: 1, 128>}, {pipeline_mode = #tpu.pipeline_mode<synchronous>, transform_indices = @transform_3, window_bounds = array<i64: 128, 128>}, {pipeline_mode = #tpu.pipeline_mode<synchronous>, transform_indices = @transform_4, window_bounds = array<i64: 1, 128>}, {pipeline_mode = #tpu.pipeline_mode<synchronous>, transform_indices = @transform_5, window_bounds = array<i64: 1, 128>}, {transform_indices = @transform_6, window_bounds = array<i64: 16, 128>}]} {
    %c0 = arith.constant 0 : index
    %c0_0 = arith.constant 0 : index
    %c0_1 = arith.constant 0 : index
    %0 = vector.load %arg1[%c0, %c0_0, %c0_1] : memref<16x16x128xbf16, #tpu.memory_space<vmem>>, vector<16x16x128xbf16>
    %1 = vector.shape_cast %0 : vector<16x16x128xbf16> to vector<256x128xbf16>
    %c0_2 = arith.constant 0 : index
    %c0_3 = arith.constant 0 : index
    %c0_4 = arith.constant 0 : index
    %2 = vector.load %arg2[%c0_2, %c0_3, %c0_4] : memref<3x128x128xbf16, #tpu.memory_space<vmem>>, vector<1x128x128xbf16>
    %3 = vector.shape_cast %2 : vector<1x128x128xbf16> to vector<128x128xbf16>
    %cst = arith.constant dense<0.000000e+00> : vector<256x128xf32>
    %4 = tpu.matmul %1, %3, %cst {dimension_numbers = #tpu.dot_dimension_numbers<[1], [0], [0], [1], [0, 0, 1, 1], [], []>} : vector<256x128xbf16>, vector<128x128xbf16>, vector<256x128xf32> -> vector<256x128xf32>
    %c1 = arith.constant 1 : index
    %c0_5 = arith.constant 0 : index
    %c0_6 = arith.constant 0 : index
    %5 = vector.load %arg2[%c1, %c0_5, %c0_6] : memref<3x128x128xbf16, #tpu.memory_space<vmem>>, vector<1x128x128xbf16>
    %6 = vector.shape_cast %5 : vector<1x128x128xbf16> to vector<128x128xbf16>
    %cst_7 = arith.constant dense<0.000000e+00> : vector<256x128xf32>
    %7 = tpu.matmul %1, %6, %cst_7 {dimension_numbers = #tpu.dot_dimension_numbers<[1], [0], [0], [1], [0, 0, 1, 1], [], []>} : vector<256x128xbf16>, vector<128x128xbf16>, vector<256x128xf32> -> vector<256x128xf32>
    %c255_i32 = arith.constant 255 : i32
    %8 = tpu.dynamic_rotate %7 by %c255_i32 dim 0 : vector<256x128xf32>, i32 -> vector<256x128xf32>
    %9 = arith.addf %4, %8 : vector<256x128xf32>
    %c2 = arith.constant 2 : index
    %c0_8 = arith.constant 0 : index
    %c0_9 = arith.constant 0 : index
    %10 = vector.load %arg2[%c2, %c0_8, %c0_9] : memref<3x128x128xbf16, #tpu.memory_space<vmem>>, vector<1x128x128xbf16>
    %11 = vector.shape_cast %10 : vector<1x128x128xbf16> to vector<128x128xbf16>
    %cst_10 = arith.constant dense<0.000000e+00> : vector<256x128xf32>
    %12 = tpu.matmul %1, %11, %cst_10 {dimension_numbers = #tpu.dot_dimension_numbers<[1], [0], [0], [1], [0, 0, 1, 1], [], []>} : vector<256x128xbf16>, vector<128x128xbf16>, vector<256x128xf32> -> vector<256x128xf32>
    %c254_i32 = arith.constant 254 : i32
    %13 = tpu.dynamic_rotate %12 by %c254_i32 dim 0 : vector<256x128xf32>, i32 -> vector<256x128xf32>
    %14 = arith.addf %9, %13 : vector<256x128xf32>
    %c0_11 = arith.constant 0 : index
    %c0_12 = arith.constant 0 : index
    %15 = vector.load %arg3[%c0_11, %c0_12] : memref<1x128xf32, #tpu.memory_space<vmem>>, vector<1x128xf32>
    %16 = vector.broadcast %15 : vector<1x128xf32> to vector<256x128xf32>
    %17 = arith.addf %14, %16 : vector<256x128xf32>
    %18 = arith.truncf %17 : vector<256x128xf32> to vector<256x128xbf16>
    %c0_13 = arith.constant 0 : index
    %c0_14 = arith.constant 0 : index
    %19 = vector.load %arg4[%c0_13, %c0_14] : memref<128x128xbf16, #tpu.memory_space<vmem>>, vector<128x128xbf16>
    %cst_15 = arith.constant dense<0.000000e+00> : vector<256x128xf32>
    %20 = tpu.matmul %18, %19, %cst_15 {dimension_numbers = #tpu.dot_dimension_numbers<[1], [0], [0], [1], [0, 0, 1, 1], [], []>} : vector<256x128xbf16>, vector<128x128xbf16>, vector<256x128xf32> -> vector<256x128xf32>
    %c0_16 = arith.constant 0 : index
    %c0_17 = arith.constant 0 : index
    %21 = vector.load %arg5[%c0_16, %c0_17] : memref<1x128xf32, #tpu.memory_space<vmem>>, vector<1x128xf32>
    %22 = vector.broadcast %21 : vector<1x128xf32> to vector<256x128xf32>
    %23 = arith.addf %20, %22 : vector<256x128xf32>
    %24 = math.tanh %23 : vector<256x128xf32>
    %c0_18 = arith.constant 0 : index
    %c0_19 = arith.constant 0 : index
    %25 = vector.load %arg6[%c0_18, %c0_19] : memref<1x128xf32, #tpu.memory_space<vmem>>, vector<1x128xf32>
    %26 = vector.broadcast %25 : vector<1x128xf32> to vector<256x128xf32>
    %27 = arith.mulf %24, %26 : vector<256x128xf32>
    %cst_20 = arith.constant dense<0.000000e+00> : vector<256xf32>
    %28 = vector.multi_reduction <add>, %27, %cst_20 [1] : vector<256x128xf32> to vector<256xf32>
    %29 = vector.shape_cast %28 : vector<256xf32> to vector<256x1xf32>
    %30 = vector.shape_cast %29 : vector<256x1xf32> to vector<16x16x1xf32>
    %31 = tpu.iota {dimensions = array<i32: 1>} : vector<16x16x1xi32>
    %c12_i32 = arith.constant 12 : i32
    %32 = vector.broadcast %c12_i32 : i32 to vector<16x16x1xi32>
    %33 = arith.cmpi slt, %31, %32 : vector<16x16x1xi32>
    %cst_21 = arith.constant -1.000000e+30 : f32
    %34 = vector.broadcast %cst_21 : f32 to vector<16x16x1xf32>
    %35 = arith.select %33, %30, %34 : vector<16x16x1xi1>, vector<16x16x1xf32>
    %cst_22 = arith.constant dense<0xFF800000> : vector<16x1xf32>
    %36 = vector.multi_reduction <maximumf>, %35, %cst_22 [1] : vector<16x16x1xf32> to vector<16x1xf32>
    %37 = vector.shape_cast %36 : vector<16x1xf32> to vector<16x1x1xf32>
    %38 = vector.broadcast %37 : vector<16x1x1xf32> to vector<16x16x1xf32>
    %39 = arith.subf %35, %38 : vector<16x16x1xf32>
    %40 = math.exp %39 : vector<16x16x1xf32>
    %cst_23 = arith.constant dense<0.000000e+00> : vector<16x1xf32>
    %41 = vector.multi_reduction <add>, %40, %cst_23 [1] : vector<16x16x1xf32> to vector<16x1xf32>
    %42 = vector.shape_cast %41 : vector<16x1xf32> to vector<16x1x1xf32>
    %43 = tpu.reciprocal %42 {approx = true} : vector<16x1x1xf32> -> vector<16x1x1xf32>
    %44 = vector.broadcast %43 : vector<16x1x1xf32> to vector<16x16x1xf32>
    %45 = arith.mulf %40, %44 : vector<16x16x1xf32>
    %46 = vector.shape_cast %17 : vector<256x128xf32> to vector<16x16x128xf32>
    %47 = vector.broadcast %45 : vector<16x16x1xf32> to vector<16x16x128xf32>
    %48 = arith.mulf %46, %47 : vector<16x16x128xf32>
    %cst_24 = arith.constant dense<0.000000e+00> : vector<16x128xf32>
    %49 = vector.multi_reduction <add>, %48, %cst_24 [1] : vector<16x16x128xf32> to vector<16x128xf32>
    %c0_25 = arith.constant 0 : index
    %c0_26 = arith.constant 0 : index
    %50 = vector.load %arg7[%c0_25, %c0_26] : memref<16x128xf32, #tpu.memory_space<vmem>>, vector<16x128xf32>
    tpu.vector_store %arg7[%c0_25, %c0_26], %49 {strides = array<i32>} : memref<16x128xf32, #tpu.memory_space<vmem>>, vector<16x128xf32>,
    return
  }
  func.func @transform_0(%arg0: i32) -> (i32, i32, i32) {
    %c0_i32 = arith.constant 0 : i32
    %c0_i32_0 = arith.constant 0 : i32
    %c0_i32_1 = arith.constant 0 : i32
    return %arg0, %c0_i32, %c0_i32_0 : i32, i32, i32
  }
  func.func @transform_1(%arg0: i32) -> (i32, i32, i32) {
    %c0_i32 = arith.constant 0 : i32
    %c0_i32_0 = arith.constant 0 : i32
    %c0_i32_1 = arith.constant 0 : i32
    %c0_i32_2 = arith.constant 0 : i32
    return %c0_i32, %c0_i32_0, %c0_i32_1 : i32, i32, i32
  }
  func.func @transform_2(%arg0: i32) -> (i32, i32) {
    %c0_i32 = arith.constant 0 : i32
    %c0_i32_0 = arith.constant 0 : i32
    %c0_i32_1 = arith.constant 0 : i32
    return %c0_i32, %c0_i32_0 : i32, i32
  }
  func.func @transform_3(%arg0: i32) -> (i32, i32) {
    %c0_i32 = arith.constant 0 : i32
    %c0_i32_0 = arith.constant 0 : i32
    %c0_i32_1 = arith.constant 0 : i32
    return %c0_i32, %c0_i32_0 : i32, i32
  }
  func.func @transform_4(%arg0: i32) -> (i32, i32) {
    %c0_i32 = arith.constant 0 : i32
    %c0_i32_0 = arith.constant 0 : i32
    %c0_i32_1 = arith.constant 0 : i32
    return %c0_i32, %c0_i32_0 : i32, i32
  }
  func.func @transform_5(%arg0: i32) -> (i32, i32) {
    %c0_i32 = arith.constant 0 : i32
    %c0_i32_0 = arith.constant 0 : i32
    %c0_i32_1 = arith.constant 0 : i32
    return %c0_i32, %c0_i32_0 : i32, i32
  }
  func.func @transform_6(%arg0: i32) -> (i32, i32) {
    %c0_i32 = arith.constant 0 : i32
    %c0_i32_0 = arith.constant 0 : i32
    return %arg0, %c0_i32 : i32, i32
  }
}

</mosaic_0001>

<bundles_post_ra>
// kernel: tpu_custom_call.1
= control target key start
LH: loop header
LB: loop body
LE: loop exit
PB: predicated region body
PF: predicated region fallthrough
CT: control target
= control target key end

     0   :  { %11 = vsyncpa [#allocation3], 0  ;;  %s2934_s0 = inlined_call_operand.hbm [shape: bf16[16,16,128], index: 0, kind: input, shape index: {}]   ;;  %s2935_s1 = inlined_call_operand.hbm [shape: bf16[3,128,128], index: 1, kind: input, shape index: {}]   ;;  %s2936_s2 = inlined_call_operand.vmem [shape: f32[1,128], index: 2, kind: input, shape index: {}]   ;;  %s2937_s3 = inlined_call_operand.hbm [shape: bf16[128,128], index: 3, kind: input, shape index: {}]   ;;  %s2938_s4 = inlined_call_operand.vmem [shape: f32[1,128], index: 4, kind: input, shape index: {}]   ;;  %s2939_s5 = inlined_call_operand.vmem [shape: f32[1,128], index: 5, kind: input, shape index: {}]   ;;  %s2940_s6 = inlined_call_operand.hbm [shape: f32[16,128], index: 6, kind: output, shape index: {}]  }
   0x1   :  { %12 = vsyncpa [#allocation6], 0 }
   0x2   :  { %13 = vsyncpa [#allocation4], 0  ;;  %s31_s23 = sshll.u32 %s2935_s1, 4  ;;  %s2288_s24 = smov [#allocation5]   ;;  %s32_s23 = int_to_ptr.hbm [resolvable:$true] %s31_s23 }
   0x3   :  { %s33_s25 = sshll.u32 %s2288_s24, 4  ;;  %s18_s28 = sshll.u32 %s2934_s0, 4  ;;  %s34_s25 = int_to_ptr.vmem [resolvable:$true] %s33_s25  ;;  %s19_s28 = int_to_ptr.hbm [resolvable:$true] %s18_s28 }
   0x4   :  { %s2289_s29 = smov 64   ;;  %s2290_s30 = smov 4  }
   0x5   :  { %39 = dma.hbm_to_vmem [thread:$0]  %s32_s23, 3072, %s34_s25, [#allocation6], %s2289_s29, %s2289_s29, %s2290_s30  }
   0x6   :  { %s2291_s7 = smov [#allocation2]   ;;  %s46_s11 = sshll.u32 %s2937_s3, 4  ;;  %s47_s11 = int_to_ptr.hbm [resolvable:$true] %s46_s11 }
   0x7   :  { %s20_s8 = sshll.u32 %s2291_s7, 4  ;;  %s2292_s1 = smov [#allocation7]   ;;  %s21_s8 = int_to_ptr.vmem [resolvable:$true] %s20_s8 }
   0x8   :  { %26 = dma.hbm_to_vmem [thread:$0]  %s19_s28, 2048, %s21_s8, [#allocation3], %s2289_s29, %s2289_s29, %s2290_s30  }
   0x9   :  { %s48_s12 = sshll.u32 %s2292_s1, 4  ;;  %s49_s12 = int_to_ptr.vmem [resolvable:$true] %s48_s12 }
   0xa   :  { %54 = dma.hbm_to_vmem [thread:$0]  %s47_s11, 1024, %s49_s12, [#allocation6], %s2289_s29, %s2289_s29, %s2290_s30  }
   0xb   :  { %2282 = dma.done.wait [#allocation3], 2048  }
   0xc   :  { %2283 = vsyncadd [#allocation3], 4294965248 }
   0xd   :  { %2284 = dma.done.wait [#allocation6], 4096  }
   0xe   :  { %2285 = vsyncadd [#allocation6], 4294963200  ;;  %v1996_v0 = vld [vmem:[#allocation5 + $0x78] sm:$0xff]  ;;  %v1995_v3 = vld [vmem:[#allocation5 + $0x70] sm:$0xff]  ;;  %v401_v45 = vlaneseq  ;;  %vm1728_vm3 = vcmask 1041409   ;;  %vm1730_vm4 = vcmask 1042434  }
   0xf   :  { %v2004_v1 = vld [vmem:[#allocation5 + $0xb8] sm:$0xff]  ;;  %280 = vmatpush.bf16.msra.mxu0 %v1996_v0  ;;  %v2003_v4 = vld [vmem:[#allocation5 + $0xb0] sm:$0xff]  ;;  %v1994_v6 = vld [vmem:[#allocation5 + $0x68] sm:$0xff]  ;;  %vm1732_vm5 = vcmask 1043459   ;;  %vm1734_vm6 = vcmask 1044484   ;;  %vm1736_vm7 = vcmask 1045509  }
  0x10   :  { %v1988_v2 = vld [vmem:[#allocation5 + $0x38] sm:$0xff]  ;;  %638 = vmatpush.bf16.msra.mxu2 %v2004_v1  ;;  %v1987_v5 = vld [vmem:[#allocation5 + $0x30] sm:$0xff]  ;;  %v2002_v7 = vld [vmem:[#allocation5 + $0xa8] sm:$0xff]  ;;  %v2344_v47 = vshrl.u32 %v401_v45, 7  ;;  %vm1738_vm8 = vcmask 1046534   ;;  %vm1740_vm9 = vcmask 1047559  }
  0x11   :  { %484 = vmatpush.bf16.msra.mxu1 %v1988_v2  ;;  %v1986_v8 = vld [vmem:[#allocation5 + $0x28] sm:$0xff]  ;;  %v1993_v9 = vld [vmem:[#allocation5 + $0x60] sm:$0xff]  ;;  %v1992_v12 = vld [vmem:[#allocation5 + $0x58] sm:$0xff]  ;;  %s1759_s22 = sshll.u32 %s2940_s6, 4  ;;  %s2294_s23 = smov 128   ;;  %s1760_s22 = int_to_ptr.hbm [resolvable:$true] %s1759_s22 }
  0x12   :  { %v2001_v10 = vld [vmem:[#allocation5 + $0xa0] sm:$0xff]  ;;  %v2000_v13 = vld [vmem:[#allocation5 + $0x98] sm:$0xff]  ;;  %v1991_v15 = vld [vmem:[#allocation5 + $0x50] sm:$0xff]  ;;  %vm403_vm0 = vcmp.lt.s32.totalorder %v2344_v47, 7  ;;  %vm759_vm1 = vcmp.lt.s32.totalorder %v2344_v47, 6  ;;  %s2295_s24 = smov 8  }
  0x13   :  { %281 = vmatpush.bf16.msra.mxu0 %v1995_v3  ;;  %v1985_v11 = vld [vmem:[#allocation5 + $0x20] sm:$0xff]  ;;  %v1984_v14 = vld [vmem:[#allocation5 + $0x18] sm:$0xff]  ;;  %v1999_v16 = vld [vmem:[#allocation5 + $0x90] sm:$0xff] }
  0x14   :  { %639 = vmatpush.bf16.msra.mxu2 %v2003_v4  ;;  %v1983_v17 = vld [vmem:[#allocation5 + $0x10] sm:$0xff]  ;;  %v1990_v18 = vld [vmem:[#allocation5 + $0x48] sm:$0xff]  ;;  %v1989_v21 = vld [vmem:[#allocation5 + $0x40] sm:$0xff] }
  0x15   :  { %485 = vmatpush.bf16.msra.mxu1 %v1987_v5  ;;  %v1998_v19 = vld [vmem:[#allocation5 + $0x88] sm:$0xff]  ;;  %v1997_v22 = vld [vmem:[#allocation5 + $0x80] sm:$0xff]  ;;  %v1967_v26 = vld [vmem:[#allocation2 + $0x10] sm:$0xff] }
  0x16   :  { %v1982_v20 = vld [vmem:[#allocation5 + $0x8] sm:$0xff]  ;;  %v1981_v23 = vld [vmem:[#allocation5] sm:$0xff]  ;;  %v1968_v27 = vld [vmem:[#allocation2 + $0x18] sm:$0xff] }
  0x17   :  { %282 = vmatpush.bf16.msra.mxu0 %v1994_v6  ;;  %v1965_v24 = vld [vmem:[#allocation2] sm:$0xff]  ;;  %v1966_v25 = vld [vmem:[#allocation2 + $0x8] sm:$0xff]  ;;  %v1971_v30 = vld [vmem:[#allocation2 + $0x30] sm:$0xff] }
  0x18   :  { %640 = vmatpush.bf16.msra.mxu2 %v2002_v7  ;;  %v1969_v28 = vld [vmem:[#allocation2 + $0x20] sm:$0xff]  ;;  %v1970_v29 = vld [vmem:[#allocation2 + $0x28] sm:$0xff]  ;;  %v2012_v31 = vld [vmem:[#allocation7 + $0x38] sm:$0xff] }
  0x19   :  { %486 = vmatpush.bf16.msra.mxu1 %v1986_v8  ;;  %944 = vmatpush.bf16.msra.mxu3 %v2012_v31  ;;  %v2011_v32 = vld [vmem:[#allocation7 + $0x30] sm:$0xff]  ;;  %v2010_v33 = vld [vmem:[#allocation7 + $0x28] sm:$0xff]  ;;  %v2009_v34 = vld [vmem:[#allocation7 + $0x20] sm:$0xff] }
  0x1a   :  { %v1972_v35 = vld [vmem:[#allocation2 + $0x38] sm:$0xff]  ;;  %v2007_v37 = vld [vmem:[#allocation7 + $0x10] sm:$0xff]  ;;  %v2006_v38 = vld [vmem:[#allocation7 + $0x8] sm:$0xff] }
  0x1b   :  { %283 = vmatpush.bf16.msra.mxu0 %v1993_v9  ;;  %v2008_v36 = vld [vmem:[#allocation7 + $0x18] sm:$0xff]  ;;  %v2005_v39 = vld [vmem:[#allocation7] sm:$0xff]  ;;  %v1974_v50 = vld [vmem:[#allocation2 + $0x48] sm:$0xff] }
  0x1c   :  { %641 = vmatpush.bf16.msra.mxu2 %v2001_v10  ;;  %v1973_v40 = vld [vmem:[#allocation2 + $0x40] sm:$0xff] }
  0x1d   :  { %487 = vmatpush.bf16.msra.mxu1 %v1985_v11  ;;  %945 = vmatpush.bf16.msra.mxu3 %v2011_v32  ;;  %v2363_v2 = vld [vmem:[%s2936_s2] ss:$0 sm:$0xff]  ;;  %v1975_v11 = vld [vmem:[#allocation2 + $0x50] sm:$0xff] }
  0x1f   :  { %284 = vmatpush.bf16.msra.mxu0 %v1992_v12 }
  0x20   :  { %642 = vmatpush.bf16.msra.mxu2 %v2000_v13 }
  0x21   :  { %488 = vmatpush.bf16.msra.mxu1 %v1984_v14  ;;  %946 = vmatpush.bf16.msra.mxu3 %v2010_v33  ;;  %v1976_v33 = vld [vmem:[#allocation2 + $0x58] sm:$0xff] }
  0x23   :  { %285 = vmatpush.bf16.msra.mxu0 %v1991_v15 }
  0x24   :  { %643 = vmatpush.bf16.msra.mxu2 %v1999_v16 }
  0x25   :  { %489 = vmatpush.bf16.msra.mxu1 %v1983_v17  ;;  %947 = vmatpush.bf16.msra.mxu3 %v2009_v34 }
  0x27   :  { %286 = vmatpush.bf16.msra.mxu0 %v1990_v18 }
  0x28   :  { %644 = vmatpush.bf16.msra.mxu2 %v1998_v19 }
  0x29   :  { %490 = vmatpush.bf16.msra.mxu1 %v1982_v20  ;;  %948 = vmatpush.bf16.msra.mxu3 %v2008_v36 }
  0x2b   :  { %287 = vmatpush.bf16.msra.mxu0 %v1989_v21 }
  0x2c   :  { %645 = vmatpush.bf16.msra.mxu2 %v1997_v22 }
  0x2d   :  { %491 = vmatpush.bf16.msra.mxu1 %v1981_v23  ;;  %949 = vmatpush.bf16.msra.mxu3 %v2007_v37 }
  0x2e   :  { %288 = vmatmul.bf16.vlgmr.msra.gmra.mxu0 %v1965_v24 }
  0x2f   :  { %646 = vmatmul.bf16.vlgmr.msra.gmra.mxu2 %v1965_v24 }
  0x30   :  { %492 = vmatmul.bf16.vlgmr.msra.gmra.mxu1 %v1965_v24 }
  0x31   :  { %950 = vmatpush.bf16.msra.mxu3 %v2006_v38 }
  0x35   :  { %951 = vmatpush.bf16.msra.mxu3 %v2005_v39 }
  0x3e   :  { %293 = vmatmul.bf16.gmra.mxu0 %v1966_v25 }
  0x3f   :  { %651 = vmatmul.bf16.gmra.mxu2 %v1966_v25 }
  0x40   :  { %497 = vmatmul.bf16.gmra.mxu1 %v1966_v25 }
  0x4e   :  { %298 = vmatmul.bf16.gmra.mxu0 %v1967_v26 }
  0x4f   :  { %656 = vmatmul.bf16.gmra.mxu2 %v1967_v26 }
  0x50   :  { %502 = vmatmul.bf16.gmra.mxu1 %v1967_v26 }
  0x5e   :  { %303 = vmatmul.bf16.gmra.mxu0 %v1968_v27 }
  0x5f   :  { %661 = vmatmul.bf16.gmra.mxu2 %v1968_v27 }
  0x60   :  { %507 = vmatmul.bf16.gmra.mxu1 %v1968_v27 }
  0x6e   :  { %308 = vmatmul.bf16.gmra.mxu0 %v1969_v28 }
  0x6f   :  { %666 = vmatmul.bf16.gmra.mxu2 %v1969_v28 }
  0x70   :  { %512 = vmatmul.bf16.gmra.mxu1 %v1969_v28 }
  0x7e   :  { %313 = vmatmul.bf16.gmra.mxu0 %v1970_v29 }
  0x7f   :  { %671 = vmatmul.bf16.gmra.mxu2 %v1970_v29 }
  0x80   :  { %517 = vmatmul.bf16.gmra.mxu1 %v1970_v29 }
  0x8e   :  { %318 = vmatmul.bf16.gmra.mxu0 %v1971_v30 }
  0x8f   :  { %676 = vmatmul.bf16.gmra.mxu2 %v1971_v30 }
  0x90   :  { %522 = vmatmul.bf16.gmra.mxu1 %v1971_v30 }
  0x9e   :  { %323 = vmatmul.bf16.gmra.mxu0 %v1972_v35 }
  0x9f   :  { %681 = vmatmul.bf16.gmra.mxu2 %v1972_v35 }
  0xa0   :  { %527 = vmatmul.bf16.gmra.mxu1 %v1972_v35 }
  0xab   :  { %v2340_v41 = vpop.f32.mrf.mxu0 }
  0xac   :  { %v369_v52 = vrot.slane %v2340_v41, 1 }
  0xad   :  { %v493_v42 = vpop.f32.mrf.mxu1 }
  0xae   :  { %328 = vmatmul.bf16.gmra.mxu0 %v1973_v40 }
  0xaf   :  { %686 = vmatmul.bf16.gmra.mxu2 %v1973_v40 }
  0xb0   :  { %532 = vmatmul.bf16.gmra.mxu1 %v1973_v40 }
  0xb2   :  { %v2342_v43 = vpop.f32.mrf.mxu2 }
  0xb3   :  { %v291_v44 = vpop.f32.mrf.mxu0  ;;  %v727_v56 = vrot.slane %v2342_v43, 2 }
  0xb4   :  { %v370_v49 = vrot.slane %v291_v44, 1 }
  0xb5   :  { %v495_v46 = vpop.f32.mrf.mxu1 }
  0xb6   :  { %v434_v57 = vsel %vm403_vm0, %v369_v52, %v370_v49 }
  0xb7   :  { %v494_v60 = vadd.f32 %v493_v42, %v434_v57 }
  0xba   :  { %v649_v48 = vpop.f32.mrf.mxu2 }
  0xbb   :  { %v294_v51 = vpop.f32.mrf.mxu0  ;;  %v728_v53 = vrot.slane %v649_v48, 2 }
  0xbc   :  { %v371_v54 = vrot.slane %v294_v51, 1 }
  0xbd   :  { %v498_v55 = vpop.f32.mrf.mxu1  ;;  %v790_v58 = vsel %vm759_vm1, %v727_v56, %v728_v53 }
  0xbe   :  { %333 = vmatmul.bf16.gmra.mxu0 %v1974_v50  ;;  %v433_v59 = vsel %vm403_vm0, %v370_v49, %v371_v54  ;;  %v792_v1 = vadd.f32 %v790_v58, %v494_v60  ;;  %v1977_v60 = vld [vmem:[#allocation2 + $0x60] sm:$0xff] }
  0xbf   :  { %691 = vmatmul.bf16.gmra.mxu2 %v1974_v50  ;;  %v496_v63 = vadd.f32 %v495_v46, %v433_v59 }
  0xc0   :  { %537 = vmatmul.bf16.gmra.mxu1 %v1974_v50  ;;  %v2368_v6 = vadd.f32 %v2363_v2, %v792_v1 }
  0xc2   :  { %v652_v61 = vpop.f32.mrf.mxu2 }
  0xc3   :  { %v729_v62 = vrot.slane %v652_v61, 2  ;;  %v296_v0 = vpop.f32.mrf.mxu0 }
  0xc4   :  { %v372_v10 = vrot.slane %v296_v0, 1 }
  0xc5   :  { %v789_v3 = vsel %vm759_vm1, %v728_v53, %v729_v62  ;;  %v500_v4 = vpop.f32.mrf.mxu1 }
  0xc6   :  { %v793_v5 = vadd.f32 %v789_v3, %v496_v63  ;;  %v432_v16 = vsel %vm403_vm0, %v371_v54, %v372_v10 }
  0xc7   :  { %v499_v19 = vadd.f32 %v498_v55, %v432_v16 }
  0xc8   :  { %v2371_v7 = vadd.f32 %v2363_v2, %v793_v5 }
  0xca   :  { %v654_v8 = vpop.f32.mrf.mxu2  ;;  %v860_v9 = vpack.c.bf16 %v2371_v7, %v2368_v6 }
  0xcb   :  { %v299_v12 = vpop.f32.mrf.mxu0  ;;  %v730_v13 = vrot.slane %v654_v8, 2 }
  0xcc   :  { %952 = vmatmul.bf16.vlgmr.msra.gmra.mxu3 %v860_v9  ;;  %v373_v14 = vrot.slane %v299_v12, 1 }
  0xcd   :  { %v503_v15 = vpop.f32.mrf.mxu1  ;;  %v788_v17 = vsel %vm759_vm1, %v729_v62, %v730_v13 }
  0xce   :  { %338 = vmatmul.bf16.gmra.mxu0 %v1975_v11  ;;  %v431_v18 = vsel %vm403_vm0, %v372_v10, %v373_v14  ;;  %v794_v24 = vadd.f32 %v788_v17, %v499_v19 }
  0xcf   :  { %696 = vmatmul.bf16.gmra.mxu2 %v1975_v11  ;;  %v501_v22 = vadd.f32 %v500_v4, %v431_v18 }
  0xd0   :  { %542 = vmatmul.bf16.gmra.mxu1 %v1975_v11  ;;  %v2384_v28 = vadd.f32 %v2363_v2, %v794_v24 }
  0xd2   :  { %v657_v20 = vpop.f32.mrf.mxu2 }
  0xd3   :  { %v731_v21 = vrot.slane %v657_v20, 2  ;;  %v301_v23 = vpop.f32.mrf.mxu0 }
  0xd4   :  { %v374_v32 = vrot.slane %v301_v23, 1 }
  0xd5   :  { %v787_v25 = vsel %vm759_vm1, %v730_v13, %v731_v21  ;;  %v505_v26 = vpop.f32.mrf.mxu1 }
  0xd6   :  { %v795_v27 = vadd.f32 %v787_v25, %v501_v22  ;;  %v430_v38 = vsel %vm403_vm0, %v373_v14, %v374_v32 }
  0xd7   :  { %v504_v42 = vadd.f32 %v503_v15, %v430_v38 }
  0xd8   :  { %v2387_v29 = vadd.f32 %v2363_v2, %v795_v27 }
  0xda   :  { %v659_v30 = vpop.f32.mrf.mxu2  ;;  %v861_v31 = vpack.c.bf16 %v2387_v29, %v2384_v28 }
  0xdb   :  { %v304_v34 = vpop.f32.mrf.mxu0  ;;  %v732_v35 = vrot.slane %v659_v30, 2 }
  0xdc   :  { %957 = vmatmul.bf16.gmra.mxu3 %v861_v31  ;;  %v375_v36 = vrot.slane %v304_v34, 1 }
  0xdd   :  { %v508_v37 = vpop.f32.mrf.mxu1  ;;  %v786_v39 = vsel %vm759_vm1, %v731_v21, %v732_v35  ;;  %v1978_v21 = vld [vmem:[#allocation2 + $0x68] sm:$0xff] }
  0xde   :  { %343 = vmatmul.bf16.gmra.mxu0 %v1976_v33  ;;  %v429_v40 = vsel %vm403_vm0, %v374_v32, %v375_v36  ;;  %v796_v49 = vadd.f32 %v786_v39, %v504_v42 }
  0xdf   :  { %701 = vmatmul.bf16.gmra.mxu2 %v1976_v33  ;;  %v506_v46 = vadd.f32 %v505_v26, %v429_v40 }
  0xe0   :  { %547 = vmatmul.bf16.gmra.mxu1 %v1976_v33  ;;  %v2400_v54 = vadd.f32 %v2363_v2, %v796_v49 }
  0xe2   :  { %v662_v44 = vpop.f32.mrf.mxu2 }
  0xe3   :  { %v733_v45 = vrot.slane %v662_v44, 2  ;;  %v306_v48 = vpop.f32.mrf.mxu0 }
  0xe4   :  { %v376_v59 = vrot.slane %v306_v48, 1  ;;  %v1979_v48 = vld [vmem:[#allocation2 + $0x70] sm:$0xff] }
  0xe5   :  { %v785_v50 = vsel %vm759_vm1, %v732_v35, %v733_v45  ;;  %v510_v51 = vpop.f32.mrf.mxu1 }
  0xe6   :  { %v797_v53 = vadd.f32 %v785_v50, %v506_v46  ;;  %v428_v1 = vsel %vm403_vm0, %v375_v36, %v376_v59 }
  0xe7   :  { %v509_v5 = vadd.f32 %v508_v37, %v428_v1 }
  0xe8   :  { %v2403_v55 = vadd.f32 %v2363_v2, %v797_v53 }
  0xea   :  { %v664_v57 = vpop.f32.mrf.mxu2  ;;  %v862_v58 = vpack.c.bf16 %v2403_v55, %v2400_v54 }
  0xeb   :  { %v309_v61 = vpop.f32.mrf.mxu0  ;;  %v734_v62 = vrot.slane %v664_v57, 2 }
  0xec   :  { %962 = vmatmul.bf16.gmra.mxu3 %v862_v58  ;;  %v377_v63 = vrot.slane %v309_v61, 1 }
  0xed   :  { %v513_v0 = vpop.f32.mrf.mxu1  ;;  %v784_v3 = vsel %vm759_vm1, %v733_v45, %v734_v62 }
  0xee   :  { %348 = vmatmul.bf16.gmra.mxu0 %v1977_v60  ;;  %v427_v4 = vsel %vm403_vm0, %v376_v59, %v377_v63  ;;  %v798_v12 = vadd.f32 %v784_v3, %v509_v5 }
  0xef   :  { %706 = vmatmul.bf16.gmra.mxu2 %v1977_v60  ;;  %v511_v10 = vadd.f32 %v510_v51, %v427_v4 }
  0xf0   :  { %552 = vmatmul.bf16.gmra.mxu1 %v1977_v60  ;;  %v2416_v16 = vadd.f32 %v2363_v2, %v798_v12 }
  0xf2   :  { %v667_v8 = vpop.f32.mrf.mxu2 }
  0xf3   :  { %v735_v9 = vrot.slane %v667_v8, 2  ;;  %v311_v11 = vpop.f32.mrf.mxu0 }
  0xf4   :  { %v378_v20 = vrot.slane %v311_v11, 1 }
  0xf5   :  { %v783_v13 = vsel %vm759_vm1, %v734_v62, %v735_v9  ;;  %v515_v14 = vpop.f32.mrf.mxu1 }
  0xf6   :  { %v799_v15 = vadd.f32 %v783_v13, %v511_v10  ;;  %v426_v26 = vsel %vm403_vm0, %v377_v63, %v378_v20  ;;  %v1980_v13 = vld [vmem:[#allocation2 + $0x78] sm:$0xff] }
  0xf7   :  { %v514_v31 = vadd.f32 %v513_v0, %v426_v26 }
  0xf8   :  { %v2419_v17 = vadd.f32 %v2363_v2, %v799_v15 }
  0xfa   :  { %v669_v18 = vpop.f32.mrf.mxu2  ;;  %v863_v19 = vpack.c.bf16 %v2419_v17, %v2416_v16 }
  0xfb   :  { %v314_v22 = vpop.f32.mrf.mxu0  ;;  %v736_v23 = vrot.slane %v669_v18, 2 }
  0xfc   :  { %967 = vmatmul.bf16.gmra.mxu3 %v863_v19  ;;  %v379_v24 = vrot.slane %v314_v22, 1 }
  0xfd   :  { %v518_v25 = vpop.f32.mrf.mxu1  ;;  %v782_v27 = vsel %vm759_vm1, %v735_v9, %v736_v23 }
  0xfe   :  { %353 = vmatmul.bf16.gmra.mxu0 %v1978_v21  ;;  %v425_v30 = vsel %vm403_vm0, %v378_v20, %v379_v24  ;;  %v800_v36 = vadd.f32 %v782_v27, %v514_v31 }
  0xff   :  { %711 = vmatmul.bf16.gmra.mxu2 %v1978_v21  ;;  %v516_v34 = vadd.f32 %v515_v14, %v425_v30 }
 0x100   :  { %557 = vmatmul.bf16.gmra.mxu1 %v1978_v21  ;;  %v2432_v40 = vadd.f32 %v2363_v2, %v800_v36 }
 0x102   :  { %v672_v32 = vpop.f32.mrf.mxu2 }
 0x103   :  { %v737_v33 = vrot.slane %v672_v32, 2  ;;  %v316_v35 = vpop.f32.mrf.mxu0 }
 0x104   :  { %v380_v46 = vrot.slane %v316_v35, 1 }
 0x105   :  { %v781_v37 = vsel %vm759_vm1, %v736_v23, %v737_v33  ;;  %v520_v38 = vpop.f32.mrf.mxu1 }
 0x106   :  { %v801_v39 = vadd.f32 %v781_v37, %v516_v34  ;;  %v424_v57 = vsel %vm403_vm0, %v379_v24, %v380_v46 }
 0x107   :  { %v519_v60 = vadd.f32 %v518_v25, %v424_v57 }
 0x108   :  { %v2435_v42 = vadd.f32 %v2363_v2, %v801_v39 }
 0x10a   :  { %v674_v44 = vpop.f32.mrf.mxu2  ;;  %v864_v45 = vpack.c.bf16 %v2435_v42, %v2432_v40 }
 0x10b   :  { %v319_v49 = vpop.f32.mrf.mxu0  ;;  %v738_v50 = vrot.slane %v674_v44, 2 }
 0x10c   :  { %972 = vmatmul.bf16.gmra.mxu3 %v864_v45  ;;  %v381_v51 = vrot.slane %v319_v49, 1 }
 0x10d   :  { %v523_v53 = vpop.f32.mrf.mxu1  ;;  %v780_v58 = vsel %vm759_vm1, %v737_v33, %v738_v50 }
 0x10e   :  { %358 = vmatmul.bf16.gmra.mxu0 %v1979_v48  ;;  %v423_v59 = vsel %vm403_vm0, %v380_v46, %v381_v51  ;;  %v802_v1 = vadd.f32 %v780_v58, %v519_v60 }
 0x10f   :  { %716 = vmatmul.bf16.gmra.mxu2 %v1979_v48  ;;  %v521_v63 = vadd.f32 %v520_v38, %v423_v59 }
 0x110   :  { %562 = vmatmul.bf16.gmra.mxu1 %v1979_v48  ;;  %v2448_v8 = vadd.f32 %v2363_v2, %v802_v1 }
 0x112   :  { %v677_v61 = vpop.f32.mrf.mxu2 }
 0x113   :  { %v739_v62 = vrot.slane %v677_v61, 2  ;;  %v321_v0 = vpop.f32.mrf.mxu0 }
 0x114   :  { %v382_v12 = vrot.slane %v321_v0, 1 }
 0x115   :  { %v779_v3 = vsel %vm759_vm1, %v738_v50, %v739_v62  ;;  %v525_v4 = vpop.f32.mrf.mxu1 }
 0x116   :  { %v803_v5 = vadd.f32 %v779_v3, %v521_v63  ;;  %v422_v20 = vsel %vm403_vm0, %v381_v51, %v382_v12 }
 0x117   :  { %v524_v23 = vadd.f32 %v523_v53, %v422_v20 }
 0x118   :  { %v2451_v9 = vadd.f32 %v2363_v2, %v803_v5 }
 0x11a   :  { %v679_v10 = vpop.f32.mrf.mxu2  ;;  %v865_v11 = vpack.c.bf16 %v2451_v9, %v2448_v8 }
 0x11b   :  { %v324_v14 = vpop.f32.mrf.mxu0  ;;  %v740_v15 = vrot.slane %v679_v10, 2 }
 0x11c   :  { %977 = vmatmul.bf16.gmra.mxu3 %v865_v11  ;;  %v383_v18 = vrot.slane %v324_v14, 1 }
 0x11d   :  { %v528_v19 = vpop.f32.mrf.mxu1  ;;  %v778_v21 = vsel %vm759_vm1, %v739_v62, %v740_v15 }
 0x11e   :  { %363 = vmatmul.bf16.gmra.mxu0 %v1980_v13  ;;  %v421_v22 = vsel %vm403_vm0, %v382_v12, %v383_v18  ;;  %v804_v30 = vadd.f32 %v778_v21, %v524_v23 }
 0x11f   :  { %721 = vmatmul.bf16.gmra.mxu2 %v1980_v13  ;;  %v526_v26 = vadd.f32 %v525_v4, %v421_v22 }
 0x120   :  { %567 = vmatmul.bf16.gmra.mxu1 %v1980_v13  ;;  %v2464_v34 = vadd.f32 %v2363_v2, %v804_v30 }
 0x122   :  { %v682_v24 = vpop.f32.mrf.mxu2 }
 0x123   :  { %v741_v25 = vrot.slane %v682_v24, 2  ;;  %v326_v27 = vpop.f32.mrf.mxu0 }
 0x124   :  { %v384_v38 = vrot.slane %v326_v27, 1 }
 0x125   :  { %v777_v31 = vsel %vm759_vm1, %v740_v15, %v741_v25  ;;  %v530_v32 = vpop.f32.mrf.mxu1 }
 0x126   :  { %v805_v33 = vadd.f32 %v777_v31, %v526_v26  ;;  %v420_v48 = vsel %vm403_vm0, %v383_v18, %v384_v38 }
 0x127   :  { %v529_v51 = vadd.f32 %v528_v19, %v420_v48 }
 0x128   :  { %v2467_v35 = vadd.f32 %v2363_v2, %v805_v33 }
 0x12a   :  { %v684_v36 = vpop.f32.mrf.mxu2  ;;  %v866_v37 = vpack.c.bf16 %v2467_v35, %v2464_v34 }
 0x12b   :  { %v329_v39 = vpop.f32.mrf.mxu0  ;;  %v742_v44 = vrot.slane %v684_v36, 2 }
 0x12c   :  { %982 = vmatmul.bf16.gmra.mxu3 %v866_v37  ;;  %v385_v45 = vrot.slane %v329_v39, 1 }
 0x12d   :  { %v533_v46 = vpop.f32.mrf.mxu1  ;;  %v776_v49 = vsel %vm759_vm1, %v741_v25, %v742_v44 }
 0x12e   :  { %v419_v50 = vsel %vm403_vm0, %v384_v38, %v385_v45  ;;  %v806_v60 = vadd.f32 %v776_v49, %v529_v51  ;;  %v2506_v38 = vld [vmem:[%s2938_s4] ss:$0 sm:$0xff] }
 0x12f   :  { %v531_v58 = vadd.f32 %v530_v32, %v419_v50 }
 0x130   :  { %v2480_v0 = vadd.f32 %v2363_v2, %v806_v60 }
 0x132   :  { %v687_v53 = vpop.f32.mrf.mxu2 }
 0x133   :  { %v743_v57 = vrot.slane %v687_v53, 2  ;;  %v331_v59 = vpop.f32.mrf.mxu0 }
 0x134   :  { %v386_v5 = vrot.slane %v331_v59, 1 }
 0x135   :  { %v775_v61 = vsel %vm759_vm1, %v742_v44, %v743_v57  ;;  %v535_v62 = vpop.f32.mrf.mxu1 }
 0x136   :  { %v807_v63 = vadd.f32 %v775_v61, %v531_v58  ;;  %v418_v14 = vsel %vm403_vm0, %v385_v45, %v386_v5 }
 0x137   :  { %v534_v19 = vadd.f32 %v533_v46, %v418_v14 }
 0x138   :  { %v2483_v1 = vadd.f32 %v2363_v2, %v807_v63 }
 0x13a   :  { %v689_v3 = vpop.f32.mrf.mxu2  ;;  %v867_v4 = vpack.c.bf16 %v2483_v1, %v2480_v0 }
 0x13b   :  { %v334_v10 = vpop.f32.mrf.mxu0  ;;  %v744_v11 = vrot.slane %v689_v3, 2  ;;  %v2520_v3 = vld [vmem:[%s2939_s5] ss:$0 sm:$0xff] }
 0x13c   :  { %987 = vmatmul.bf16.gmra.mxu3 %v867_v4  ;;  %v387_v12 = vrot.slane %v334_v10, 1 }
 0x13d   :  { %v538_v13 = vpop.f32.mrf.mxu1  ;;  %v774_v15 = vsel %vm759_vm1, %v743_v57, %v744_v11 }
 0x13e   :  { %v417_v18 = vsel %vm403_vm0, %v386_v5, %v387_v12  ;;  %v808_v24 = vadd.f32 %v774_v15, %v534_v19 }
 0x13f   :  { %v536_v22 = vadd.f32 %v535_v62, %v417_v18 }
 0x140   :  { %v2496_v30 = vadd.f32 %v2363_v2, %v808_v24 }
 0x142   :  { %v692_v20 = vpop.f32.mrf.mxu2 }
 0x143   :  { %v745_v21 = vrot.slane %v692_v20, 2  ;;  %v336_v23 = vpop.f32.mrf.mxu0 }
 0x144   :  { %v388_v36 = vrot.slane %v336_v23, 1 }
 0x145   :  { %v773_v25 = vsel %vm759_vm1, %v744_v11, %v745_v21  ;;  %v540_v26 = vpop.f32.mrf.mxu1 }
 0x146   :  { %v809_v27 = vadd.f32 %v773_v25, %v536_v22  ;;  %v416_v46 = vsel %vm403_vm0, %v387_v12, %v388_v36 }
 0x147   :  { %v539_v53 = vadd.f32 %v538_v13, %v416_v46 }
 0x148   :  { %v2499_v31 = vadd.f32 %v2363_v2, %v809_v27 }
 0x14a   :  { %v694_v32 = vpop.f32.mrf.mxu2  ;;  %v868_v33 = vpack.c.bf16 %v2499_v31, %v2496_v30 }
 0x14b   :  { %v339_v37 = vpop.f32.mrf.mxu0  ;;  %v746_v39 = vrot.slane %v694_v32, 2 }
 0x14c   :  { %992 = vmatmul.bf16.gmra.mxu3 %v868_v33  ;;  %v389_v44 = vrot.slane %v339_v37, 1 }
 0x14d   :  { %v543_v45 = vpop.f32.mrf.mxu1  ;;  %v772_v50 = vsel %vm759_vm1, %v745_v21, %v746_v39 }
 0x14e   :  { %v415_v51 = vsel %vm403_vm0, %v388_v36, %v389_v44  ;;  %v810_v61 = vadd.f32 %v772_v50, %v539_v53 }
 0x14f   :  { %v953_v48 = vpop.f32.mrf.mxu3  ;;  %v541_v59 = vadd.f32 %v540_v26, %v415_v51 }
 0x150   :  { %v954_v49 = vadd.f32 %v2506_v38, %v953_v48  ;;  %v2524_v12 = vadd.f32 %v2363_v2, %v810_v61 }
 0x152   :  { %2024 = vtanh.f32 %v954_v49  ;;  %v697_v57 = vpop.f32.mrf.mxu2 }
 0x153   :  { %v747_v58 = vrot.slane %v697_v57, 2  ;;  %v341_v60 = vpop.f32.mrf.mxu0 }
 0x154   :  { %v390_v19 = vrot.slane %v341_v60, 1 }
 0x155   :  { %v771_v62 = vsel %vm759_vm1, %v746_v39, %v747_v58  ;;  %v545_v63 = vpop.f32.mrf.mxu1 }
 0x156   :  { %v811_v4 = vadd.f32 %v771_v62, %v541_v59  ;;  %v414_v24 = vsel %vm403_vm0, %v389_v44, %v390_v19 }
 0x157   :  { %v955_v5 = vpop.f32.mrf.mxu3  ;;  %v544_v37 = vadd.f32 %v543_v45, %v414_v24 }
 0x158   :  { %v2025_v10 = vpop.eup %2024  ;;  %v956_v11 = vadd.f32 %v2506_v38, %v955_v5  ;;  %v2527_v13 = vadd.f32 %v2363_v2, %v811_v4 }
 0x159   :  { %v1069_v14 = vmul.f32 %v2025_v10, %v2520_v3 }
 0x15a   :  { %2026 = vtanh.f32 %v956_v11  ;;  %v699_v15 = vpop.f32.mrf.mxu2  ;;  %v869_v18 = vpack.c.bf16 %v2527_v13, %v2524_v12 }
 0x15b   :  { %1101 = vadd.xlane.f32.xlu2 %v1069_v14  ;;  %v344_v20 = vpop.f32.mrf.mxu0  ;;  %v748_v21 = vrot.slane %v699_v15, 2 }
 0x15c   :  { %997 = vmatmul.bf16.gmra.mxu3 %v869_v18  ;;  %v391_v22 = vrot.slane %v344_v20, 1 }
 0x15d   :  { %v548_v23 = vpop.f32.mrf.mxu1  ;;  %v770_v32 = vsel %vm759_vm1, %v747_v58, %v748_v21 }
 0x15e   :  { %v413_v33 = vsel %vm403_vm0, %v390_v19, %v391_v22  ;;  %v812_v44 = vadd.f32 %v770_v32, %v544_v37 }
 0x15f   :  { %v958_v25 = vpop.f32.mrf.mxu3  ;;  %v546_v48 = vadd.f32 %v545_v63, %v413_v33 }
 0x160   :  { %v2027_v26 = vpop.eup %2026  ;;  %v959_v27 = vadd.f32 %v2506_v38, %v958_v25  ;;  %v2544_v60 = vadd.f32 %v2363_v2, %v812_v44 }
 0x161   :  { %v1070_v36 = vmul.f32 %v2027_v26, %v2520_v3 }
 0x162   :  { %2028 = vtanh.f32 %v959_v27  ;;  %v702_v39 = vpop.f32.mrf.mxu2 }
 0x163   :  { %v749_v46 = vrot.slane %v702_v39, 2  ;;  %1103 = vadd.xlane.f32.xlu0 %v1070_v36  ;;  %v346_v49 = vpop.f32.mrf.mxu0 }
 0x164   :  { %v392_v4 = vrot.slane %v346_v49, 1 }
 0x165   :  { %v769_v50 = vsel %vm759_vm1, %v748_v21, %v749_v46  ;;  %v550_v51 = vpop.f32.mrf.mxu1 }
 0x166   :  { %v813_v53 = vadd.f32 %v769_v50, %v546_v48  ;;  %v412_v15 = vsel %vm403_vm0, %v391_v22, %v392_v4 }
 0x167   :  { %v960_v57 = vpop.f32.mrf.mxu3  ;;  %v549_v26 = vadd.f32 %v548_v23, %v412_v15 }
 0x168   :  { %v2029_v58 = vpop.eup %2028  ;;  %v961_v59 = vadd.f32 %v2506_v38, %v960_v57  ;;  %v2547_v45 = vadd.f32 %v2363_v2, %v813_v53 }
 0x169   :  { %v1071_v61 = vmul.f32 %v2029_v58, %v2520_v3 }
 0x16a   :  { %2030 = vtanh.f32 %v961_v59  ;;  %v704_v62 = vpop.f32.mrf.mxu2  ;;  %v870_v63 = vpack.c.bf16 %v2547_v45, %v2544_v60 }
 0x16b   :  { %1105 = vadd.xlane.f32.xlu2 %v1071_v61  ;;  %v349_v5 = vpop.f32.mrf.mxu0  ;;  %v750_v10 = vrot.slane %v704_v62, 2 }
 0x16c   :  { %1002 = vmatmul.bf16.gmra.mxu3 %v870_v63  ;;  %v393_v11 = vrot.slane %v349_v5, 1 }
 0x16d   :  { %v553_v14 = vpop.f32.mrf.mxu1  ;;  %v768_v21 = vsel %vm759_vm1, %v749_v46, %v750_v10 }
 0x16e   :  { %v411_v24 = vsel %vm403_vm0, %v392_v4, %v393_v11  ;;  %v814_v22 = vadd.f32 %v768_v21, %v549_v26 }
 0x16f   :  { %v963_v18 = vpop.f32.mrf.mxu3  ;;  %v551_v33 = vadd.f32 %v550_v51, %v411_v24 }
 0x170   :  { %v2031_v19 = vpop.eup %2030  ;;  %v964_v20 = vadd.f32 %v2506_v38, %v963_v18  ;;  %v2564_v50 = vadd.f32 %v2363_v2, %v814_v22 }
 0x171   :  { %v1072_v25 = vmul.f32 %v2031_v19, %v2520_v3 }
 0x172   :  { %2032 = vtanh.f32 %v964_v20  ;;  %v707_v27 = vpop.f32.mrf.mxu2 }
 0x173   :  { %v751_v32 = vrot.slane %v707_v27, 2  ;;  %1107 = vadd.xlane.f32.xlu0 %v1072_v25  ;;  %v351_v36 = vpop.f32.mrf.mxu0 }
 0x174   :  { %v394_v58 = vrot.slane %v351_v36, 1 }
 0x175   :  { %v767_v37 = vsel %vm759_vm1, %v750_v10, %v751_v32  ;;  %v555_v39 = vpop.f32.mrf.mxu1 }
 0x176   :  { %v815_v48 = vadd.f32 %v767_v37, %v551_v33  ;;  %v410_v4 = vsel %vm403_vm0, %v393_v11, %v394_v58 }
 0x177   :  { %v965_v49 = vpop.f32.mrf.mxu3  ;;  %v554_v21 = vadd.f32 %v553_v14, %v410_v4 }
 0x178   :  { %v2033_v46 = vpop.eup %2032  ;;  %v966_v44 = vadd.f32 %v2506_v38, %v965_v49  ;;  %v2567_v23 = vadd.f32 %v2363_v2, %v815_v48 }
 0x179   :  { %v1073_v53 = vmul.f32 %v2033_v46, %v2520_v3 }
 0x17a   :  { %2034 = vtanh.f32 %v966_v44  ;;  %v709_v51 = vpop.f32.mrf.mxu2  ;;  %v871_v57 = vpack.c.bf16 %v2567_v23, %v2564_v50 }
 0x17b   :  { %1109 = vadd.xlane.f32.xlu1 %v1073_v53  ;;  %v354_v59 = vpop.f32.mrf.mxu0  ;;  %v752_v61 = vrot.slane %v709_v51, 2 }
 0x17c   :  { %1007 = vmatmul.bf16.gmra.mxu3 %v871_v57  ;;  %v395_v62 = vrot.slane %v354_v59, 1 }
 0x17d   :  { %v558_v63 = vpop.f32.mrf.mxu1  ;;  %v766_v18 = vsel %vm759_vm1, %v751_v32, %v752_v61 }
 0x17e   :  { %v409_v19 = vsel %vm403_vm0, %v394_v58, %v395_v62  ;;  %v816_v26 = vadd.f32 %v766_v18, %v554_v21 }
 0x17f   :  { %v968_v5 = vpop.f32.mrf.mxu3  ;;  %v556_v27 = vadd.f32 %v555_v39, %v409_v19 }
 0x180   :  { %v2035_v10 = vpop.eup %2034  ;;  %v969_v15 = vadd.f32 %v2506_v38, %v968_v5  ;;  %v2584_v49 = vadd.f32 %v2363_v2, %v816_v26 }
 0x181   :  { %v1074_v20 = vmul.f32 %v2035_v10, %v2520_v3 }
 0x182   :  { %2036 = vtanh.f32 %v969_v15  ;;  %v712_v24 = vpop.f32.mrf.mxu2 }
 0x183   :  { %v753_v25 = vrot.slane %v712_v24, 2  ;;  %1111 = vadd.xlane.f32.xlu0 %v1074_v20  ;;  %v356_v11 = vpop.f32.mrf.mxu0 }
 0x184   :  { %v396_v53 = vrot.slane %v356_v11, 1 }
 0x185   :  { %v765_v33 = vsel %vm759_vm1, %v752_v61, %v753_v25  ;;  %v560_v36 = vpop.f32.mrf.mxu1 }
 0x186   :  { %v817_v22 = vadd.f32 %v765_v33, %v556_v27  ;;  %v408_v59 = vsel %vm403_vm0, %v395_v62, %v396_v53 }
 0x187   :  { %v970_v37 = vpop.f32.mrf.mxu3  ;;  %v559_v20 = vadd.f32 %v558_v63, %v408_v59 }
 0x188   :  { %v2037_v32 = vpop.eup %2036  ;;  %v971_v48 = vadd.f32 %v2506_v38, %v970_v37  ;;  %v2587_v14 = vadd.f32 %v2363_v2, %v817_v22 }
 0x189   :  { %v1075_v46 = vmul.f32 %v2037_v32, %v2520_v3 }
 0x18a   :  { %2038 = vtanh.f32 %v971_v48  ;;  %v714_v39 = vpop.f32.mrf.mxu2  ;;  %v872_v44 = vpack.c.bf16 %v2587_v14, %v2584_v49 }
 0x18b   :  { %1113 = vadd.xlane.f32.xlu2 %v1075_v46  ;;  %v359_v51 = vpop.f32.mrf.mxu0  ;;  %v754_v57 = vrot.slane %v714_v39, 2 }
 0x18c   :  { %1012 = vmatmul.bf16.gmra.mxu3 %v872_v44  ;;  %v397_v58 = vrot.slane %v359_v51, 1 }
 0x18d   :  { %v563_v61 = vpop.f32.mrf.mxu1  ;;  %v764_v15 = vsel %vm759_vm1, %v753_v25, %v754_v57 }
 0x18e   :  { %v407_v18 = vsel %vm403_vm0, %v396_v53, %v397_v58  ;;  %v818_v26 = vadd.f32 %v764_v15, %v559_v20 }
 0x18f   :  { %v973_v4 = vpop.f32.mrf.mxu3  ;;  %v561_v62 = vadd.f32 %v560_v36, %v407_v18 }
 0x190   :  { %v2039_v5 = vpop.eup %2038  ;;  %v974_v10 = vadd.f32 %v2506_v38, %v973_v4  ;;  %v2604_v32 = vadd.f32 %v2363_v2, %v818_v26 }
 0x191   :  { %v1076_v19 = vmul.f32 %v2039_v5, %v2520_v3 }
 0x192   :  { %2040 = vtanh.f32 %v974_v10  ;;  %v717_v21 = vpop.f32.mrf.mxu2 }
 0x193   :  { %v755_v24 = vrot.slane %v717_v21, 2  ;;  %1115 = vadd.xlane.f32.xlu2 %v1076_v19  ;;  %v361_v27 = vpop.f32.mrf.mxu0 }
 0x194   :  { %v398_v44 = vrot.slane %v361_v27, 1 }
 0x195   :  { %v763_v11 = vsel %vm759_vm1, %v754_v57, %v755_v24  ;;  %v565_v48 = vpop.f32.mrf.mxu1 }
 0x196   :  { %v819_v33 = vadd.f32 %v763_v11, %v561_v62  ;;  %v406_v59 = vsel %vm403_vm0, %v397_v58, %v398_v44 }
 0x197   :  { %v975_v22 = vpop.f32.mrf.mxu3  ;;  %v564_v20 = vadd.f32 %v563_v61, %v406_v59 }
 0x198   :  { %v2041_v37 = vpop.eup %2040  ;;  %v976_v25 = vadd.f32 %v2506_v38, %v975_v22  ;;  %v2607_v63 = vadd.f32 %v2363_v2, %v819_v33 }
 0x199   :  { %v1077_v46 = vmul.f32 %v2041_v37, %v2520_v3 }
 0x19a   :  { %2042 = vtanh.f32 %v976_v25  ;;  %v719_v36 = vpop.f32.mrf.mxu2  ;;  %v873_v39 = vpack.c.bf16 %v2607_v63, %v2604_v32 }
 0x19b   :  { %1117 = vadd.xlane.f32.xlu0 %v1077_v46  ;;  %v364_v53 = vpop.f32.mrf.mxu0  ;;  %v756_v51 = vrot.slane %v719_v36, 2 }
 0x19c   :  { %1017 = vmatmul.bf16.gmra.mxu3 %v873_v39  ;;  %v399_v57 = vrot.slane %v364_v53, 1 }
 0x19d   :  { %v762_v15 = vsel %vm759_vm1, %v755_v24, %v756_v51  ;;  %v568_v26 = vpop.f32.mrf.mxu1 }
 0x19e   :  { %v405_v18 = vsel %vm403_vm0, %v398_v44, %v399_v57  ;;  %v820_v27 = vadd.f32 %v762_v15, %v564_v20 }
 0x19f   :  { %v978_v4 = vpop.f32.mrf.mxu3  ;;  %v566_v58 = vadd.f32 %v565_v48, %v405_v18 }
 0x1a0   :  { %v2043_v5 = vpop.eup %2042  ;;  %v979_v10 = vadd.f32 %v2506_v38, %v978_v4  ;;  %v2624_v46 = vadd.f32 %v2363_v2, %v820_v27 }
 0x1a1   :  { %v1078_v19 = vmul.f32 %v2043_v5, %v2520_v3 }
 0x1a2   :  { %2044 = vtanh.f32 %v979_v10  ;;  %v722_v21 = vpop.f32.mrf.mxu2 }
 0x1a3   :  { %v757_v62 = vrot.slane %v722_v21, 2  ;;  %1119 = vadd.xlane.f32.xlu0 %v1078_v19  ;;  %v366_v22 = vpop.f32.mrf.mxu0 }
 0x1a4   :  { %v400_v36 = vrot.slane %v366_v22, 1 }
 0x1a5   :  { %v761_v11 = vsel %vm759_vm1, %v756_v51, %v757_v62  ;;  %v570_v4 = vpop.f32.mrf.mxu1 }
 0x1a6   :  { %v821_v33 = vadd.f32 %v761_v11, %v566_v58  ;;  %v404_v51 = vsel %vm403_vm0, %v399_v57, %v400_v36  ;;  %v435_v59 = vsel %vm403_vm0, %v400_v36, %v369_v52 }
 0x1a7   :  { %v980_v37 = vpop.f32.mrf.mxu3  ;;  %v569_v19 = vadd.f32 %v568_v26, %v404_v51  ;;  %v571_v20 = vadd.f32 %v570_v4, %v435_v59 }
 0x1a8   :  { %v2045_v24 = vpop.eup %2044  ;;  %v981_v25 = vadd.f32 %v2506_v38, %v980_v37  ;;  %v2627_v61 = vadd.f32 %v2363_v2, %v821_v33 }
 0x1a9   :  { %v1079_v39 = vmul.f32 %v2045_v24, %v2520_v3 }
 0x1aa   :  { %2046 = vtanh.f32 %v981_v25  ;;  %v724_v48 = vpop.f32.mrf.mxu2  ;;  %v874_v44 = vpack.c.bf16 %v2627_v61, %v2624_v46 }
 0x1ab   :  { %v758_v53 = vrot.slane %v724_v48, 2  ;;  %1121 = vadd.xlane.f32.xlu1 %v1079_v39  ;;  %v2662_v48 = vadd.s32 8, %v2344_v47 }
 0x1ac   :  { %1022 = vmatmul.bf16.gmra.mxu3 %v874_v44 }
 0x1ad   :  { %v760_v5 = vsel %vm759_vm1, %v757_v62, %v758_v53  ;;  %v791_v10 = vsel %vm759_vm1, %v758_v53, %v727_v56  ;;  %vm1167_vm2 = vcmp.lt.s32.totalorder %v2662_v48, 12 }
 0x1ae   :  { %v822_v21 = vadd.f32 %v760_v5, %v569_v19  ;;  %v823_v27 = vadd.f32 %v791_v10, %v571_v20 }
 0x1af   :  { %v983_v15 = vpop.f32.mrf.mxu3 }
 0x1b0   :  { %v2047_v18 = vpop.eup %2046  ;;  %v984_v57 = vadd.f32 %v2506_v38, %v983_v15  ;;  %v2647_v52 = vadd.f32 %v2363_v2, %v822_v21  ;;  %v2650_v43 = vadd.f32 %v2363_v2, %v823_v27 }
 0x1b1   :  { %v1080_v41 = vmul.f32 %v2047_v18, %v2520_v3 }
 0x1b2   :  { %2048 = vtanh.f32 %v984_v57  ;;  %v875_v11 = vpack.c.bf16 %v2650_v43, %v2647_v52 }
 0x1b3   :  { %1123 = vadd.xlane.f32.xlu1 %v1080_v41 }
 0x1b7   :  { %v985_v62 = vpop.f32.mrf.mxu3 }
 0x1b8   :  { %v2049_v56 = vpop.eup %2048  ;;  %v986_v58 = vadd.f32 %v2506_v38, %v985_v62 }
 0x1b9   :  { %v1081_v26 = vmul.f32 %v2049_v56, %v2520_v3 }
 0x1ba   :  { %2050 = vtanh.f32 %v986_v58 }
 0x1bb   :  { %1125 = vadd.xlane.f32.xlu2 %v1081_v26 }
 0x1bc   :  { %1027 = vmatmul.bf16.gmra.mxu3 %v875_v11 }
 0x1bf   :  { %v2656_v33 = vpop.f32.mrf.mxu3 }
 0x1c0   :  { %v2051_v22 = vpop.eup %2050 }
 0x1c1   :  { %v1082_v37 = vmul.f32 %v2051_v22, %v2520_v3 }
 0x1c3   :  { %1127 = vadd.xlane.f32.xlu2 %v1082_v37 }
 0x1c7   :  { %v990_v2 = vpop.f32.mrf.mxu3 }
 0x1c8   :  { %v991_v24 = vadd.f32 %v2506_v38, %v990_v2 }
 0x1ca   :  { %2052 = vtanh.f32 %v991_v24 }
 0x1ce   :  { %v1102_v51 = vpop.xlane.xlu2 %1101 }
 0x1cf   :  { %v993_v25 = vpop.f32.mrf.mxu3 }
 0x1d0   :  { %v2053_v36 = vpop.eup %2052  ;;  %v994_v39 = vadd.f32 %v2506_v38, %v993_v25 }
 0x1d1   :  { %v1084_v44 = vmul.f32 %v2053_v36, %v2520_v3 }
 0x1d2   :  { %2054 = vtanh.f32 %v994_v39 }
 0x1d3   :  { %1131 = vadd.xlane.f32.xlu0 %v1084_v44 }
 0x1d6   :  { %v1104_v53 = vpop.xlane.xlu0 %1103 }
 0x1d7   :  { %v1169_v59 = vsel %vm1167_vm2, %v1104_v53, -1e+30  ;;  %v995_v4 = vpop.f32.mrf.mxu3 }
 0x1d8   :  { %v2055_v5 = vpop.eup %2054  ;;  %v1200_v10 = vmax.f32 %v1102_v51, %v1169_v59  ;;  %v996_v15 = vadd.f32 %v2506_v38, %v995_v4 }
 0x1d9   :  { %v1085_v18 = vmul.f32 %v2055_v5, %v2520_v3 }
 0x1da   :  { %v1201_v47 = vrot.slane %v1200_v10, 4  ;;  %2056 = vtanh.f32 %v996_v15 }
 0x1db   :  { %1133 = vadd.xlane.f32.xlu1 %v1085_v18 }
 0x1dc   :  { %v1202_v19 = vmax.f32 %v1200_v10, %v1201_v47 }
 0x1de   :  { %v1203_v20 = vrot.slane %v1202_v19, 2  ;;  %v1106_v37 = vpop.xlane.xlu2 %1105 }
 0x1df   :  { %v998_v57 = vpop.f32.mrf.mxu3 }
 0x1e0   :  { %v2057_v41 = vpop.eup %2056  ;;  %v1204_v21 = vmax.f32 %v1202_v19, %v1203_v20  ;;  %v999_v27 = vadd.f32 %v2506_v38, %v998_v57 }
 0x1e1   :  { %v1086_v62 = vmul.f32 %v2057_v41, %v2520_v3 }
 0x1e2   :  { %v1205_v56 = vrot.slane %v1204_v21, 1  ;;  %2058 = vtanh.f32 %v999_v27 }
 0x1e3   :  { %1135 = vadd.xlane.f32.xlu1 %v1086_v62 }
 0x1e4   :  { %v1206_v58 = vmax.f32 %v1204_v21, %v1205_v56 }
 0x1e6   :  { %v1312_v26 = vsub.f32 %v1102_v51, %v1206_v58  ;;  %v1313_v11 = vsub.f32 %v1169_v59, %v1206_v58  ;;  %v1108_v22 = vpop.xlane.xlu0 %1107 }
 0x1e7   :  { %v1171_v2 = vsel %vm1167_vm2, %v1108_v22, -1e+30  ;;  %v1000_v24 = vpop.f32.mrf.mxu3 }
 0x1e8   :  { %v2059_v25 = vpop.eup %2058  ;;  %v1344_v36 = vmul.f32 1.442695, %v1312_v26  ;;  %v1346_v39 = vmul.f32 1.442695, %v1313_v11  ;;  %v1207_v44 = vmax.f32 %v1106_v37, %v1171_v2  ;;  %v1001_v53 = vadd.f32 %v2506_v38, %v1000_v24 }
 0x1e9   :  { %v1087_v4 = vmul.f32 %v2059_v25, %v2520_v3 }
 0x1ea   :  { %2060 = vpow2.f32 %v1344_v36  ;;  %v1208_v5 = vrot.slane %v1207_v44, 4 }
 0x1eb   :  { %2062 = vpow2.f32 %v1346_v39  ;;  %1137 = vadd.xlane.f32.xlu2 %v1087_v4 }
 0x1ec   :  { %v1209_v51 = vmax.f32 %v1207_v44, %v1208_v5  ;;  %2064 = vtanh.f32 %v1001_v53 }
 0x1ee   :  { %v1210_v59 = vrot.slane %v1209_v51, 2  ;;  %v1110_v22 = vpop.xlane.xlu1 %1109 }
 0x1ef   :  { %v1003_v10 = vpop.f32.mrf.mxu3 }
 0x1f0   :  { %v2061_v15 = vpop.eup %2060  ;;  %v1211_v18 = vmax.f32 %v1209_v51, %v1210_v59  ;;  %v1004_v47 = vadd.f32 %v2506_v38, %v1003_v10 }
 0x1f1   :  { %v2063_v19 = vpop.eup %2062 }
 0x1f2   :  { %v2065_v20 = vpop.eup %2064  ;;  %v1408_v57 = vadd.f32 %v2063_v19, %v2061_v15  ;;  %v1212_v41 = vrot.slane %v1211_v18, 1  ;;  %2066 = vtanh.f32 %v1004_v47 }
 0x1f3   :  { %v1088_v21 = vmul.f32 %v2065_v20, %v2520_v3 }
 0x1f4   :  { %v1409_v27 = vrot.slane %v1408_v57, 4  ;;  %v1213_v62 = vmax.f32 %v1211_v18, %v1212_v41 }
 0x1f5   :  { %1139 = vadd.xlane.f32.xlu1 %v1088_v21 }
 0x1f6   :  { %v1410_v56 = vadd.f32 %v1409_v27, %v1408_v57  ;;  %v1314_v58 = vsub.f32 %v1106_v37, %v1213_v62  ;;  %v1315_v26 = vsub.f32 %v1171_v2, %v1213_v62  ;;  %v1112_v11 = vpop.xlane.xlu0 %1111 }
 0x1f7   :  { %v1173_v24 = vsel %vm1167_vm2, %v1112_v11, -1e+30  ;;  %v1005_v25 = vpop.f32.mrf.mxu3 }
 0x1f8   :  { %v2067_v36 = vpop.eup %2066  ;;  %v1411_v39 = vrot.slane %v1410_v56, 2  ;;  %v1348_v44 = vmul.f32 1.442695, %v1314_v58  ;;  %v1350_v53 = vmul.f32 1.442695, %v1315_v26  ;;  %v1214_v4 = vmax.f32 %v1110_v22, %v1173_v24 }
 0x1f9   :  { %v1006_v5 = vadd.f32 %v2506_v38, %v1005_v25  ;;  %v1089_v51 = vmul.f32 %v2067_v36, %v2520_v3 }
 0x1fa   :  { %v1412_v59 = vadd.f32 %v1411_v39, %v1410_v56  ;;  %2068 = vpow2.f32 %v1348_v44  ;;  %v1215_v10 = vrot.slane %v1214_v4, 4 }
 0x1fb   :  { %2070 = vpow2.f32 %v1350_v53  ;;  %1141 = vadd.xlane.f32.xlu0 %v1089_v51 }
 0x1fc   :  { %v1413_v37 = vrot.slane %v1412_v59, 1  ;;  %v1216_v2 = vmax.f32 %v1214_v4, %v1215_v10  ;;  %2072 = vtanh.f32 %v1006_v5 }
 0x1fe   :  { %v1414_v18 = vadd.f32 %v1413_v37, %v1412_v59  ;;  %v1217_v47 = vrot.slane %v1216_v2, 2  ;;  %v2682_v20 = vpop.xlane.xlu2 %1113 }
 0x1ff   :  { %v1008_v57 = vpop.f32.mrf.mxu3 }
 0x200   :  { %v2684_v41 = vpop.eup %2068  ;;  %2074 = vrcp.f32 %v1414_v18  ;;  %v1218_v21 = vmax.f32 %v1216_v2, %v1217_v47  ;;  %v1009_v27 = vadd.f32 %v2506_v38, %v1008_v57 }
 0x201   :  { %v2071_v62 = vpop.eup %2070 }
 0x202   :  { %v2073_v56 = vpop.eup %2072  ;;  %v1415_v58 = vadd.f32 %v2071_v62, %v2684_v41  ;;  %v1219_v26 = vrot.slane %v1218_v21, 1  ;;  %2076 = vtanh.f32 %v1009_v27 }
 0x203   :  { %v1090_v11 = vmul.f32 %v2073_v56, %v2520_v3 }
 0x204   :  { %v1416_v25 = vrot.slane %v1415_v58, 4  ;;  %v1220_v36 = vmax.f32 %v1218_v21, %v1219_v26 }
 0x205   :  { %1143 = vadd.xlane.f32.xlu0 %v1090_v11 }
 0x206   :  { %v2075_v39 = vpop.eup %2074  ;;  %v1417_v44 = vadd.f32 %v1416_v25, %v1415_v58  ;;  %v1316_v53 = vsub.f32 %v1110_v22, %v1220_v36  ;;  %v1317_v4 = vsub.f32 %v1173_v24, %v1220_v36  ;;  %v1116_v5 = vpop.xlane.xlu2 %1115 }
 0x207   :  { %v1536_v51 = vmul.f32 %v2075_v39, %v2061_v15  ;;  %v1537_v59 = vmul.f32 %v2075_v39, %v2063_v19  ;;  %v1175_v10 = vsel %vm1167_vm2, %v1116_v5, -1e+30  ;;  %v1010_v37 = vpop.f32.mrf.mxu3 }
 0x208   :  { %v2077_v2 = vpop.eup %2076  ;;  %v1418_v18 = vrot.slane %v1417_v44, 2  ;;  %v1352_v47 = vmul.f32 1.442695, %v1316_v53  ;;  %v1354_v57 = vmul.f32 1.442695, %v1317_v4  ;;  %v1221_v27 = vmax.f32 %v2682_v20, %v1175_v10 }
 0x209   :  { %v1011_v21 = vadd.f32 %v2506_v38, %v1010_v37  ;;  %v1091_v56 = vmul.f32 %v2077_v2, %v2520_v3  ;;  %v1568_v15 = vmul.f32 %v1536_v51, %v2368_v6  ;;  %v1569_v19 = vmul.f32 %v1537_v59, %v2371_v7 }
 0x20a   :  { %v1419_v58 = vadd.f32 %v1418_v18, %v1417_v44  ;;  %2078 = vpow2.f32 %v1352_v47  ;;  %v1222_v22 = vrot.slane %v1221_v27, 4 }
 0x20b   :  { %2080 = vpow2.f32 %v1354_v57  ;;  %1145 = vadd.xlane.f32.xlu1 %v1091_v56  ;;  %v1600_v39 = vadd.f32 %v1569_v19, %v1568_v15 }
 0x20c   :  { %v1420_v24 = vrot.slane %v1419_v58, 1  ;;  %v1223_v26 = vmax.f32 %v1221_v27, %v1222_v22  ;;  %2082 = vtanh.f32 %v1011_v21 }
 0x20d   :  { %v1601_v37 = vrot.slane %v1600_v39, 4 }
 0x20e   :  { %v1421_v11 = vadd.f32 %v1420_v24, %v1419_v58  ;;  %v1224_v25 = vrot.slane %v1223_v26, 2  ;;  %v2696_v36 = vpop.xlane.xlu0 %1117 }
 0x20f   :  { %v1013_v53 = vpop.f32.mrf.mxu3  ;;  %v1602_v22 = vadd.f32 %v1601_v37, %v1600_v39 }
 0x210   :  { %v2698_v4 = vpop.eup %2078  ;;  %2084 = vrcp.f32 %v1421_v11  ;;  %v1225_v44 = vmax.f32 %v1223_v26, %v1224_v25  ;;  %v1014_v5 = vadd.f32 %v2506_v38, %v1013_v53 }
 0x211   :  { %v2701_v6 = vpop.eup %2080 }
 0x212   :  { %v2083_v7 = vpop.eup %2082  ;;  %v1422_v51 = vadd.f32 %v2701_v6, %v2698_v4  ;;  %v1226_v59 = vrot.slane %v1225_v44, 1  ;;  %2086 = vtanh.f32 %v1014_v5 }
 0x213   :  { %v1092_v2 = vmul.f32 %v2083_v7, %v2520_v3 }
 0x214   :  { %v1423_v18 = vrot.slane %v1422_v51, 4  ;;  %v1227_v47 = vmax.f32 %v1225_v44, %v1226_v59 }
 0x215   :  { %1147 = vadd.xlane.f32.xlu1 %v1092_v2 }
 0x216   :  { %v2085_v57 = vpop.eup %2084  ;;  %v1424_v27 = vadd.f32 %v1423_v18, %v1422_v51  ;;  %v1318_v21 = vsub.f32 %v2682_v20, %v1227_v47  ;;  %v1319_v56 = vsub.f32 %v1175_v10, %v1227_v47  ;;  %v1120_v58 = vpop.xlane.xlu0 %1119  ;;  %v1603_v51 = vrot.slane %v1602_v22, 2 }
 0x217   :  { %v1538_v15 = vmul.f32 %v2085_v57, %v2684_v41  ;;  %v1539_v19 = vmul.f32 %v2085_v57, %v2071_v62  ;;  %v1177_v24 = vsel %vm1167_vm2, %v1120_v58, -1e+30  ;;  %v1015_v26 = vpop.f32.mrf.mxu3 }
 0x218   :  { %v2087_v11 = vpop.eup %2086  ;;  %v1425_v25 = vrot.slane %v1424_v27, 2  ;;  %v1356_v53 = vmul.f32 1.442695, %v1318_v21  ;;  %v1358_v5 = vmul.f32 1.442695, %v1319_v56  ;;  %v1228_v44 = vmax.f32 %v2696_v36, %v1177_v24 }
 0x219   :  { %v1570_v7 = vmul.f32 %v1538_v15, %v2384_v28  ;;  %v1571_v20 = vmul.f32 %v1539_v19, %v2387_v29  ;;  %v1016_v10 = vadd.f32 %v2506_v38, %v1015_v26  ;;  %v1093_v39 = vmul.f32 %v2087_v11, %v2520_v3 }
 0x21a   :  { %v1426_v41 = vadd.f32 %v1425_v25, %v1424_v27  ;;  %2088 = vpow2.f32 %v1356_v53  ;;  %v1229_v62 = vrot.slane %v1228_v44, 4  ;;  %v1604_v28 = vadd.f32 %v1603_v51, %v1602_v22 }
 0x21b   :  { %v1607_v59 = vadd.f32 %v1571_v20, %v1570_v7  ;;  %2090 = vpow2.f32 %v1358_v5  ;;  %1149 = vadd.xlane.f32.xlu2 %v1093_v39 }
 0x21c   :  { %v1427_v37 = vrot.slane %v1426_v41, 1  ;;  %v1230_v2 = vmax.f32 %v1228_v44, %v1229_v62  ;;  %2092 = vtanh.f32 %v1016_v10  ;;  %v1605_v53 = vrot.slane %v1604_v28, 1 }
 0x21d   :  { %v1608_v18 = vrot.slane %v1607_v59, 4 }
 0x21e   :  { %v1428_v47 = vadd.f32 %v1427_v37, %v1426_v41  ;;  %v1231_v57 = vrot.slane %v1230_v2, 2  ;;  %v1606_v51 = vadd.f32 %v1605_v53, %v1604_v28 }
 0x21f   :  { %v1609_v21 = vadd.f32 %v1608_v18, %v1607_v59  ;;  %v1018_v29 = vpop.f32.mrf.mxu3 }
 0x220   :  { %v2715_v56 = vpop.eup %2088  ;;  %2094 = vrcp.f32 %v1428_v47  ;;  %v1232_v58 = vmax.f32 %v1230_v2, %v1231_v57  ;;  %v1019_v27 = vadd.f32 %v2506_v38, %v1018_v29 }
 0x221   :  { %v2718_v15 = vpop.eup %2090  ;;  %v1610_v19 = vrot.slane %v1609_v21, 2 }
 0x222   :  { %v2093_v26 = vpop.eup %2092  ;;  %v1429_v11 = vadd.f32 %v2718_v15, %v2715_v56  ;;  %v1233_v25 = vrot.slane %v1232_v58, 1  ;;  %2096 = vtanh.f32 %v1019_v27 }
 0x223   :  { %v1611_v5 = vadd.f32 %v1610_v19, %v1609_v21  ;;  %v1094_v22 = vmul.f32 %v2093_v26, %v2520_v3  ;;  %v989_v26 = vadd.f32 %v2506_v38, %v2656_v33 }
 0x224   :  { %v1430_v44 = vrot.slane %v1429_v11, 4  ;;  %v1234_v7 = vmax.f32 %v1232_v58, %v1233_v25 }
 0x225   :  { %v1612_v20 = vrot.slane %v1611_v5, 1  ;;  %1151 = vadd.xlane.f32.xlu2 %v1094_v22 }
 0x226   :  { %v2095_v10 = vpop.eup %2094  ;;  %v1431_v39 = vadd.f32 %v1430_v44, %v1429_v11  ;;  %v1320_v41 = vsub.f32 %v2696_v36, %v1234_v7  ;;  %v1321_v62 = vsub.f32 %v1177_v24, %v1234_v7 }
 0x227   :  { %v1613_v59 = vadd.f32 %v1612_v20, %v1611_v5  ;;  %v1540_v37 = vmul.f32 %v2095_v10, %v2698_v4  ;;  %v1541_v2 = vmul.f32 %v2095_v10, %v2701_v6  ;;  %v1020_v18 = vpop.f32.mrf.mxu3 }
 0x228   :  { %v2097_v47 = vpop.eup %2096  ;;  %v1432_v57 = vrot.slane %v1431_v39, 2  ;;  %v1360_v21 = vmul.f32 1.442695, %v1320_v41  ;;  %v1362_v29 = vmul.f32 1.442695, %v1321_v62  ;;  %v1021_v36 = vadd.f32 %v2506_v38, %v1020_v18 }
 0x229   :  { %v1729_v58 = vsel %vm1728_vm3, %v1613_v59, %v1606_v51  ;;  %v1572_v27 = vmul.f32 %v1540_v37, %v2400_v54  ;;  %v1573_v19 = vmul.f32 %v1541_v2, %v2403_v55  ;;  %v1095_v28 = vmul.f32 %v2097_v47, %v2520_v3 }
 0x22a   :  { %v1433_v24 = vadd.f32 %v1432_v57, %v1431_v39  ;;  %2098 = vpow2.f32 %v1360_v21 }
 0x22b   :  { %v1614_v4 = vadd.f32 %v1573_v19, %v1572_v27  ;;  %2100 = vpow2.f32 %v1362_v29  ;;  %1153 = vadd.xlane.f32.xlu0 %v1095_v28 }
 0x22c   :  { %v1434_v6 = vrot.slane %v1433_v24, 1  ;;  %2102 = vtanh.f32 %v1021_v36 }
 0x22d   :  { %v1615_v11 = vrot.slane %v1614_v4, 4 }
 0x22e   :  { %v1435_v25 = vadd.f32 %v1434_v6, %v1433_v24  ;;  %v2743_v6 = vpop.xlane.xlu1 %1121 }
 0x22f   :  { %v1616_v53 = vadd.f32 %v1615_v11, %v1614_v4  ;;  %v1023_v54 = vpop.f32.mrf.mxu3 }
 0x230   :  { %v2099_v5 = vpop.eup %2098  ;;  %2104 = vrcp.f32 %v1435_v25  ;;  %v1024_v55 = vadd.f32 %v2506_v38, %v1023_v54 }
 0x231   :  { %v2101_v22 = vpop.eup %2100  ;;  %2106 = vtanh.f32 %v989_v26  ;;  %v1617_v44 = vrot.slane %v1616_v53, 2 }
 0x232   :  { %v2103_v7 = vpop.eup %2102  ;;  %v1436_v20 = vadd.f32 %v2101_v22, %v2099_v5  ;;  %2108 = vtanh.f32 %v1024_v55 }
 0x233   :  { %v1618_v10 = vadd.f32 %v1617_v44, %v1616_v53  ;;  %v1096_v39 = vmul.f32 %v2103_v7, %v2520_v3 }
 0x234   :  { %v1437_v41 = vrot.slane %v1436_v20, 4 }
 0x235   :  { %v1619_v62 = vrot.slane %v1618_v10, 1  ;;  %1155 = vadd.xlane.f32.xlu0 %v1096_v39 }
 0x236   :  { %v2105_v33 = vpop.eup %2104  ;;  %v1438_v51 = vadd.f32 %v1437_v41, %v1436_v20  ;;  %v1124_v55 = vpop.xlane.xlu1 %1123  ;;  %v2184_v41 = vld [vmem:[%s2938_s4] ss:$0 sm:$0xff] }
 0x237   :  { %v2107_v59 = vpop.eup %2106  ;;  %v1620_v37 = vadd.f32 %v1619_v62, %v1618_v10  ;;  %v1542_v2 = vmul.f32 %v2105_v33, %v2715_v56  ;;  %v1543_v18 = vmul.f32 %v2105_v33, %v2718_v15  ;;  %v1025_v47 = vpop.f32.mrf.mxu3 }
 0x238   :  { %v2109_v57 = vpop.eup %2108  ;;  %v1439_v21 = vrot.slane %v1438_v51, 2  ;;  %v1026_v19 = vadd.f32 %v2506_v38, %v1025_v47  ;;  %v1083_v4 = vmul.f32 %v2107_v59, %v2520_v3 }
 0x239   :  { %v1574_v29 = vmul.f32 %v1542_v2, %v2416_v16  ;;  %v1575_v27 = vmul.f32 %v1543_v18, %v2419_v17  ;;  %v1097_v36 = vmul.f32 %v2109_v57, %v2520_v3  ;;  %v1731_v28 = vsel %vm1730_vm4, %v1620_v37, %v1729_v58 }
 0x23a   :  { %v1440_v24 = vadd.f32 %v1439_v21, %v1438_v51  ;;  %2110 = vtanh.f32 %v1026_v19 }
 0x23b   :  { %1157 = vadd.xlane.f32.xlu1 %v1097_v36  ;;  %v1621_v56 = vadd.f32 %v1575_v27, %v1574_v29  ;;  %v2185_v29 = vld [vmem:[%s2939_s5] ss:$0 sm:$0xff]  ;;  %v2756_v36 = vpop.xlane.xlu2 %1125  ;;  %s2293_s5 = smov [#allocation8]  }
 0x23c   :  { %v1441_v15 = vrot.slane %v1440_v24, 1  ;;  %s1757_s19 = sshll.u32 %s2293_s5, 4  ;;  %s1758_s19 = int_to_ptr.vmem [resolvable:$true] %s1757_s19 }
 0x23d   :  { %1129 = vadd.xlane.f32.xlu0 %v1083_v4  ;;  %v1622_v11 = vrot.slane %v1621_v56, 4 }
 0x23e   :  { %v1442_v26 = vadd.f32 %v1441_v15, %v1440_v24 }
 0x23f   :  { %v1028_v16 = vpop.f32.mrf.mxu3  ;;  %v1623_v58 = vadd.f32 %v1622_v11, %v1621_v56 }
 0x240   :  { %2112 = vrcp.f32 %v1442_v26  ;;  %v1029_v17 = vadd.f32 %v2506_v38, %v1028_v16  ;;  %v2111_v25 = vpop.eup %2110 }
 0x241   :  { %v1098_v53 = vmul.f32 %v2111_v25, %v2520_v3  ;;  %v1624_v39 = vrot.slane %v1623_v58, 2 }
 0x242   :  { %2114 = vtanh.f32 %v1029_v17 }
 0x243   :  { %1159 = vadd.xlane.f32.xlu1 %v1098_v53  ;;  %v1625_v37 = vadd.f32 %v1624_v39, %v1623_v58  ;;  %v1128_v25 = vpop.xlane.xlu2 %1127 }
 0x245   :  { %v1626_v18 = vrot.slane %v1625_v37, 1 }
 0x246   :  { %v2113_v54 = vpop.eup %2112 }
 0x247   :  { %v1544_v44 = vmul.f32 %v2113_v54, %v2099_v5  ;;  %v1545_v7 = vmul.f32 %v2113_v54, %v2101_v22  ;;  %v1030_v20 = vpop.f32.mrf.mxu3  ;;  %v1627_v27 = vadd.f32 %v1626_v18, %v1625_v37  ;;  %v2764_v54 = vpop.xlane.xlu0 %1131 }
 0x248   :  { %v2115_v10 = vpop.eup %2114  ;;  %v1031_v62 = vadd.f32 %v2184_v41, %v1030_v20 }
 0x249   :  { %v1576_v38 = vmul.f32 %v1544_v44, %v2432_v40  ;;  %v1577_v33 = vmul.f32 %v1545_v7, %v2435_v42  ;;  %v1099_v51 = vmul.f32 %v2115_v10, %v2520_v3  ;;  %v1733_v56 = vsel %vm1732_vm5, %v1627_v27, %v1731_v28 }
 0x24a   :  { %2116 = vtanh.f32 %v1031_v62 }
 0x24b   :  { %v1628_v59 = vadd.f32 %v1577_v33, %v1576_v38  ;;  %1161 = vadd.xlane.f32.xlu1 %v1099_v51 }
 0x24d   :  { %v1629_v2 = vrot.slane %v1628_v59, 4 }
 0x24e   :  { %v1134_v5 = vpop.xlane.xlu1 %1133 }
 0x24f   :  { %v1630_v22 = vadd.f32 %v1629_v2, %v1628_v59  ;;  %v2770_v59 = vsel %vm1167_vm2, %v1124_v55, -1e+30 }
 0x250   :  { %v2117_v57 = vpop.eup %2116 }
 0x251   :  { %v1631_v47 = vrot.slane %v1630_v22, 2  ;;  %v1100_v40 = vmul.f32 %v2185_v29, %v2117_v57 }
 0x253   :  { %v1632_v21 = vadd.f32 %v1631_v47, %v1630_v22  ;;  %1163 = vadd.xlane.f32.xlu2 %v1100_v40  ;;  %v1235_v22 = vmax.f32 %v2743_v6, %v2770_v59 }
 0x255   :  { %v1633_v42 = vrot.slane %v1632_v21, 1  ;;  %v1236_v29 = vrot.slane %v1235_v22, 4 }
 0x256   :  { %v1136_v3 = vpop.xlane.xlu1 %1135 }
 0x257   :  { %v1634_v19 = vadd.f32 %v1633_v42, %v1632_v21  ;;  %v1185_v24 = vsel %vm1167_vm2, %v1136_v3, -1e+30  ;;  %v2782_v21 = vsel %vm1167_vm2, %v1128_v25, -1e+30 }
 0x258   :  { %v1256_v4 = vmax.f32 %v1134_v5, %v1185_v24  ;;  %v1242_v27 = vmax.f32 %v2756_v36, %v2782_v21 }
 0x259   :  { %v2762_v15 = vsel %vm1734_vm6, %v1634_v19, %v1733_v56 }
 0x25a   :  { %v1257_v26 = vrot.slane %v1256_v4, 4 }
 0x25c   :  { %v1258_v16 = vmax.f32 %v1256_v4, %v1257_v26  ;;  %v1237_v4 = vmax.f32 %v1235_v22, %v1236_v29 }
 0x25e   :  { %v1259_v11 = vrot.slane %v1258_v16, 2  ;;  %v1138_v41 = vpop.xlane.xlu2 %1137 }
 0x260   :  { %v1260_v17 = vmax.f32 %v1258_v16, %v1259_v11 }
 0x262   :  { %v1261_v53 = vrot.slane %v1260_v17, 1 }
 0x264   :  { %v1262_v58 = vmax.f32 %v1260_v17, %v1261_v53  ;;  %v1243_v17 = vrot.slane %v1242_v27, 4  ;;  %v1238_v53 = vrot.slane %v1237_v4, 2 }
 0x266   :  { %v1328_v44 = vsub.f32 %v1134_v5, %v1262_v58  ;;  %v1329_v7 = vsub.f32 %v1185_v24, %v1262_v58 }
 0x268   :  { %v1376_v20 = vmul.f32 1.442695, %v1328_v44  ;;  %v1378_v10 = vmul.f32 1.442695, %v1329_v7  ;;  %v1140_v39 = vpop.xlane.xlu1 %1139 }
 0x269   :  { %v1187_v28 = vsel %vm1167_vm2, %v1140_v39, -1e+30 }
 0x26a   :  { %2118 = vpow2.f32 %v1376_v20  ;;  %v1263_v62 = vmax.f32 %v1138_v41, %v1187_v28  ;;  %v1244_v20 = vmax.f32 %v1242_v27, %v1243_v17 }
 0x26b   :  { %2120 = vpow2.f32 %v1378_v10 }
 0x26c   :  { %v1264_v38 = vrot.slane %v1263_v62, 4 }
 0x26e   :  { %v1265_v33 = vmax.f32 %v1263_v62, %v1264_v38  ;;  %v1142_v51 = vpop.xlane.xlu0 %1141 }
 0x270   :  { %v2772_v37 = vpop.eup %2118  ;;  %v1266_v2 = vrot.slane %v1265_v33, 2 }
 0x271   :  { %v2774_v5 = vpop.eup %2120 }
 0x272   :  { %v1267_v18 = vmax.f32 %v1265_v33, %v1266_v2  ;;  %v1464_v47 = vadd.f32 %v2774_v5, %v2772_v37  ;;  %v1245_v33 = vrot.slane %v1244_v20, 2 }
 0x274   :  { %v1268_v57 = vrot.slane %v1267_v18, 1  ;;  %v1465_v40 = vrot.slane %v1464_v47, 4 }
 0x276   :  { %v1269_v55 = vmax.f32 %v1267_v18, %v1268_v57  ;;  %v1466_v11 = vadd.f32 %v1465_v40, %v1464_v47 }
 0x278   :  { %v1330_v42 = vsub.f32 %v1138_v41, %v1269_v55  ;;  %v1331_v3 = vsub.f32 %v1187_v28, %v1269_v55  ;;  %v1144_v19 = vpop.xlane.xlu0 %1143  ;;  %v1467_v7 = vrot.slane %v1466_v11, 2  ;;  %v1239_v41 = vmax.f32 %v1237_v4, %v1238_v53 }
 0x279   :  { %v1189_v24 = vsel %vm1167_vm2, %v1144_v19, -1e+30  ;;  %v1246_v55 = vmax.f32 %v1244_v20, %v1245_v33 }
 0x27a   :  { %v1380_v56 = vmul.f32 1.442695, %v1330_v42  ;;  %v1382_v26 = vmul.f32 1.442695, %v1331_v3  ;;  %v1270_v16 = vmax.f32 %v1142_v51, %v1189_v24  ;;  %v1468_v38 = vadd.f32 %v1467_v7, %v1466_v11 }
 0x27b   :  { %v1240_v18 = vrot.slane %v1239_v41, 1  ;;  %v1247_v17 = vrot.slane %v1246_v55, 1 }
 0x27c   :  { %2122 = vpow2.f32 %v1380_v56  ;;  %v1271_v25 = vrot.slane %v1270_v16, 4  ;;  %v1469_v29 = vrot.slane %v1468_v38, 1 }
 0x27d   :  { %2124 = vpow2.f32 %v1382_v26  ;;  %v1241_v56 = vmax.f32 %v1239_v41, %v1240_v18  ;;  %v1248_v20 = vmax.f32 %v1246_v55, %v1247_v17 }
 0x27e   :  { %v1272_v58 = vmax.f32 %v1270_v16, %v1271_v25  ;;  %v2788_v44 = vpop.xlane.xlu1 %1145  ;;  %v1470_v4 = vadd.f32 %v1469_v29, %v1468_v38 }
 0x27f   :  { %v1322_v53 = vsub.f32 %v2743_v6, %v1241_v56  ;;  %v1323_v7 = vsub.f32 %v2770_v59, %v1241_v56  ;;  %v1325_v6 = vsub.f32 %v2782_v21, %v1248_v20 }
 0x280   :  { %v1273_v10 = vrot.slane %v1272_v58, 2 }
 0x281   :  { %v1370_v55 = vmul.f32 1.442695, %v1325_v6 }
 0x282   :  { %v2123_v39 = vpop.eup %2122  ;;  %v1274_v28 = vmax.f32 %v1272_v58, %v1273_v10 }
 0x283   :  { %v2125_v62 = vpop.eup %2124 }
 0x284   :  { %v1471_v2 = vadd.f32 %v2125_v62, %v2123_v39  ;;  %v1275_v22 = vrot.slane %v1274_v28, 1 }
 0x286   :  { %v1472_v47 = vrot.slane %v1471_v2, 4  ;;  %v1276_v57 = vmax.f32 %v1274_v28, %v1275_v22  ;;  %v1364_v28 = vmul.f32 1.442695, %v1322_v53  ;;  %v1324_v22 = vsub.f32 %v2756_v36, %v1248_v20 }
 0x288   :  { %v1473_v40 = vadd.f32 %v1472_v47, %v1471_v2  ;;  %v1332_v42 = vsub.f32 %v1142_v51, %v1276_v57  ;;  %v1333_v3 = vsub.f32 %v1189_v24, %v1276_v57  ;;  %v1148_v19 = vpop.xlane.xlu1 %1147  ;;  %v1366_v2 = vmul.f32 1.442695, %v1323_v7 }
 0x289   :  { %v2792_v11 = vsel %vm1167_vm2, %v1148_v19, -1e+30 }
 0x28a   :  { %v1474_v27 = vrot.slane %v1473_v40, 2  ;;  %v1384_v26 = vmul.f32 1.442695, %v1332_v42  ;;  %v1386_v16 = vmul.f32 1.442695, %v1333_v3  ;;  %v1277_v51 = vmax.f32 %v2788_v44, %v2792_v11 }
 0x28c   :  { %v1475_v25 = vadd.f32 %v1474_v27, %v1473_v40  ;;  %2126 = vpow2.f32 %v1384_v26  ;;  %v1278_v38 = vrot.slane %v1277_v51, 4  ;;  %v1368_v40 = vmul.f32 1.442695, %v1324_v22 }
 0x28d   :  { %2128 = vpow2.f32 %v1386_v16 }
 0x28e   :  { %v1476_v58 = vrot.slane %v1475_v25, 1  ;;  %v2797_v24 = vpop.xlane.xlu2 %1149  ;;  %2130 = vrcp.f32 %v1470_v4  ;;  %v1279_v29 = vmax.f32 %v1277_v51, %v1278_v38 }
 0x290   :  { %v1477_v10 = vadd.f32 %v1476_v58, %v1475_v25  ;;  %v1280_v16 = vrot.slane %v1279_v29, 2 }
 0x292   :  { %v2127_v41 = vpop.eup %2126  ;;  %2132 = vrcp.f32 %v1477_v10  ;;  %v1281_v7 = vmax.f32 %v1279_v29, %v1280_v16 }
 0x293   :  { %v2129_v33 = vpop.eup %2128  ;;  %2134 = vpow2.f32 %v1364_v28 }
 0x294   :  { %v1478_v18 = vadd.f32 %v2129_v33, %v2127_v41  ;;  %v2131_v47 = vpop.eup %2130  ;;  %2136 = vpow2.f32 %v1366_v2  ;;  %v1282_v6 = vrot.slane %v1281_v7, 1 }
 0x295   :  { %v1552_v42 = vmul.f32 %v2131_v47, %v2772_v37  ;;  %v1553_v56 = vmul.f32 %v2131_v47, %v2774_v5  ;;  %2138 = vpow2.f32 %v1368_v40 }
 0x296   :  { %v1479_v57 = vrot.slane %v1478_v18, 4  ;;  %2140 = vpow2.f32 %v1370_v55  ;;  %v1283_v40 = vmax.f32 %v1281_v7, %v1282_v6 }
 0x297   :  { %v1585_v58 = vmul.f32 %v1553_v56, %v2499_v31 }
 0x298   :  { %v2133_v59 = vpop.eup %2132  ;;  %v1480_v3 = vadd.f32 %v1479_v57, %v1478_v18  ;;  %v1152_v19 = vpop.xlane.xlu2 %1151 }
 0x299   :  { %v1554_v27 = vmul.f32 %v2133_v59, %v2123_v39  ;;  %v1555_v26 = vmul.f32 %v2133_v59, %v2125_v62  ;;  %v2806_v36 = vsel %vm1167_vm2, %v1152_v19, -1e+30  ;;  %v2812_v37 = vpop.eup %2134  ;;  %v1584_v62 = vmul.f32 %v1552_v42, %v2496_v30 }
 0x29a   :  { %v1481_v21 = vrot.slane %v1480_v3, 2  ;;  %v1284_v4 = vmax.f32 %v2797_v24, %v2806_v36  ;;  %v2814_v39 = vpop.eup %2136 }
 0x29b   :  { %v1586_v17 = vmul.f32 %v1554_v27, %v2524_v12  ;;  %v1587_v25 = vmul.f32 %v1555_v26, %v2527_v13  ;;  %v1656_v38 = vadd.f32 %v1585_v58, %v1584_v62  ;;  %v2820_v2 = vpop.eup %2138  ;;  %v1443_v22 = vadd.f32 %v2814_v39, %v2812_v37 }
 0x29c   :  { %v1482_v53 = vadd.f32 %v1481_v21, %v1480_v3  ;;  %v1285_v5 = vrot.slane %v1284_v4, 4  ;;  %v2824_v30 = vpop.eup %2140  ;;  %v1335_v58 = vsub.f32 %v2792_v11, %v1283_v40 }
 0x29d   :  { %v1663_v10 = vadd.f32 %v1587_v25, %v1586_v17  ;;  %v1657_v57 = vrot.slane %v1656_v38, 4  ;;  %v1444_v29 = vrot.slane %v1443_v22, 4  ;;  %v1450_v59 = vadd.f32 %v2824_v30, %v2820_v2 }
 0x29e   :  { %v1483_v51 = vrot.slane %v1482_v53, 1  ;;  %v1286_v20 = vmax.f32 %v1284_v4, %v1285_v5  ;;  %v2818_v28 = vpop.xlane.xlu0 %1153  ;;  %v1334_v17 = vsub.f32 %v2788_v44, %v1283_v40 }
 0x29f   :  { %v1664_v31 = vrot.slane %v1663_v10, 4  ;;  %v1658_v56 = vadd.f32 %v1657_v57, %v1656_v38  ;;  %v1445_v16 = vadd.f32 %v1444_v29, %v1443_v22  ;;  %v1451_v4 = vrot.slane %v1450_v59, 4 }
 0x2a0   :  { %v1484_v12 = vadd.f32 %v1483_v51, %v1482_v53  ;;  %v1287_v13 = vrot.slane %v1286_v20, 2 }
 0x2a1   :  { %v1665_v55 = vadd.f32 %v1664_v31, %v1663_v10  ;;  %v1446_v10 = vrot.slane %v1445_v16, 2 }
 0x2a2   :  { %2142 = vrcp.f32 %v1484_v12  ;;  %v1288_v18 = vmax.f32 %v1286_v20, %v1287_v13  ;;  %v1452_v12 = vadd.f32 %v1451_v4, %v1450_v59  ;;  %v1388_v13 = vmul.f32 1.442695, %v1334_v17 }
 0x2a3   :  { %v1666_v53 = vrot.slane %v1665_v55, 2  ;;  %v1447_v29 = vadd.f32 %v1446_v10, %v1445_v16 }
 0x2a4   :  { %v1289_v47 = vrot.slane %v1288_v18, 1  ;;  %v1453_v59 = vrot.slane %v1452_v12, 2  ;;  %2144 = vpow2.f32 %v1388_v13 }
 0x2a5   :  { %v1667_v22 = vadd.f32 %v1666_v53, %v1665_v55 }
 0x2a6   :  { %v1290_v3 = vmax.f32 %v1288_v18, %v1289_v47  ;;  %v1454_v4 = vadd.f32 %v1453_v59, %v1452_v12 }
 0x2a8   :  { %v2143_v42 = vpop.eup %2142  ;;  %v1156_v19 = vpop.xlane.xlu0 %1155  ;;  %v1336_v51 = vsub.f32 %v2797_v24, %v1290_v3  ;;  %v1337_v20 = vsub.f32 %v2806_v36, %v1290_v3  ;;  %v1455_v13 = vrot.slane %v1454_v4, 1 }
 0x2a9   :  { %v1556_v27 = vmul.f32 %v2143_v42, %v2127_v41  ;;  %v1557_v26 = vmul.f32 %v2143_v42, %v2129_v33  ;;  %v1195_v21 = vsel %vm1167_vm2, %v1156_v19, -1e+30  ;;  %v1659_v33 = vrot.slane %v1658_v56, 2 }
 0x2aa   :  { %v1291_v25 = vmax.f32 %v2818_v28, %v1195_v21  ;;  %v1392_v11 = vmul.f32 1.442695, %v1336_v51  ;;  %v1394_v57 = vmul.f32 1.442695, %v1337_v20  ;;  %v1668_v42 = vrot.slane %v1667_v22, 1  ;;  %v2842_v16 = vpop.eup %2144 }
 0x2ab   :  { %v1588_v5 = vmul.f32 %v1556_v27, %v2544_v60  ;;  %v1589_v62 = vmul.f32 %v1557_v26, %v2547_v45  ;;  %v1390_v60 = vmul.f32 1.442695, %v1335_v58  ;;  %v1183_v45 = vsel %vm1167_vm2, %v2764_v54, -1e+30 }
 0x2ac   :  { %v1292_v41 = vrot.slane %v1291_v25, 4  ;;  %v1660_v31 = vadd.f32 %v1659_v33, %v1658_v56  ;;  %v1448_v56 = vrot.slane %v1447_v29, 1 }
 0x2ad   :  { %v1670_v7 = vadd.f32 %v1589_v62, %v1588_v5  ;;  %2146 = vpow2.f32 %v1390_v60 }
 0x2ae   :  { %v1293_v44 = vmax.f32 %v1291_v25, %v1292_v41  ;;  %v2837_v38 = vpop.xlane.xlu1 %1157  ;;  %2148 = vpow2.f32 %v1392_v11  ;;  %v1661_v27 = vrot.slane %v1660_v31, 1  ;;  %v1669_v25 = vadd.f32 %v1668_v42, %v1667_v22 }
 0x2af   :  { %v1671_v6 = vrot.slane %v1670_v7, 4  ;;  %2150 = vpow2.f32 %v1394_v57  ;;  %v1449_v22 = vadd.f32 %v1448_v56, %v1447_v29  ;;  %v1456_v57 = vadd.f32 %v1455_v13, %v1454_v4 }
 0x2b0   :  { %v1294_v24 = vrot.slane %v1293_v44, 2  ;;  %v1130_v18 = vpop.xlane.xlu0 %1129  ;;  %v1662_v33 = vadd.f32 %v1661_v27, %v1660_v31 }
 0x2b1   :  { %v1672_v47 = vadd.f32 %v1671_v6, %v1670_v7  ;;  %v1249_v36 = vmax.f32 %v1130_v18, %v1183_v45 }
 0x2b2   :  { %v1295_v40 = vmax.f32 %v1293_v44, %v1294_v24  ;;  %v1742_v60 = vsel %vm1728_vm3, %v1669_v25, %v1662_v33 }
 0x2b3   :  { %v1673_v3 = vrot.slane %v1672_v47, 2  ;;  %v1250_v55 = vrot.slane %v1249_v36, 4  ;;  %v2845_v41 = vpop.eup %2146 }
 0x2b4   :  { %v1296_v19 = vrot.slane %v1295_v40, 1  ;;  %v2847_v10 = vpop.eup %2148 }
 0x2b5   :  { %v1674_v26 = vadd.f32 %v1673_v3, %v1672_v47  ;;  %v1251_v54 = vmax.f32 %v1249_v36, %v1250_v55  ;;  %v2849_v6 = vpop.eup %2150 }
 0x2b6   :  { %v1297_v17 = vmax.f32 %v1295_v40, %v1296_v19  ;;  %v1160_v51 = vpop.xlane.xlu1 %1159  ;;  %v1492_v36 = vadd.f32 %v2849_v6, %v2847_v10 }
 0x2b7   :  { %v1675_v53 = vrot.slane %v1674_v26, 1  ;;  %v1252_v5 = vrot.slane %v1251_v54, 2 }
 0x2b8   :  { %v1338_v62 = vsub.f32 %v2818_v28, %v1297_v17  ;;  %v1339_v58 = vsub.f32 %v1195_v21, %v1297_v17  ;;  %v1197_v28 = vsel %vm1167_vm2, %v1160_v51, -1e+30  ;;  %v1485_v21 = vadd.f32 %v2845_v41, %v2842_v16 }
 0x2b9   :  { %v1676_v7 = vadd.f32 %v1675_v53, %v1674_v26  ;;  %v1253_v20 = vmax.f32 %v1251_v54, %v1252_v5  ;;  %v1298_v24 = vmax.f32 %v2837_v38, %v1197_v28  ;;  %v1493_v26 = vrot.slane %v1492_v36, 4 }
 0x2ba   :  { %v1396_v12 = vmul.f32 1.442695, %v1338_v62  ;;  %v1398_v44 = vmul.f32 1.442695, %v1339_v58  ;;  %v1486_v42 = vrot.slane %v1485_v21, 4 }
 0x2bb   :  { %v1254_v11 = vrot.slane %v1253_v20, 1  ;;  %v2858_v31 = vsel %vm1730_vm4, %v1676_v7, %v1742_v60  ;;  %v1299_v29 = vrot.slane %v1298_v24, 4  ;;  %v1494_v25 = vadd.f32 %v1493_v26, %v1492_v36 }
 0x2bc   :  { %2152 = vpow2.f32 %v1396_v12  ;;  %v1487_v4 = vadd.f32 %v1486_v42, %v1485_v21 }
 0x2bd   :  { %2154 = vpow2.f32 %v1398_v44  ;;  %v1255_v47 = vmax.f32 %v1253_v20, %v1254_v11  ;;  %v1300_v3 = vmax.f32 %v1298_v24, %v1299_v29  ;;  %v1495_v60 = vrot.slane %v1494_v25, 2 }
 0x2be   :  { %2156 = vrcp.f32 %v1449_v22  ;;  %v1488_v58 = vrot.slane %v1487_v4, 2  ;;  %v1162_v12 = vpop.xlane.xlu1 %1161 }
 0x2bf   :  { %v1326_v59 = vsub.f32 %v1130_v18, %v1255_v47  ;;  %v1327_v40 = vsub.f32 %v1183_v45, %v1255_v47  ;;  %2158 = vrcp.f32 %v1456_v57  ;;  %v1301_v54 = vrot.slane %v1300_v3, 2 }
 0x2c0   :  { %v1489_v29 = vadd.f32 %v1488_v58, %v1487_v4 }
 0x2c1   :  { %v1372_v55 = vmul.f32 1.442695, %v1326_v59  ;;  %v1374_v19 = vmul.f32 1.442695, %v1327_v40  ;;  %v1302_v18 = vmax.f32 %v1300_v3, %v1301_v54 }
 0x2c2   :  { %v2862_v27 = vpop.eup %2152  ;;  %v1490_v54 = vrot.slane %v1489_v29, 1 }
 0x2c3   :  { %v2864_v17 = vpop.eup %2154  ;;  %2160 = vpow2.f32 %v1372_v55  ;;  %v1303_v5 = vrot.slane %v1302_v18, 1 }
 0x2c4   :  { %v1499_v56 = vadd.f32 %v2864_v17, %v2862_v27  ;;  %2162 = vpow2.f32 %v1374_v19  ;;  %v2157_v45 = vpop.eup %2156 }
 0x2c5   :  { %v2159_v62 = vpop.eup %2158  ;;  %v1304_v33 = vmax.f32 %v1302_v18, %v1303_v5  ;;  %v1546_v13 = vmul.f32 %v2157_v45, %v2812_v37  ;;  %v1547_v47 = vmul.f32 %v2157_v45, %v2814_v39 }
 0x2c6   :  { %v1500_v53 = vrot.slane %v1499_v56, 4  ;;  %v1164_v7 = vpop.xlane.xlu2 %1163  ;;  %v1548_v48 = vmul.f32 %v2159_v62, %v2820_v2  ;;  %v1549_v42 = vmul.f32 %v2159_v62, %v2824_v30  ;;  %v1491_v62 = vadd.f32 %v1490_v54, %v1489_v29 }
 0x2c7   :  { %v1199_v44 = vsel %vm1167_vm2, %v1164_v7, -1e+30  ;;  %v1340_v11 = vsub.f32 %v2837_v38, %v1304_v33  ;;  %v1341_v21 = vsub.f32 %v1197_v28, %v1304_v33  ;;  %v1578_v55 = vmul.f32 %v1546_v13, %v2448_v8 }
 0x2c8   :  { %v1501_v51 = vadd.f32 %v1500_v53, %v1499_v56  ;;  %v1305_v24 = vmax.f32 %v1162_v12, %v1199_v44  ;;  %v1496_v38 = vadd.f32 %v1495_v60, %v1494_v25  ;;  %v1579_v39 = vmul.f32 %v1547_v47, %v2451_v9 }
 0x2c9   :  { %v2868_v20 = vpop.eup %2160  ;;  %v1400_v59 = vmul.f32 1.442695, %v1340_v11  ;;  %v1402_v37 = vmul.f32 1.442695, %v1341_v21  ;;  %v1580_v56 = vmul.f32 %v1548_v48, %v2464_v34  ;;  %v1581_v18 = vmul.f32 %v1549_v42, %v2467_v35 }
 0x2ca   :  { %v2873_v22 = vpop.eup %2162  ;;  %v1502_v57 = vrot.slane %v1501_v51, 2  ;;  %v1306_v40 = vrot.slane %v1305_v24, 4  ;;  %v1497_v45 = vrot.slane %v1496_v38, 1  ;;  %v1635_v53 = vadd.f32 %v1579_v39, %v1578_v55 }
 0x2cb   :  { %v1457_v36 = vadd.f32 %v2873_v22, %v2868_v20  ;;  %2164 = vpow2.f32 %v1400_v59 }
 0x2cc   :  { %v1307_v28 = vmax.f32 %v1305_v24, %v1306_v40  ;;  %v1503_v19 = vadd.f32 %v1502_v57, %v1501_v51  ;;  %2166 = vpow2.f32 %v1402_v37  ;;  %v1642_v51 = vadd.f32 %v1581_v18, %v1580_v56 }
 0x2cd   :  { %v1458_v3 = vrot.slane %v1457_v36, 4  ;;  %v1498_v7 = vadd.f32 %v1497_v45, %v1496_v38  ;;  %v1636_v35 = vrot.slane %v1635_v53, 4  ;;  %2168 = vrcp.f32 %v1491_v62 }
 0x2ce   :  { %v1308_v4 = vrot.slane %v1307_v28, 2  ;;  %v1504_v5 = vrot.slane %v1503_v19, 1  ;;  %v1643_v57 = vrot.slane %v1642_v51, 4 }
 0x2cf   :  { %v1459_v26 = vadd.f32 %v1458_v3, %v1457_v36  ;;  %v1637_v37 = vadd.f32 %v1636_v35, %v1635_v53 }
 0x2d0   :  { %v1309_v30 = vmax.f32 %v1307_v28, %v1308_v4  ;;  %v1505_v60 = vadd.f32 %v1504_v5, %v1503_v19  ;;  %v1644_v48 = vadd.f32 %v1643_v57, %v1642_v51 }
 0x2d1   :  { %v1460_v2 = vrot.slane %v1459_v26, 2  ;;  %v2885_v25 = vpop.eup %2164  ;;  %v1638_v38 = vrot.slane %v1637_v37, 2 }
 0x2d2   :  { %v1310_v58 = vrot.slane %v1309_v30, 1  ;;  %v2887_v9 = vpop.eup %2166 }
 0x2d3   :  { %v1461_v8 = vadd.f32 %v1460_v2, %v1459_v26  ;;  %v1506_v34 = vadd.f32 %v2887_v9, %v2885_v25  ;;  %v2169_v42 = vpop.eup %2168  ;;  %v1645_v26 = vrot.slane %v1644_v48, 2  ;;  %v1639_v45 = vadd.f32 %v1638_v38, %v1637_v37 }
 0x2d4   :  { %v1311_v13 = vmax.f32 %v1309_v30, %v1310_v58  ;;  %v1558_v30 = vmul.f32 %v2169_v42, %v2842_v16  ;;  %v1559_v53 = vmul.f32 %v2169_v42, %v2845_v41 }
 0x2d5   :  { %v1462_v33 = vrot.slane %v1461_v8, 1  ;;  %v1507_v21 = vrot.slane %v1506_v34, 4 }
 0x2d6   :  { %v1342_v24 = vsub.f32 %v1162_v12, %v1311_v13  ;;  %v1343_v47 = vsub.f32 %v1199_v44, %v1311_v13  ;;  %v1590_v16 = vmul.f32 %v1558_v30, %v2564_v50  ;;  %v1591_v41 = vmul.f32 %v1559_v53, %v2567_v23 }
 0x2d7   :  { %v1463_v11 = vadd.f32 %v1462_v33, %v1461_v8  ;;  %v1508_v36 = vadd.f32 %v1507_v21, %v1506_v34  ;;  %v1640_v33 = vrot.slane %v1639_v45, 1 }
 0x2d8   :  { %v1404_v29 = vmul.f32 1.442695, %v1342_v24  ;;  %v1406_v59 = vmul.f32 1.442695, %v1343_v47  ;;  %v1677_v21 = vadd.f32 %v1591_v41, %v1590_v16 }
 0x2d9   :  { %2170 = vrcp.f32 %v1463_v11  ;;  %v1509_v40 = vrot.slane %v1508_v36, 2  ;;  %v1641_v23 = vadd.f32 %v1640_v33, %v1639_v45 }
 0x2da   :  { %2172 = vrcp.f32 %v1498_v7  ;;  %v1678_v37 = vrot.slane %v1677_v21, 4 }
 0x2db   :  { %2174 = vrcp.f32 %v1505_v60  ;;  %v1510_v3 = vadd.f32 %v1509_v40, %v1508_v36  ;;  %v1737_v42 = vsel %vm1736_vm7, %v1641_v23, %v2762_v15 }
 0x2dc   :  { %2176 = vpow2.f32 %v1404_v29 }
 0x2dd   :  { %2178 = vpow2.f32 %v1406_v59  ;;  %v1511_v39 = vrot.slane %v1510_v3, 1 }
 0x2df   :  { %v2171_v55 = vpop.eup %2170  ;;  %v1512_v18 = vadd.f32 %v1511_v39, %v1510_v3 }
 0x2e0   :  { %v2173_v28 = vpop.eup %2172  ;;  %v1550_v12 = vmul.f32 %v2171_v55, %v2868_v20  ;;  %v1551_v44 = vmul.f32 %v2171_v55, %v2873_v22 }
 0x2e1   :  { %v2175_v19 = vpop.eup %2174  ;;  %v1560_v20 = vmul.f32 %v2173_v28, %v2847_v10  ;;  %v1561_v22 = vmul.f32 %v2173_v28, %v2849_v6  ;;  %2180 = vrcp.f32 %v1512_v18 }
 0x2e2   :  { %v2893_v54 = vpop.eup %2176  ;;  %v1582_v4 = vmul.f32 %v1550_v12, %v2480_v0  ;;  %v1583_v56 = vmul.f32 %v1551_v44, %v2483_v1  ;;  %v1646_v0 = vadd.f32 %v1645_v26, %v1644_v48  ;;  %v1562_v1 = vmul.f32 %v2175_v19, %v2862_v27 }
 0x2e3   :  { %v2897_v2 = vpop.eup %2178  ;;  %v1563_v62 = vmul.f32 %v2175_v19, %v2864_v17  ;;  %v1592_v10 = vmul.f32 %v1560_v20, %v2584_v49  ;;  %v1593_v6 = vmul.f32 %v1561_v22, %v2587_v14 }
 0x2e4   :  { %v1649_v5 = vadd.f32 %v1583_v56, %v1582_v4  ;;  %v1513_v8 = vadd.f32 %v2897_v2, %v2893_v54  ;;  %v1647_v13 = vrot.slane %v1646_v0, 1  ;;  %v1594_v35 = vmul.f32 %v1562_v1, %v2604_v32 }
 0x2e5   :  { %v1595_v27 = vmul.f32 %v1563_v62, %v2607_v63  ;;  %v1684_v49 = vadd.f32 %v1593_v6, %v1592_v10 }
 0x2e6   :  { %v1650_v58 = vrot.slane %v1649_v5, 4  ;;  %v1514_v51 = vrot.slane %v1513_v8, 4  ;;  %v1648_v29 = vadd.f32 %v1647_v13, %v1646_v0 }
 0x2e7   :  { %v2181_v60 = vpop.eup %2180  ;;  %v1691_v57 = vadd.f32 %v1595_v27, %v1594_v35 }
 0x2e8   :  { %v1651_v7 = vadd.f32 %v1650_v58, %v1649_v5  ;;  %v1515_v34 = vadd.f32 %v1514_v51, %v1513_v8  ;;  %v1564_v24 = vmul.f32 %v2181_v60, %v2885_v25  ;;  %v1565_v50 = vmul.f32 %v2181_v60, %v2887_v9 }
 0x2e9   :  { %v1685_v25 = vrot.slane %v1684_v49, 4  ;;  %v1692_v3 = vrot.slane %v1691_v57, 4  ;;  %v1739_v55 = vsel %vm1738_vm8, %v1648_v29, %v1737_v42 }
 0x2ea   :  { %v1652_v17 = vrot.slane %v1651_v7, 2  ;;  %v1516_v11 = vrot.slane %v1515_v34, 2  ;;  %v1596_v36 = vmul.f32 %v1564_v24, %v2624_v46  ;;  %v1597_v32 = vmul.f32 %v1565_v50, %v2627_v61 }
 0x2eb   :  { %v1679_v61 = vadd.f32 %v1678_v37, %v1677_v21  ;;  %v1686_v28 = vadd.f32 %v1685_v25, %v1684_v49  ;;  %v1693_v12 = vadd.f32 %v1692_v3, %v1691_v57 }
 0x2ec   :  { %v1653_v47 = vadd.f32 %v1652_v17, %v1651_v7  ;;  %v1517_v14 = vadd.f32 %v1516_v11, %v1515_v34  ;;  %v1698_v40 = vadd.f32 %v1597_v32, %v1596_v36 }
 0x2ed   :  { %v1680_v39 = vrot.slane %v1679_v61, 2  ;;  %v1687_v26 = vrot.slane %v1686_v28, 2  ;;  %v1694_v4 = vrot.slane %v1693_v12, 2 }
 0x2ee   :  { %v1654_v63 = vrot.slane %v1653_v47, 1  ;;  %v1518_v59 = vrot.slane %v1517_v14, 1  ;;  %v1699_v38 = vrot.slane %v1698_v40, 4 }
 0x2ef   :  { %v1681_v45 = vadd.f32 %v1680_v39, %v1679_v61  ;;  %v1688_v20 = vadd.f32 %v1687_v26, %v1686_v28  ;;  %v1695_v22 = vadd.f32 %v1694_v4, %v1693_v12 }
 0x2f0   :  { %v1519_v48 = vadd.f32 %v1518_v59, %v1517_v14  ;;  %v1655_v9 = vadd.f32 %v1654_v63, %v1653_v47  ;;  %v1700_v44 = vadd.f32 %v1699_v38, %v1698_v40 }
 0x2f1   :  { %v1682_v0 = vrot.slane %v1681_v45, 1  ;;  %v1689_v62 = vrot.slane %v1688_v20, 1  ;;  %v1696_v58 = vrot.slane %v1695_v22, 1 }
 0x2f2   :  { %2182 = vrcp.f32 %v1519_v48  ;;  %v1741_v46 = vsel %vm1740_vm9, %v1655_v9, %v1739_v55  ;;  %v1701_v18 = vrot.slane %v1700_v44, 2 }
 0x2f3   :  { %1751 = vst [vmem:[#allocation8] sm:$0xff] %v1741_v46  ;;  %v1683_v16 = vadd.f32 %v1682_v0, %v1681_v45  ;;  %v1690_v41 = vadd.f32 %v1689_v62, %v1688_v20 }
 0x2f4   :  { %v1702_v8 = vadd.f32 %v1701_v18, %v1700_v44 }
 0x2f6   :  { %v1703_v33 = vrot.slane %v1702_v8, 1 }
 0x2f8   :  { %v2183_v19 = vpop.eup %2182  ;;  %v1704_v6 = vadd.f32 %v1703_v33, %v1702_v8 }
 0x2f9   :  { %v1566_v56 = vmul.f32 %v2183_v19, %v2893_v54  ;;  %v1567_v15 = vmul.f32 %v2183_v19, %v2897_v2  ;;  %v1697_v2 = vadd.f32 %v1696_v58, %v1695_v22 }
 0x2fb   :  { %v1598_v30 = vmul.f32 %v1566_v56, %v2647_v52  ;;  %v1599_v53 = vmul.f32 %v1567_v15, %v2650_v43  ;;  %v1744_v43 = vsel %vm1732_vm5, %v1683_v16, %v2858_v31 }
 0x2fc   :  { %v1745_v7 = vsel %vm1734_vm6, %v1690_v41, %v1744_v43 }
 0x2fd   :  { %v1705_v5 = vadd.f32 %v1599_v53, %v1598_v30  ;;  %v1746_v13 = vsel %vm1736_vm7, %v1697_v2, %v1745_v7 }
 0x2fe   :  { %v1747_v35 = vsel %vm1738_vm8, %v1704_v6, %v1746_v13 }
 0x2ff   :  { %v1706_v1 = vrot.slane %v1705_v5, 4 }
 0x301   :  { %v1707_v51 = vadd.f32 %v1706_v1, %v1705_v5 }
 0x303   :  { %v1708_v54 = vrot.slane %v1707_v51, 2 }
 0x305   :  { %v1709_v10 = vadd.f32 %v1708_v54, %v1707_v51 }
 0x307   :  { %v1710_v52 = vrot.slane %v1709_v10, 1 }
 0x309   :  { %v1711_v34 = vadd.f32 %v1710_v52, %v1709_v10 }
 0x30b   :  { %v1748_v27 = vsel %vm1740_vm9, %v1711_v34, %v1747_v35 }
 0x30c   :  { %1752 = vst [vmem:[#allocation8 + $0x8] sm:$0xff] %v1748_v27 }
 0x30d   :  { %1765 = dma.vmem_to_hbm [thread:$0]  %s1758_s19, 256, %s1760_s22, [#allocation4], %s2294_s23, %s2294_s23, %s2295_s24  }
 0x30e   :  { %2286 = dma.done.wait [#allocation4], 256  }
 0x30f   :  { %2287 = vsyncadd [#allocation4], 4294967040 }
 0x310   :  { %1770 = vsyncpa [#allocation3], 1 }
 0x311   :  { %1771 = vsyncpa [#allocation6], 1 }
 0x312   :  { %1772 = vsyncpa [#allocation4], 1 }

// kernel: tpu_custom_call.1
= control target key start
LH: loop header
LB: loop body
LE: loop exit
PB: predicated region body
PF: predicated region fallthrough
CT: control target
= control target key end

     0   :  { %11 = vsyncpa [#allocation3], 0  ;;  %s2934_s0 = inlined_call_operand.hbm [shape: bf16[16,16,128], index: 0, kind: input, shape index: {}]   ;;  %s2935_s1 = inlined_call_operand.hbm [shape: bf16[3,128,128], index: 1, kind: input, shape index: {}]   ;;  %s2936_s2 = inlined_call_operand.vmem [shape: f32[1,128], index: 2, kind: input, shape index: {}]   ;;  %s2937_s3 = inlined_call_operand.hbm [shape: bf16[128,128], index: 3, kind: input, shape index: {}]   ;;  %s2938_s4 = inlined_call_operand.vmem [shape: f32[1,128], index: 4, kind: input, shape index: {}]   ;;  %s2939_s5 = inlined_call_operand.vmem [shape: f32[1,128], index: 5, kind: input, shape index: {}]   ;;  %s2940_s6 = inlined_call_operand.hbm [shape: f32[16,128], index: 6, kind: output, shape index: {}]  }
   0x1   :  { %12 = vsyncpa [#allocation6], 0 }
   0x2   :  { %13 = vsyncpa [#allocation4], 0  ;;  %s31_s23 = sshll.u32 %s2935_s1, 4  ;;  %s2288_s24 = smov [#allocation5]   ;;  %s32_s23 = int_to_ptr.hbm [resolvable:$true] %s31_s23 }
   0x3   :  { %s33_s25 = sshll.u32 %s2288_s24, 4  ;;  %s18_s28 = sshll.u32 %s2934_s0, 4  ;;  %s34_s25 = int_to_ptr.vmem [resolvable:$true] %s33_s25  ;;  %s19_s28 = int_to_ptr.hbm [resolvable:$true] %s18_s28 }
   0x4   :  { %s2289_s29 = smov 64   ;;  %s2290_s30 = smov 4  }
   0x5   :  { %39 = dma.hbm_to_vmem [thread:$0]  %s32_s23, 3072, %s34_s25, [#allocation6], %s2289_s29, %s2289_s29, %s2290_s30  }
   0x6   :  { %s2291_s7 = smov [#allocation2]   ;;  %s46_s11 = sshll.u32 %s2937_s3, 4  ;;  %s47_s11 = int_to_ptr.hbm [resolvable:$true] %s46_s11 }
   0x7   :  { %s20_s8 = sshll.u32 %s2291_s7, 4  ;;  %s2292_s1 = smov [#allocation7]   ;;  %s21_s8 = int_to_ptr.vmem [resolvable:$true] %s20_s8 }
   0x8   :  { %26 = dma.hbm_to_vmem [thread:$0]  %s19_s28, 2048, %s21_s8, [#allocation3], %s2289_s29, %s2289_s29, %s2290_s30  }
   0x9   :  { %s48_s12 = sshll.u32 %s2292_s1, 4  ;;  %s49_s12 = int_to_ptr.vmem [resolvable:$true] %s48_s12 }
   0xa   :  { %54 = dma.hbm_to_vmem [thread:$0]  %s47_s11, 1024, %s49_s12, [#allocation6], %s2289_s29, %s2289_s29, %s2290_s30  }
   0xb   :  { %2282 = dma.done.wait [#allocation3], 2048  }
   0xc   :  { %2283 = vsyncadd [#allocation3], 4294965248 }
   0xd   :  { %2284 = dma.done.wait [#allocation6], 4096  }
   0xe   :  { %2285 = vsyncadd [#allocation6], 4294963200  ;;  %v1996_v0 = vld [vmem:[#allocation5 + $0x78] sm:$0xff]  ;;  %v1995_v3 = vld [vmem:[#allocation5 + $0x70] sm:$0xff]  ;;  %v401_v45 = vlaneseq  ;;  %vm1728_vm3 = vcmask 1041409   ;;  %vm1730_vm4 = vcmask 1042434  }
   0xf   :  { %v2004_v1 = vld [vmem:[#allocation5 + $0xb8] sm:$0xff]  ;;  %280 = vmatpush.bf16.msra.mxu0 %v1996_v0  ;;  %v2003_v4 = vld [vmem:[#allocation5 + $0xb0] sm:$0xff]  ;;  %v1994_v6 = vld [vmem:[#allocation5 + $0x68] sm:$0xff]  ;;  %vm1732_vm5 = vcmask 1043459   ;;  %vm1734_vm6 = vcmask 1044484   ;;  %vm1736_vm7 = vcmask 1045509  }
  0x10   :  { %v1988_v2 = vld [vmem:[#allocation5 + $0x38] sm:$0xff]  ;;  %638 = vmatpush.bf16.msra.mxu2 %v2004_v1  ;;  %v1987_v5 = vld [vmem:[#allocation5 + $0x30] sm:$0xff]  ;;  %v2002_v7 = vld [vmem:[#allocation5 + $0xa8] sm:$0xff]  ;;  %v2344_v47 = vshrl.u32 %v401_v45, 7  ;;  %vm1738_vm8 = vcmask 1046534   ;;  %vm1740_vm9 = vcmask 1047559  }
  0x11   :  { %484 = vmatpush.bf16.msra.mxu1 %v1988_v2  ;;  %v1986_v8 = vld [vmem:[#allocation5 + $0x28] sm:$0xff]  ;;  %v1993_v9 = vld [vmem:[#allocation5 + $0x60] sm:$0xff]  ;;  %v1992_v12 = vld [vmem:[#allocation5 + $0x58] sm:$0xff]  ;;  %s1759_s22 = sshll.u32 %s2940_s6, 4  ;;  %s2294_s23 = smov 128   ;;  %s1760_s22 = int_to_ptr.hbm [resolvable:$true] %s1759_s22 }
  0x12   :  { %v2001_v10 = vld [vmem:[#allocation5 + $0xa0] sm:$0xff]  ;;  %v2000_v13 = vld [vmem:[#allocation5 + $0x98] sm:$0xff]  ;;  %v1991_v15 = vld [vmem:[#allocation5 + $0x50] sm:$0xff]  ;;  %vm403_vm0 = vcmp.lt.s32.totalorder %v2344_v47, 7  ;;  %vm759_vm1 = vcmp.lt.s32.totalorder %v2344_v47, 6  ;;  %s2295_s24 = smov 8  }
  0x13   :  { %281 = vmatpush.bf16.msra.mxu0 %v1995_v3  ;;  %v1985_v11 = vld [vmem:[#allocation5 + $0x20] sm:$0xff]  ;;  %v1984_v14 = vld [vmem:[#allocation5 + $0x18] sm:$0xff]  ;;  %v1999_v16 = vld [vmem:[#allocation5 + $0x90] sm:$0xff] }
  0x14   :  { %639 = vmatpush.bf16.msra.mxu2 %v2003_v4  ;;  %v1983_v17 = vld [vmem:[#allocation5 + $0x10] sm:$0xff]  ;;  %v1990_v18 = vld [vmem:[#allocation5 + $0x48] sm:$0xff]  ;;  %v1989_v21 = vld [vmem:[#allocation5 + $0x40] sm:$0xff] }
  0x15   :  { %485 = vmatpush.bf16.msra.mxu1 %v1987_v5  ;;  %v1998_v19 = vld [vmem:[#allocation5 + $0x88] sm:$0xff]  ;;  %v1997_v22 = vld [vmem:[#allocation5 + $0x80] sm:$0xff]  ;;  %v1967_v26 = vld [vmem:[#allocation2 + $0x10] sm:$0xff] }
  0x16   :  { %v1982_v20 = vld [vmem:[#allocation5 + $0x8] sm:$0xff]  ;;  %v1981_v23 = vld [vmem:[#allocation5] sm:$0xff]  ;;  %v1968_v27 = vld [vmem:[#allocation2 + $0x18] sm:$0xff] }
  0x17   :  { %282 = vmatpush.bf16.msra.mxu0 %v1994_v6  ;;  %v1965_v24 = vld [vmem:[#allocation2] sm:$0xff]  ;;  %v1966_v25 = vld [vmem:[#allocation2 + $0x8] sm:$0xff]  ;;  %v1971_v30 = vld [vmem:[#allocation2 + $0x30] sm:$0xff] }
  0x18   :  { %640 = vmatpush.bf16.msra.mxu2 %v2002_v7  ;;  %v1969_v28 = vld [vmem:[#allocation2 + $0x20] sm:$0xff]  ;;  %v1970_v29 = vld [vmem:[#allocation2 + $0x28] sm:$0xff]  ;;  %v2012_v31 = vld [vmem:[#allocation7 + $0x38] sm:$0xff] }
  0x19   :  { %486 = vmatpush.bf16.msra.mxu1 %v1986_v8  ;;  %944 = vmatpush.bf16.msra.mxu3 %v2012_v31  ;;  %v2011_v32 = vld [vmem:[#allocation7 + $0x30] sm:$0xff]  ;;  %v2010_v33 = vld [vmem:[#allocation7 + $0x28] sm:$0xff]  ;;  %v2009_v34 = vld [vmem:[#allocation7 + $0x20] sm:$0xff] }
  0x1a   :  { %v1972_v35 = vld [vmem:[#allocation2 + $0x38] sm:$0xff]  ;;  %v2007_v37 = vld [vmem:[#allocation7 + $0x10] sm:$0xff]  ;;  %v2006_v38 = vld [vmem:[#allocation7 + $0x8] sm:$0xff] }
  0x1b   :  { %283 = vmatpush.bf16.msra.mxu0 %v1993_v9  ;;  %v2008_v36 = vld [vmem:[#allocation7 + $0x18] sm:$0xff]  ;;  %v2005_v39 = vld [vmem:[#allocation7] sm:$0xff]  ;;  %v1974_v50 = vld [vmem:[#allocation2 + $0x48] sm:$0xff] }
  0x1c   :  { %641 = vmatpush.bf16.msra.mxu2 %v2001_v10  ;;  %v1973_v40 = vld [vmem:[#allocation2 + $0x40] sm:$0xff] }
  0x1d   :  { %487 = vmatpush.bf16.msra.mxu1 %v1985_v11  ;;  %945 = vmatpush.bf16.msra.mxu3 %v2011_v32  ;;  %v2363_v2 = vld [vmem:[%s2936_s2] ss:$0 sm:$0xff]  ;;  %v1975_v11 = vld [vmem:[#allocation2 + $0x50] sm:$0xff] }
  0x1f   :  { %284 = vmatpush.bf16.msra.mxu0 %v1992_v12 }
  0x20   :  { %642 = vmatpush.bf16.msra.mxu2 %v2000_v13 }
  0x21   :  { %488 = vmatpush.bf16.msra.mxu1 %v1984_v14  ;;  %946 = vmatpush.bf16.msra.mxu3 %v2010_v33  ;;  %v1976_v33 = vld [vmem:[#allocation2 + $0x58] sm:$0xff] }
  0x23   :  { %285 = vmatpush.bf16.msra.mxu0 %v1991_v15 }
  0x24   :  { %643 = vmatpush.bf16.msra.mxu2 %v1999_v16 }
  0x25   :  { %489 = vmatpush.bf16.msra.mxu1 %v1983_v17  ;;  %947 = vmatpush.bf16.msra.mxu3 %v2009_v34 }
  0x27   :  { %286 = vmatpush.bf16.msra.mxu0 %v1990_v18 }
  0x28   :  { %644 = vmatpush.bf16.msra.mxu2 %v1998_v19 }
  0x29   :  { %490 = vmatpush.bf16.msra.mxu1 %v1982_v20  ;;  %948 = vmatpush.bf16.msra.mxu3 %v2008_v36 }
  0x2b   :  { %287 = vmatpush.bf16.msra.mxu0 %v1989_v21 }
  0x2c   :  { %645 = vmatpush.bf16.msra.mxu2 %v1997_v22 }
  0x2d   :  { %491 = vmatpush.bf16.msra.mxu1 %v1981_v23  ;;  %949 = vmatpush.bf16.msra.mxu3 %v2007_v37 }
  0x2e   :  { %288 = vmatmul.bf16.vlgmr.msra.gmra.mxu0 %v1965_v24 }
  0x2f   :  { %646 = vmatmul.bf16.vlgmr.msra.gmra.mxu2 %v1965_v24 }
  0x30   :  { %492 = vmatmul.bf16.vlgmr.msra.gmra.mxu1 %v1965_v24 }
  0x31   :  { %950 = vmatpush.bf16.msra.mxu3 %v2006_v38 }
  0x35   :  { %951 = vmatpush.bf16.msra.mxu3 %v2005_v39 }
  0x3e   :  { %293 = vmatmul.bf16.gmra.mxu0 %v1966_v25 }
  0x3f   :  { %651 = vmatmul.bf16.gmra.mxu2 %v1966_v25 }
  0x40   :  { %497 = vmatmul.bf16.gmra.mxu1 %v1966_v25 }
  0x4e   :  { %298 = vmatmul.bf16.gmra.mxu0 %v1967_v26 }
  0x4f   :  { %656 = vmatmul.bf16.gmra.mxu2 %v1967_v26 }
  0x50   :  { %502 = vmatmul.bf16.gmra.mxu1 %v1967_v26 }
  0x5e   :  { %303 = vmatmul.bf16.gmra.mxu0 %v1968_v27 }
  0x5f   :  { %661 = vmatmul.bf16.gmra.mxu2 %v1968_v27 }
  0x60   :  { %507 = vmatmul.bf16.gmra.mxu1 %v1968_v27 }
  0x6e   :  { %308 = vmatmul.bf16.gmra.mxu0 %v1969_v28 }
  0x6f   :  { %666 = vmatmul.bf16.gmra.mxu2 %v1969_v28 }
  0x70   :  { %512 = vmatmul.bf16.gmra.mxu1 %v1969_v28 }
  0x7e   :  { %313 = vmatmul.bf16.gmra.mxu0 %v1970_v29 }
  0x7f   :  { %671 = vmatmul.bf16.gmra.mxu2 %v1970_v29 }
  0x80   :  { %517 = vmatmul.bf16.gmra.mxu1 %v1970_v29 }
  0x8e   :  { %318 = vmatmul.bf16.gmra.mxu0 %v1971_v30 }
  0x8f   :  { %676 = vmatmul.bf16.gmra.mxu2 %v1971_v30 }
  0x90   :  { %522 = vmatmul.bf16.gmra.mxu1 %v1971_v30 }
  0x9e   :  { %323 = vmatmul.bf16.gmra.mxu0 %v1972_v35 }
  0x9f   :  { %681 = vmatmul.bf16.gmra.mxu2 %v1972_v35 }
  0xa0   :  { %527 = vmatmul.bf16.gmra.mxu1 %v1972_v35 }
  0xab   :  { %v2340_v41 = vpop.f32.mrf.mxu0 }
  0xac   :  { %v369_v52 = vrot.slane %v2340_v41, 1 }
  0xad   :  { %v493_v42 = vpop.f32.mrf.mxu1 }
  0xae   :  { %328 = vmatmul.bf16.gmra.mxu0 %v1973_v40 }
  0xaf   :  { %686 = vmatmul.bf16.gmra.mxu2 %v1973_v40 }
  0xb0   :  { %532 = vmatmul.bf16.gmra.mxu1 %v1973_v40 }
  0xb2   :  { %v2342_v43 = vpop.f32.mrf.mxu2 }
  0xb3   :  { %v291_v44 = vpop.f32.mrf.mxu0  ;;  %v727_v56 = vrot.slane %v2342_v43, 2 }
  0xb4   :  { %v370_v49 = vrot.slane %v291_v44, 1 }
  0xb5   :  { %v495_v46 = vpop.f32.mrf.mxu1 }
  0xb6   :  { %v434_v57 = vsel %vm403_vm0, %v369_v52, %v370_v49 }
  0xb7   :  { %v494_v60 = vadd.f32 %v493_v42, %v434_v57 }
  0xba   :  { %v649_v48 = vpop.f32.mrf.mxu2 }
  0xbb   :  { %v294_v51 = vpop.f32.mrf.mxu0  ;;  %v728_v53 = vrot.slane %v649_v48, 2 }
  0xbc   :  { %v371_v54 = vrot.slane %v294_v51, 1 }
  0xbd   :  { %v498_v55 = vpop.f32.mrf.mxu1  ;;  %v790_v58 = vsel %vm759_vm1, %v727_v56, %v728_v53 }
  0xbe   :  { %333 = vmatmul.bf16.gmra.mxu0 %v1974_v50  ;;  %v433_v59 = vsel %vm403_vm0, %v370_v49, %v371_v54  ;;  %v792_v1 = vadd.f32 %v790_v58, %v494_v60  ;;  %v1977_v60 = vld [vmem:[#allocation2 + $0x60] sm:$0xff] }
  0xbf   :  { %691 = vmatmul.bf16.gmra.mxu2 %v1974_v50  ;;  %v496_v63 = vadd.f32 %v495_v46, %v433_v59 }
  0xc0   :  { %537 = vmatmul.bf16.gmra.mxu1 %v1974_v50  ;;  %v2368_v6 = vadd.f32 %v2363_v2, %v792_v1 }
  0xc2   :  { %v652_v61 = vpop.f32.mrf.mxu2 }
  0xc3   :  { %v729_v62 = vrot.slane %v652_v61, 2  ;;  %v296_v0 = vpop.f32.mrf.mxu0 }
  0xc4   :  { %v372_v10 = vrot.slane %v296_v0, 1 }
  0xc5   :  { %v789_v3 = vsel %vm759_vm1, %v728_v53, %v729_v62  ;;  %v500_v4 = vpop.f32.mrf.mxu1 }
  0xc6   :  { %v793_v5 = vadd.f32 %v789_v3, %v496_v63  ;;  %v432_v16 = vsel %vm403_vm0, %v371_v54, %v372_v10 }
  0xc7   :  { %v499_v19 = vadd.f32 %v498_v55, %v432_v16 }
  0xc8   :  { %v2371_v7 = vadd.f32 %v2363_v2, %v793_v5 }
  0xca   :  { %v654_v8 = vpop.f32.mrf.mxu2  ;;  %v860_v9 = vpack.c.bf16 %v2371_v7, %v2368_v6 }
  0xcb   :  { %v299_v12 = vpop.f32.mrf.mxu0  ;;  %v730_v13 = vrot.slane %v654_v8, 2 }
  0xcc   :  { %952 = vmatmul.bf16.vlgmr.msra.gmra.mxu3 %v860_v9  ;;  %v373_v14 = vrot.slane %v299_v12, 1 }
  0xcd   :  { %v503_v15 = vpop.f32.mrf.mxu1  ;;  %v788_v17 = vsel %vm759_vm1, %v729_v62, %v730_v13 }
  0xce   :  { %338 = vmatmul.bf16.gmra.mxu0 %v1975_v11  ;;  %v431_v18 = vsel %vm403_vm0, %v372_v10, %v373_v14  ;;  %v794_v24 = vadd.f32 %v788_v17, %v499_v19 }
  0xcf   :  { %696 = vmatmul.bf16.gmra.mxu2 %v1975_v11  ;;  %v501_v22 = vadd.f32 %v500_v4, %v431_v18 }
  0xd0   :  { %542 = vmatmul.bf16.gmra.mxu1 %v1975_v11  ;;  %v2384_v28 = vadd.f32 %v2363_v2, %v794_v24 }
  0xd2   :  { %v657_v20 = vpop.f32.mrf.mxu2 }
  0xd3   :  { %v731_v21 = vrot.slane %v657_v20, 2  ;;  %v301_v23 = vpop.f32.mrf.mxu0 }
  0xd4   :  { %v374_v32 = vrot.slane %v301_v23, 1 }
  0xd5   :  { %v787_v25 = vsel %vm759_vm1, %v730_v13, %v731_v21  ;;  %v505_v26 = vpop.f32.mrf.mxu1 }
  0xd6   :  { %v795_v27 = vadd.f32 %v787_v25, %v501_v22  ;;  %v430_v38 = vsel %vm403_vm0, %v373_v14, %v374_v32 }
  0xd7   :  { %v504_v42 = vadd.f32 %v503_v15, %v430_v38 }
  0xd8   :  { %v2387_v29 = vadd.f32 %v2363_v2, %v795_v27 }
  0xda   :  { %v659_v30 = vpop.f32.mrf.mxu2  ;;  %v861_v31 = vpack.c.bf16 %v2387_v29, %v2384_v28 }
  0xdb   :  { %v304_v34 = vpop.f32.mrf.mxu0  ;;  %v732_v35 = vrot.slane %v659_v30, 2 }
  0xdc   :  { %957 = vmatmul.bf16.gmra.mxu3 %v861_v31  ;;  %v375_v36 = vrot.slane %v304_v34, 1 }
  0xdd   :  { %v508_v37 = vpop.f32.mrf.mxu1  ;;  %v786_v39 = vsel %vm759_vm1, %v731_v21, %v732_v35  ;;  %v1978_v21 = vld [vmem:[#allocation2 + $0x68] sm:$0xff] }
  0xde   :  { %343 = vmatmul.bf16.gmra.mxu0 %v1976_v33  ;;  %v429_v40 = vsel %vm403_vm0, %v374_v32, %v375_v36  ;;  %v796_v49 = vadd.f32 %v786_v39, %v504_v42 }
  0xdf   :  { %701 = vmatmul.bf16.gmra.mxu2 %v1976_v33  ;;  %v506_v46 = vadd.f32 %v505_v26, %v429_v40 }
  0xe0   :  { %547 = vmatmul.bf16.gmra.mxu1 %v1976_v33  ;;  %v2400_v54 = vadd.f32 %v2363_v2, %v796_v49 }
  0xe2   :  { %v662_v44 = vpop.f32.mrf.mxu2 }
  0xe3   :  { %v733_v45 = vrot.slane %v662_v44, 2  ;;  %v306_v48 = vpop.f32.mrf.mxu0 }
  0xe4   :  { %v376_v59 = vrot.slane %v306_v48, 1  ;;  %v1979_v48 = vld [vmem:[#allocation2 + $0x70] sm:$0xff] }
  0xe5   :  { %v785_v50 = vsel %vm759_vm1, %v732_v35, %v733_v45  ;;  %v510_v51 = vpop.f32.mrf.mxu1 }
  0xe6   :  { %v797_v53 = vadd.f32 %v785_v50, %v506_v46  ;;  %v428_v1 = vsel %vm403_vm0, %v375_v36, %v376_v59 }
  0xe7   :  { %v509_v5 = vadd.f32 %v508_v37, %v428_v1 }
  0xe8   :  { %v2403_v55 = vadd.f32 %v2363_v2, %v797_v53 }
  0xea   :  { %v664_v57 = vpop.f32.mrf.mxu2  ;;  %v862_v58 = vpack.c.bf16 %v2403_v55, %v2400_v54 }
  0xeb   :  { %v309_v61 = vpop.f32.mrf.mxu0  ;;  %v734_v62 = vrot.slane %v664_v57, 2 }
  0xec   :  { %962 = vmatmul.bf16.gmra.mxu3 %v862_v58  ;;  %v377_v63 = vrot.slane %v309_v61, 1 }
  0xed   :  { %v513_v0 = vpop.f32.mrf.mxu1  ;;  %v784_v3 = vsel %vm759_vm1, %v733_v45, %v734_v62 }
  0xee   :  { %348 = vmatmul.bf16.gmra.mxu0 %v1977_v60  ;;  %v427_v4 = vsel %vm403_vm0, %v376_v59, %v377_v63  ;;  %v798_v12 = vadd.f32 %v784_v3, %v509_v5 }
  0xef   :  { %706 = vmatmul.bf16.gmra.mxu2 %v1977_v60  ;;  %v511_v10 = vadd.f32 %v510_v51, %v427_v4 }
  0xf0   :  { %552 = vmatmul.bf16.gmra.mxu1 %v1977_v60  ;;  %v2416_v16 = vadd.f32 %v2363_v2, %v798_v12 }
  0xf2   :  { %v667_v8 = vpop.f32.mrf.mxu2 }
  0xf3   :  { %v735_v9 = vrot.slane %v667_v8, 2  ;;  %v311_v11 = vpop.f32.mrf.mxu0 }
  0xf4   :  { %v378_v20 = vrot.slane %v311_v11, 1 }
  0xf5   :  { %v783_v13 = vsel %vm759_vm1, %v734_v62, %v735_v9  ;;  %v515_v14 = vpop.f32.mrf.mxu1 }
  0xf6   :  { %v799_v15 = vadd.f32 %v783_v13, %v511_v10  ;;  %v426_v26 = vsel %vm403_vm0, %v377_v63, %v378_v20  ;;  %v1980_v13 = vld [vmem:[#allocation2 + $0x78] sm:$0xff] }
  0xf7   :  { %v514_v31 = vadd.f32 %v513_v0, %v426_v26 }
  0xf8   :  { %v2419_v17 = vadd.f32 %v2363_v2, %v799_v15 }
  0xfa   :  { %v669_v18 = vpop.f32.mrf.mxu2  ;;  %v863_v19 = vpack.c.bf16 %v2419_v17, %v2416_v16 }
  0xfb   :  { %v314_v22 = vpop.f32.mrf.mxu0  ;;  %v736_v23 = vrot.slane %v669_v18, 2 }
  0xfc   :  { %967 = vmatmul.bf16.gmra.mxu3 %v863_v19  ;;  %v379_v24 = vrot.slane %v314_v22, 1 }
  0xfd   :  { %v518_v25 = vpop.f32.mrf.mxu1  ;;  %v782_v27 = vsel %vm759_vm1, %v735_v9, %v736_v23 }
  0xfe   :  { %353 = vmatmul.bf16.gmra.mxu0 %v1978_v21  ;;  %v425_v30 = vsel %vm403_vm0, %v378_v20, %v379_v24  ;;  %v800_v36 = vadd.f32 %v782_v27, %v514_v31 }
  0xff   :  { %711 = vmatmul.bf16.gmra.mxu2 %v1978_v21  ;;  %v516_v34 = vadd.f32 %v515_v14, %v425_v30 }
 0x100   :  { %557 = vmatmul.bf16.gmra.mxu1 %v1978_v21  ;;  %v2432_v40 = vadd.f32 %v2363_v2, %v800_v36 }
 0x102   :  { %v672_v32 = vpop.f32.mrf.mxu2 }
 0x103   :  { %v737_v33 = vrot.slane %v672_v32, 2  ;;  %v316_v35 = vpop.f32.mrf.mxu0 }
 0x104   :  { %v380_v46 = vrot.slane %v316_v35, 1 }
 0x105   :  { %v781_v37 = vsel %vm759_vm1, %v736_v23, %v737_v33  ;;  %v520_v38 = vpop.f32.mrf.mxu1 }
 0x106   :  { %v801_v39 = vadd.f32 %v781_v37, %v516_v34  ;;  %v424_v57 = vsel %vm403_vm0, %v379_v24, %v380_v46 }
 0x107   :  { %v519_v60 = vadd.f32 %v518_v25, %v424_v57 }
 0x108   :  { %v2435_v42 = vadd.f32 %v2363_v2, %v801_v39 }
 0x10a   :  { %v674_v44 = vpop.f32.mrf.mxu2  ;;  %v864_v45 = vpack.c.bf16 %v2435_v42, %v2432_v40 }
 0x10b   :  { %v319_v49 = vpop.f32.mrf.mxu0  ;;  %v738_v50 = vrot.slane %v674_v44, 2 }
 0x10c   :  { %972 = vmatmul.bf16.gmra.mxu3 %v864_v45  ;;  %v381_v51 = vrot.slane %v319_v49, 1 }
 0x10d   :  { %v523_v53 = vpop.f32.mrf.mxu1  ;;  %v780_v58 = vsel %vm759_vm1, %v737_v33, %v738_v50 }
 0x10e   :  { %358 = vmatmul.bf16.gmra.mxu0 %v1979_v48  ;;  %v423_v59 = vsel %vm403_vm0, %v380_v46, %v381_v51  ;;  %v802_v1 = vadd.f32 %v780_v58, %v519_v60 }
 0x10f   :  { %716 = vmatmul.bf16.gmra.mxu2 %v1979_v48  ;;  %v521_v63 = vadd.f32 %v520_v38, %v423_v59 }
 0x110   :  { %562 = vmatmul.bf16.gmra.mxu1 %v1979_v48  ;;  %v2448_v8 = vadd.f32 %v2363_v2, %v802_v1 }
 0x112   :  { %v677_v61 = vpop.f32.mrf.mxu2 }
 0x113   :  { %v739_v62 = vrot.slane %v677_v61, 2  ;;  %v321_v0 = vpop.f32.mrf.mxu0 }
 0x114   :  { %v382_v12 = vrot.slane %v321_v0, 1 }
 0x115   :  { %v779_v3 = vsel %vm759_vm1, %v738_v50, %v739_v62  ;;  %v525_v4 = vpop.f32.mrf.mxu1 }
 0x116   :  { %v803_v5 = vadd.f32 %v779_v3, %v521_v63  ;;  %v422_v20 = vsel %vm403_vm0, %v381_v51, %v382_v12 }
 0x117   :  { %v524_v23 = vadd.f32 %v523_v53, %v422_v20 }
 0x118   :  { %v2451_v9 = vadd.f32 %v2363_v2, %v803_v5 }
 0x11a   :  { %v679_v10 = vpop.f32.mrf.mxu2  ;;  %v865_v11 = vpack.c.bf16 %v2451_v9, %v2448_v8 }
 0x11b   :  { %v324_v14 = vpop.f32.mrf.mxu0  ;;  %v740_v15 = vrot.slane %v679_v10, 2 }
 0x11c   :  { %977 = vmatmul.bf16.gmra.mxu3 %v865_v11  ;;  %v383_v18 = vrot.slane %v324_v14, 1 }
 0x11d   :  { %v528_v19 = vpop.f32.mrf.mxu1  ;;  %v778_v21 = vsel %vm759_vm1, %v739_v62, %v740_v15 }
 0x11e   :  { %363 = vmatmul.bf16.gmra.mxu0 %v1980_v13  ;;  %v421_v22 = vsel %vm403_vm0, %v382_v12, %v383_v18  ;;  %v804_v30 = vadd.f32 %v778_v21, %v524_v23 }
 0x11f   :  { %721 = vmatmul.bf16.gmra.mxu2 %v1980_v13  ;;  %v526_v26 = vadd.f32 %v525_v4, %v421_v22 }
 0x120   :  { %567 = vmatmul.bf16.gmra.mxu1 %v1980_v13  ;;  %v2464_v34 = vadd.f32 %v2363_v2, %v804_v30 }
 0x122   :  { %v682_v24 = vpop.f32.mrf.mxu2 }
 0x123   :  { %v741_v25 = vrot.slane %v682_v24, 2  ;;  %v326_v27 = vpop.f32.mrf.mxu0 }
 0x124   :  { %v384_v38 = vrot.slane %v326_v27, 1 }
 0x125   :  { %v777_v31 = vsel %vm759_vm1, %v740_v15, %v741_v25  ;;  %v530_v32 = vpop.f32.mrf.mxu1 }
 0x126   :  { %v805_v33 = vadd.f32 %v777_v31, %v526_v26  ;;  %v420_v48 = vsel %vm403_vm0, %v383_v18, %v384_v38 }
 0x127   :  { %v529_v51 = vadd.f32 %v528_v19, %v420_v48 }
 0x128   :  { %v2467_v35 = vadd.f32 %v2363_v2, %v805_v33 }
 0x12a   :  { %v684_v36 = vpop.f32.mrf.mxu2  ;;  %v866_v37 = vpack.c.bf16 %v2467_v35, %v2464_v34 }
 0x12b   :  { %v329_v39 = vpop.f32.mrf.mxu0  ;;  %v742_v44 = vrot.slane %v684_v36, 2 }
 0x12c   :  { %982 = vmatmul.bf16.gmra.mxu3 %v866_v37  ;;  %v385_v45 = vrot.slane %v329_v39, 1 }
 0x12d   :  { %v533_v46 = vpop.f32.mrf.mxu1  ;;  %v776_v49 = vsel %vm759_vm1, %v741_v25, %v742_v44 }
 0x12e   :  { %v419_v50 = vsel %vm403_vm0, %v384_v38, %v385_v45  ;;  %v806_v60 = vadd.f32 %v776_v49, %v529_v51  ;;  %v2506_v38 = vld [vmem:[%s2938_s4] ss:$0 sm:$0xff] }
 0x12f   :  { %v531_v58 = vadd.f32 %v530_v32, %v419_v50 }
 0x130   :  { %v2480_v0 = vadd.f32 %v2363_v2, %v806_v60 }
 0x132   :  { %v687_v53 = vpop.f32.mrf.mxu2 }
 0x133   :  { %v743_v57 = vrot.slane %v687_v53, 2  ;;  %v331_v59 = vpop.f32.mrf.mxu0 }
 0x134   :  { %v386_v5 = vrot.slane %v331_v59, 1 }
 0x135   :  { %v775_v61 = vsel %vm759_vm1, %v742_v44, %v743_v57  ;;  %v535_v62 = vpop.f32.mrf.mxu1 }
 0x136   :  { %v807_v63 = vadd.f32 %v775_v61, %v531_v58  ;;  %v418_v14 = vsel %vm403_vm0, %v385_v45, %v386_v5 }
 0x137   :  { %v534_v19 = vadd.f32 %v533_v46, %v418_v14 }
 0x138   :  { %v2483_v1 = vadd.f32 %v2363_v2, %v807_v63 }
 0x13a   :  { %v689_v3 = vpop.f32.mrf.mxu2  ;;  %v867_v4 = vpack.c.bf16 %v2483_v1, %v2480_v0 }
 0x13b   :  { %v334_v10 = vpop.f32.mrf.mxu0  ;;  %v744_v11 = vrot.slane %v689_v3, 2  ;;  %v2520_v3 = vld [vmem:[%s2939_s5] ss:$0 sm:$0xff] }
 0x13c   :  { %987 = vmatmul.bf16.gmra.mxu3 %v867_v4  ;;  %v387_v12 = vrot.slane %v334_v10, 1 }
 0x13d   :  { %v538_v13 = vpop.f32.mrf.mxu1  ;;  %v774_v15 = vsel %vm759_vm1, %v743_v57, %v744_v11 }
 0x13e   :  { %v417_v18 = vsel %vm403_vm0, %v386_v5, %v387_v12  ;;  %v808_v24 = vadd.f32 %v774_v15, %v534_v19 }
 0x13f   :  { %v536_v22 = vadd.f32 %v535_v62, %v417_v18 }
 0x140   :  { %v2496_v30 = vadd.f32 %v2363_v2, %v808_v24 }
 0x142   :  { %v692_v20 = vpop.f32.mrf.mxu2 }
 0x143   :  { %v745_v21 = vrot.slane %v692_v20, 2  ;;  %v336_v23 = vpop.f32.mrf.mxu0 }
 0x144   :  { %v388_v36 = vrot.slane %v336_v23, 1 }
 0x145   :  { %v773_v25 = vsel %vm759_vm1, %v744_v11, %v745_v21  ;;  %v540_v26 = vpop.f32.mrf.mxu1 }
 0x146   :  { %v809_v27 = vadd.f32 %v773_v25, %v536_v22  ;;  %v416_v46 = vsel %vm403_vm0, %v387_v12, %v388_v36 }
 0x147   :  { %v539_v53 = vadd.f32 %v538_v13, %v416_v46 }
 0x148   :  { %v2499_v31 = vadd.f32 %v2363_v2, %v809_v27 }
 0x14a   :  { %v694_v32 = vpop.f32.mrf.mxu2  ;;  %v868_v33 = vpack.c.bf16 %v2499_v31, %v2496_v30 }
 0x14b   :  { %v339_v37 = vpop.f32.mrf.mxu0  ;;  %v746_v39 = vrot.slane %v694_v32, 2 }
 0x14c   :  { %992 = vmatmul.bf16.gmra.mxu3 %v868_v33  ;;  %v389_v44 = vrot.slane %v339_v37, 1 }
 0x14d   :  { %v543_v45 = vpop.f32.mrf.mxu1  ;;  %v772_v50 = vsel %vm759_vm1, %v745_v21, %v746_v39 }
 0x14e   :  { %v415_v51 = vsel %vm403_vm0, %v388_v36, %v389_v44  ;;  %v810_v61 = vadd.f32 %v772_v50, %v539_v53 }
 0x14f   :  { %v953_v48 = vpop.f32.mrf.mxu3  ;;  %v541_v59 = vadd.f32 %v540_v26, %v415_v51 }
 0x150   :  { %v954_v49 = vadd.f32 %v2506_v38, %v953_v48  ;;  %v2524_v12 = vadd.f32 %v2363_v2, %v810_v61 }
 0x152   :  { %2024 = vtanh.f32 %v954_v49  ;;  %v697_v57 = vpop.f32.mrf.mxu2 }
 0x153   :  { %v747_v58 = vrot.slane %v697_v57, 2  ;;  %v341_v60 = vpop.f32.mrf.mxu0 }
 0x154   :  { %v390_v19 = vrot.slane %v341_v60, 1 }
 0x155   :  { %v771_v62 = vsel %vm759_vm1, %v746_v39, %v747_v58  ;;  %v545_v63 = vpop.f32.mrf.mxu1 }
 0x156   :  { %v811_v4 = vadd.f32 %v771_v62, %v541_v59  ;;  %v414_v24 = vsel %vm403_vm0, %v389_v44, %v390_v19 }
 0x157   :  { %v955_v5 = vpop.f32.mrf.mxu3  ;;  %v544_v37 = vadd.f32 %v543_v45, %v414_v24 }
 0x158   :  { %v2025_v10 = vpop.eup %2024  ;;  %v956_v11 = vadd.f32 %v2506_v38, %v955_v5  ;;  %v2527_v13 = vadd.f32 %v2363_v2, %v811_v4 }
 0x159   :  { %v1069_v14 = vmul.f32 %v2025_v10, %v2520_v3 }
 0x15a   :  { %2026 = vtanh.f32 %v956_v11  ;;  %v699_v15 = vpop.f32.mrf.mxu2  ;;  %v869_v18 = vpack.c.bf16 %v2527_v13, %v2524_v12 }
 0x15b   :  { %1101 = vadd.xlane.f32.xlu2 %v1069_v14  ;;  %v344_v20 = vpop.f32.mrf.mxu0  ;;  %v748_v21 = vrot.slane %v699_v15, 2 }
 0x15c   :  { %997 = vmatmul.bf16.gmra.mxu3 %v869_v18  ;;  %v391_v22 = vrot.slane %v344_v20, 1 }
 0x15d   :  { %v548_v23 = vpop.f32.mrf.mxu1  ;;  %v770_v32 = vsel %vm759_vm1, %v747_v58, %v748_v21 }
 0x15e   :  { %v413_v33 = vsel %vm403_vm0, %v390_v19, %v391_v22  ;;  %v812_v44 = vadd.f32 %v770_v32, %v544_v37 }
 0x15f   :  { %v958_v25 = vpop.f32.mrf.mxu3  ;;  %v546_v48 = vadd.f32 %v545_v63, %v413_v33 }
 0x160   :  { %v2027_v26 = vpop.eup %2026  ;;  %v959_v27 = vadd.f32 %v2506_v38, %v958_v25  ;;  %v2544_v60 = vadd.f32 %v2363_v2, %v812_v44 }
 0x161   :  { %v1070_v36 = vmul.f32 %v2027_v26, %v2520_v3 }
 0x162   :  { %2028 = vtanh.f32 %v959_v27  ;;  %v702_v39 = vpop.f32.mrf.mxu2 }
 0x163   :  { %v749_v46 = vrot.slane %v702_v39, 2  ;;  %1103 = vadd.xlane.f32.xlu0 %v1070_v36  ;;  %v346_v49 = vpop.f32.mrf.mxu0 }
 0x164   :  { %v392_v4 = vrot.slane %v346_v49, 1 }
 0x165   :  { %v769_v50 = vsel %vm759_vm1, %v748_v21, %v749_v46  ;;  %v550_v51 = vpop.f32.mrf.mxu1 }
 0x166   :  { %v813_v53 = vadd.f32 %v769_v50, %v546_v48  ;;  %v412_v15 = vsel %vm403_vm0, %v391_v22, %v392_v4 }
 0x167   :  { %v960_v57 = vpop.f32.mrf.mxu3  ;;  %v549_v26 = vadd.f32 %v548_v23, %v412_v15 }
 0x168   :  { %v2029_v58 = vpop.eup %2028  ;;  %v961_v59 = vadd.f32 %v2506_v38, %v960_v57  ;;  %v2547_v45 = vadd.f32 %v2363_v2, %v813_v53 }
 0x169   :  { %v1071_v61 = vmul.f32 %v2029_v58, %v2520_v3 }
 0x16a   :  { %2030 = vtanh.f32 %v961_v59  ;;  %v704_v62 = vpop.f32.mrf.mxu2  ;;  %v870_v63 = vpack.c.bf16 %v2547_v45, %v2544_v60 }
 0x16b   :  { %1105 = vadd.xlane.f32.xlu2 %v1071_v61  ;;  %v349_v5 = vpop.f32.mrf.mxu0  ;;  %v750_v10 = vrot.slane %v704_v62, 2 }
 0x16c   :  { %1002 = vmatmul.bf16.gmra.mxu3 %v870_v63  ;;  %v393_v11 = vrot.slane %v349_v5, 1 }
 0x16d   :  { %v553_v14 = vpop.f32.mrf.mxu1  ;;  %v768_v21 = vsel %vm759_vm1, %v749_v46, %v750_v10 }
 0x16e   :  { %v411_v24 = vsel %vm403_vm0, %v392_v4, %v393_v11  ;;  %v814_v22 = vadd.f32 %v768_v21, %v549_v26 }
 0x16f   :  { %v963_v18 = vpop.f32.mrf.mxu3  ;;  %v551_v33 = vadd.f32 %v550_v51, %v411_v24 }
 0x170   :  { %v2031_v19 = vpop.eup %2030  ;;  %v964_v20 = vadd.f32 %v2506_v38, %v963_v18  ;;  %v2564_v50 = vadd.f32 %v2363_v2, %v814_v22 }
 0x171   :  { %v1072_v25 = vmul.f32 %v2031_v19, %v2520_v3 }
 0x172   :  { %2032 = vtanh.f32 %v964_v20  ;;  %v707_v27 = vpop.f32.mrf.mxu2 }
 0x173   :  { %v751_v32 = vrot.slane %v707_v27, 2  ;;  %1107 = vadd.xlane.f32.xlu0 %v1072_v25  ;;  %v351_v36 = vpop.f32.mrf.mxu0 }
 0x174   :  { %v394_v58 = vrot.slane %v351_v36, 1 }
 0x175   :  { %v767_v37 = vsel %vm759_vm1, %v750_v10, %v751_v32  ;;  %v555_v39 = vpop.f32.mrf.mxu1 }
 0x176   :  { %v815_v48 = vadd.f32 %v767_v37, %v551_v33  ;;  %v410_v4 = vsel %vm403_vm0, %v393_v11, %v394_v58 }
 0x177   :  { %v965_v49 = vpop.f32.mrf.mxu3  ;;  %v554_v21 = vadd.f32 %v553_v14, %v410_v4 }
 0x178   :  { %v2033_v46 = vpop.eup %2032  ;;  %v966_v44 = vadd.f32 %v2506_v38, %v965_v49  ;;  %v2567_v23 = vadd.f32 %v2363_v2, %v815_v48 }
 0x179   :  { %v1073_v53 = vmul.f32 %v2033_v46, %v2520_v3 }
 0x17a   :  { %2034 = vtanh.f32 %v966_v44  ;;  %v709_v51 = vpop.f32.mrf.mxu2  ;;  %v871_v57 = vpack.c.bf16 %v2567_v23, %v2564_v50 }
 0x17b   :  { %1109 = vadd.xlane.f32.xlu1 %v1073_v53  ;;  %v354_v59 = vpop.f32.mrf.mxu0  ;;  %v752_v61 = vrot.slane %v709_v51, 2 }
 0x17c   :  { %1007 = vmatmul.bf16.gmra.mxu3 %v871_v57  ;;  %v395_v62 = vrot.slane %v354_v59, 1 }
 0x17d   :  { %v558_v63 = vpop.f32.mrf.mxu1  ;;  %v766_v18 = vsel %vm759_vm1, %v751_v32, %v752_v61 }
 0x17e   :  { %v409_v19 = vsel %vm403_vm0, %v394_v58, %v395_v62  ;;  %v816_v26 = vadd.f32 %v766_v18, %v554_v21 }
 0x17f   :  { %v968_v5 = vpop.f32.mrf.mxu3  ;;  %v556_v27 = vadd.f32 %v555_v39, %v409_v19 }
 0x180   :  { %v2035_v10 = vpop.eup %2034  ;;  %v969_v15 = vadd.f32 %v2506_v38, %v968_v5  ;;  %v2584_v49 = vadd.f32 %v2363_v2, %v816_v26 }
 0x181   :  { %v1074_v20 = vmul.f32 %v2035_v10, %v2520_v3 }
 0x182   :  { %2036 = vtanh.f32 %v969_v15  ;;  %v712_v24 = vpop.f32.mrf.mxu2 }
 0x183   :  { %v753_v25 = vrot.slane %v712_v24, 2  ;;  %1111 = vadd.xlane.f32.xlu0 %v1074_v20  ;;  %v356_v11 = vpop.f32.mrf.mxu0 }
 0x184   :  { %v396_v53 = vrot.slane %v356_v11, 1 }
 0x185   :  { %v765_v33 = vsel %vm759_vm1, %v752_v61, %v753_v25  ;;  %v560_v36 = vpop.f32.mrf.mxu1 }
 0x186   :  { %v817_v22 = vadd.f32 %v765_v33, %v556_v27  ;;  %v408_v59 = vsel %vm403_vm0, %v395_v62, %v396_v53 }
 0x187   :  { %v970_v37 = vpop.f32.mrf.mxu3  ;;  %v559_v20 = vadd.f32 %v558_v63, %v408_v59 }
 0x188   :  { %v2037_v32 = vpop.eup %2036  ;;  %v971_v48 = vadd.f32 %v2506_v38, %v970_v37  ;;  %v2587_v14 = vadd.f32 %v2363_v2, %v817_v22 }
 0x189   :  { %v1075_v46 = vmul.f32 %v2037_v32, %v2520_v3 }
 0x18a   :  { %2038 = vtanh.f32 %v971_v48  ;;  %v714_v39 = vpop.f32.mrf.mxu2  ;;  %v872_v44 = vpack.c.bf16 %v2587_v14, %v2584_v49 }
 0x18b   :  { %1113 = vadd.xlane.f32.xlu2 %v1075_v46  ;;  %v359_v51 = vpop.f32.mrf.mxu0  ;;  %v754_v57 = vrot.slane %v714_v39, 2 }
 0x18c   :  { %1012 = vmatmul.bf16.gmra.mxu3 %v872_v44  ;;  %v397_v58 = vrot.slane %v359_v51, 1 }
 0x18d   :  { %v563_v61 = vpop.f32.mrf.mxu1  ;;  %v764_v15 = vsel %vm759_vm1, %v753_v25, %v754_v57 }
 0x18e   :  { %v407_v18 = vsel %vm403_vm0, %v396_v53, %v397_v58  ;;  %v818_v26 = vadd.f32 %v764_v15, %v559_v20 }
 0x18f   :  { %v973_v4 = vpop.f32.mrf.mxu3  ;;  %v561_v62 = vadd.f32 %v560_v36, %v407_v18 }
 0x190   :  { %v2039_v5 = vpop.eup %2038  ;;  %v974_v10 = vadd.f32 %v2506_v38, %v973_v4  ;;  %v2604_v32 = vadd.f32 %v2363_v2, %v818_v26 }
 0x191   :  { %v1076_v19 = vmul.f32 %v2039_v5, %v2520_v3 }
 0x192   :  { %2040 = vtanh.f32 %v974_v10  ;;  %v717_v21 = vpop.f32.mrf.mxu2 }
 0x193   :  { %v755_v24 = vrot.slane %v717_v21, 2  ;;  %1115 = vadd.xlane.f32.xlu2 %v1076_v19  ;;  %v361_v27 = vpop.f32.mrf.mxu0 }
 0x194   :  { %v398_v44 = vrot.slane %v361_v27, 1 }
 0x195   :  { %v763_v11 = vsel %vm759_vm1, %v754_v57, %v755_v24  ;;  %v565_v48 = vpop.f32.mrf.mxu1 }
 0x196   :  { %v819_v33 = vadd.f32 %v763_v11, %v561_v62  ;;  %v406_v59 = vsel %vm403_vm0, %v397_v58, %v398_v44 }
 0x197   :  { %v975_v22 = vpop.f32.mrf.mxu3  ;;  %v564_v20 = vadd.f32 %v563_v61, %v406_v59 }
 0x198   :  { %v2041_v37 = vpop.eup %2040  ;;  %v976_v25 = vadd.f32 %v2506_v38, %v975_v22  ;;  %v2607_v63 = vadd.f32 %v2363_v2, %v819_v33 }
 0x199   :  { %v1077_v46 = vmul.f32 %v2041_v37, %v2520_v3 }
 0x19a   :  { %2042 = vtanh.f32 %v976_v25  ;;  %v719_v36 = vpop.f32.mrf.mxu2  ;;  %v873_v39 = vpack.c.bf16 %v2607_v63, %v2604_v32 }
 0x19b   :  { %1117 = vadd.xlane.f32.xlu0 %v1077_v46  ;;  %v364_v53 = vpop.f32.mrf.mxu0  ;;  %v756_v51 = vrot.slane %v719_v36, 2 }
 0x19c   :  { %1017 = vmatmul.bf16.gmra.mxu3 %v873_v39  ;;  %v399_v57 = vrot.slane %v364_v53, 1 }
 0x19d   :  { %v762_v15 = vsel %vm759_vm1, %v755_v24, %v756_v51  ;;  %v568_v26 = vpop.f32.mrf.mxu1 }
 0x19e   :  { %v405_v18 = vsel %vm403_vm0, %v398_v44, %v399_v57  ;;  %v820_v27 = vadd.f32 %v762_v15, %v564_v20 }
 0x19f   :  { %v978_v4 = vpop.f32.mrf.mxu3  ;;  %v566_v58 = vadd.f32 %v565_v48, %v405_v18 }
 0x1a0   :  { %v2043_v5 = vpop.eup %2042  ;;  %v979_v10 = vadd.f32 %v2506_v38, %v978_v4  ;;  %v2624_v46 = vadd.f32 %v2363_v2, %v820_v27 }
 0x1a1   :  { %v1078_v19 = vmul.f32 %v2043_v5, %v2520_v3 }
 0x1a2   :  { %2044 = vtanh.f32 %v979_v10  ;;  %v722_v21 = vpop.f32.mrf.mxu2 }
 0x1a3   :  { %v757_v62 = vrot.slane %v722_v21, 2  ;;  %1119 = vadd.xlane.f32.xlu0 %v1078_v19  ;;  %v366_v22 = vpop.f32.mrf.mxu0 }
 0x1a4   :  { %v400_v36 = vrot.slane %v366_v22, 1 }
 0x1a5   :  { %v761_v11 = vsel %vm759_vm1, %v756_v51, %v757_v62  ;;  %v570_v4 = vpop.f32.mrf.mxu1 }
 0x1a6   :  { %v821_v33 = vadd.f32 %v761_v11, %v566_v58  ;;  %v404_v51 = vsel %vm403_vm0, %v399_v57, %v400_v36  ;;  %v435_v59 = vsel %vm403_vm0, %v400_v36, %v369_v52 }
 0x1a7   :  { %v980_v37 = vpop.f32.mrf.mxu3  ;;  %v569_v19 = vadd.f32 %v568_v26, %v404_v51  ;;  %v571_v20 = vadd.f32 %v570_v4, %v435_v59 }
 0x1a8   :  { %v2045_v24 = vpop.eup %2044  ;;  %v981_v25 = vadd.f32 %v2506_v38, %v980_v37  ;;  %v2627_v61 = vadd.f32 %v2363_v2, %v821_v33 }
 0x1a9   :  { %v1079_v39 = vmul.f32 %v2045_v24, %v2520_v3 }
 0x1aa   :  { %2046 = vtanh.f32 %v981_v25  ;;  %v724_v48 = vpop.f32.mrf.mxu2  ;;  %v874_v44 = vpack.c.bf16 %v2627_v61, %v2624_v46 }
 0x1ab   :  { %v758_v53 = vrot.slane %v724_v48, 2  ;;  %1121 = vadd.xlane.f32.xlu1 %v1079_v39  ;;  %v2662_v48 = vadd.s32 8, %v2344_v47 }
 0x1ac   :  { %1022 = vmatmul.bf16.gmra.mxu3 %v874_v44 }
 0x1ad   :  { %v760_v5 = vsel %vm759_vm1, %v757_v62, %v758_v53  ;;  %v791_v10 = vsel %vm759_vm1, %v758_v53, %v727_v56  ;;  %vm1167_vm2 = vcmp.lt.s32.totalorder %v2662_v48, 12 }
 0x1ae   :  { %v822_v21 = vadd.f32 %v760_v5, %v569_v19  ;;  %v823_v27 = vadd.f32 %v791_v10, %v571_v20 }
 0x1af   :  { %v983_v15 = vpop.f32.mrf.mxu3 }
 0x1b0   :  { %v2047_v18 = vpop.eup %2046  ;;  %v984_v57 = vadd.f32 %v2506_v38, %v983_v15  ;;  %v2647_v52 = vadd.f32 %v2363_v2, %v822_v21  ;;  %v2650_v43 = vadd.f32 %v2363_v2, %v823_v27 }
 0x1b1   :  { %v1080_v41 = vmul.f32 %v2047_v18, %v2520_v3 }
 0x1b2   :  { %2048 = vtanh.f32 %v984_v57  ;;  %v875_v11 = vpack.c.bf16 %v2650_v43, %v2647_v52 }
 0x1b3   :  { %1123 = vadd.xlane.f32.xlu1 %v1080_v41 }
 0x1b7   :  { %v985_v62 = vpop.f32.mrf.mxu3 }
 0x1b8   :  { %v2049_v56 = vpop.eup %2048  ;;  %v986_v58 = vadd.f32 %v2506_v38, %v985_v62 }
 0x1b9   :  { %v1081_v26 = vmul.f32 %v2049_v56, %v2520_v3 }
 0x1ba   :  { %2050 = vtanh.f32 %v986_v58 }
 0x1bb   :  { %1125 = vadd.xlane.f32.xlu2 %v1081_v26 }
 0x1bc   :  { %1027 = vmatmul.bf16.gmra.mxu3 %v875_v11 }
 0x1bf   :  { %v2656_v33 = vpop.f32.mrf.mxu3 }
 0x1c0   :  { %v2051_v22 = vpop.eup %2050 }
 0x1c1   :  { %v1082_v37 = vmul.f32 %v2051_v22, %v2520_v3 }
 0x1c3   :  { %1127 = vadd.xlane.f32.xlu2 %v1082_v37 }
 0x1c7   :  { %v990_v2 = vpop.f32.mrf.mxu3 }
 0x1c8   :  { %v991_v24 = vadd.f32 %v2506_v38, %v990_v2 }
 0x1ca   :  { %2052 = vtanh.f32 %v991_v24 }
 0x1ce   :  { %v1102_v51 = vpop.xlane.xlu2 %1101 }
 0x1cf   :  { %v993_v25 = vpop.f32.mrf.mxu3 }
 0x1d0   :  { %v2053_v36 = vpop.eup %2052  ;;  %v994_v39 = vadd.f32 %v2506_v38, %v993_v25 }
 0x1d1   :  { %v1084_v44 = vmul.f32 %v2053_v36, %v2520_v3 }
 0x1d2   :  { %2054 = vtanh.f32 %v994_v39 }
 0x1d3   :  { %1131 = vadd.xlane.f32.xlu0 %v1084_v44 }
 0x1d6   :  { %v1104_v53 = vpop.xlane.xlu0 %1103 }
 0x1d7   :  { %v1169_v59 = vsel %vm1167_vm2, %v1104_v53, -1e+30  ;;  %v995_v4 = vpop.f32.mrf.mxu3 }
 0x1d8   :  { %v2055_v5 = vpop.eup %2054  ;;  %v1200_v10 = vmax.f32 %v1102_v51, %v1169_v59  ;;  %v996_v15 = vadd.f32 %v2506_v38, %v995_v4 }
 0x1d9   :  { %v1085_v18 = vmul.f32 %v2055_v5, %v2520_v3 }
 0x1da   :  { %v1201_v47 = vrot.slane %v1200_v10, 4  ;;  %2056 = vtanh.f32 %v996_v15 }
 0x1db   :  { %1133 = vadd.xlane.f32.xlu1 %v1085_v18 }
 0x1dc   :  { %v1202_v19 = vmax.f32 %v1200_v10, %v1201_v47 }
 0x1de   :  { %v1203_v20 = vrot.slane %v1202_v19, 2  ;;  %v1106_v37 = vpop.xlane.xlu2 %1105 }
 0x1df   :  { %v998_v57 = vpop.f32.mrf.mxu3 }
 0x1e0   :  { %v2057_v41 = vpop.eup %2056  ;;  %v1204_v21 = vmax.f32 %v1202_v19, %v1203_v20  ;;  %v999_v27 = vadd.f32 %v2506_v38, %v998_v57 }
 0x1e1   :  { %v1086_v62 = vmul.f32 %v2057_v41, %v2520_v3 }
 0x1e2   :  { %v1205_v56 = vrot.slane %v1204_v21, 1  ;;  %2058 = vtanh.f32 %v999_v27 }
 0x1e3   :  { %1135 = vadd.xlane.f32.xlu1 %v1086_v62 }
 0x1e4   :  { %v1206_v58 = vmax.f32 %v1204_v21, %v1205_v56 }
 0x1e6   :  { %v1312_v26 = vsub.f32 %v1102_v51, %v1206_v58  ;;  %v1313_v11 = vsub.f32 %v1169_v59, %v1206_v58  ;;  %v1108_v22 = vpop.xlane.xlu0 %1107 }
 0x1e7   :  { %v1171_v2 = vsel %vm1167_vm2, %v1108_v22, -1e+30  ;;  %v1000_v24 = vpop.f32.mrf.mxu3 }
 0x1e8   :  { %v2059_v25 = vpop.eup %2058  ;;  %v1344_v36 = vmul.f32 1.442695, %v1312_v26  ;;  %v1346_v39 = vmul.f32 1.442695, %v1313_v11  ;;  %v1207_v44 = vmax.f32 %v1106_v37, %v1171_v2  ;;  %v1001_v53 = vadd.f32 %v2506_v38, %v1000_v24 }
 0x1e9   :  { %v1087_v4 = vmul.f32 %v2059_v25, %v2520_v3 }
 0x1ea   :  { %2060 = vpow2.f32 %v1344_v36  ;;  %v1208_v5 = vrot.slane %v1207_v44, 4 }
 0x1eb   :  { %2062 = vpow2.f32 %v1346_v39  ;;  %1137 = vadd.xlane.f32.xlu2 %v1087_v4 }
 0x1ec   :  { %v1209_v51 = vmax.f32 %v1207_v44, %v1208_v5  ;;  %2064 = vtanh.f32 %v1001_v53 }
 0x1ee   :  { %v1210_v59 = vrot.slane %v1209_v51, 2  ;;  %v1110_v22 = vpop.xlane.xlu1 %1109 }
 0x1ef   :  { %v1003_v10 = vpop.f32.mrf.mxu3 }
 0x1f0   :  { %v2061_v15 = vpop.eup %2060  ;;  %v1211_v18 = vmax.f32 %v1209_v51, %v1210_v59  ;;  %v1004_v47 = vadd.f32 %v2506_v38, %v1003_v10 }
 0x1f1   :  { %v2063_v19 = vpop.eup %2062 }
 0x1f2   :  { %v2065_v20 = vpop.eup %2064  ;;  %v1408_v57 = vadd.f32 %v2063_v19, %v2061_v15  ;;  %v1212_v41 = vrot.slane %v1211_v18, 1  ;;  %2066 = vtanh.f32 %v1004_v47 }
 0x1f3   :  { %v1088_v21 = vmul.f32 %v2065_v20, %v2520_v3 }
 0x1f4   :  { %v1409_v27 = vrot.slane %v1408_v57, 4  ;;  %v1213_v62 = vmax.f32 %v1211_v18, %v1212_v41 }
 0x1f5   :  { %1139 = vadd.xlane.f32.xlu1 %v1088_v21 }
 0x1f6   :  { %v1410_v56 = vadd.f32 %v1409_v27, %v1408_v57  ;;  %v1314_v58 = vsub.f32 %v1106_v37, %v1213_v62  ;;  %v1315_v26 = vsub.f32 %v1171_v2, %v1213_v62  ;;  %v1112_v11 = vpop.xlane.xlu0 %1111 }
 0x1f7   :  { %v1173_v24 = vsel %vm1167_vm2, %v1112_v11, -1e+30  ;;  %v1005_v25 = vpop.f32.mrf.mxu3 }
 0x1f8   :  { %v2067_v36 = vpop.eup %2066  ;;  %v1411_v39 = vrot.slane %v1410_v56, 2  ;;  %v1348_v44 = vmul.f32 1.442695, %v1314_v58  ;;  %v1350_v53 = vmul.f32 1.442695, %v1315_v26  ;;  %v1214_v4 = vmax.f32 %v1110_v22, %v1173_v24 }
 0x1f9   :  { %v1006_v5 = vadd.f32 %v2506_v38, %v1005_v25  ;;  %v1089_v51 = vmul.f32 %v2067_v36, %v2520_v3 }
 0x1fa   :  { %v1412_v59 = vadd.f32 %v1411_v39, %v1410_v56  ;;  %2068 = vpow2.f32 %v1348_v44  ;;  %v1215_v10 = vrot.slane %v1214_v4, 4 }
 0x1fb   :  { %2070 = vpow2.f32 %v1350_v53  ;;  %1141 = vadd.xlane.f32.xlu0 %v1089_v51 }
 0x1fc   :  { %v1413_v37 = vrot.slane %v1412_v59, 1  ;;  %v1216_v2 = vmax.f32 %v1214_v4, %v1215_v10  ;;  %2072 = vtanh.f32 %v1006_v5 }
 0x1fe   :  { %v1414_v18 = vadd.f32 %v1413_v37, %v1412_v59  ;;  %v1217_v47 = vrot.slane %v1216_v2, 2  ;;  %v2682_v20 = vpop.xlane.xlu2 %1113 }
 0x1ff   :  { %v1008_v57 = vpop.f32.mrf.mxu3 }
 0x200   :  { %v2684_v41 = vpop.eup %2068  ;;  %2074 = vrcp.f32 %v1414_v18  ;;  %v1218_v21 = vmax.f32 %v1216_v2, %v1217_v47  ;;  %v1009_v27 = vadd.f32 %v2506_v38, %v1008_v57 }
 0x201   :  { %v2071_v62 = vpop.eup %2070 }
 0x202   :  { %v2073_v56 = vpop.eup %2072  ;;  %v1415_v58 = vadd.f32 %v2071_v62, %v2684_v41  ;;  %v1219_v26 = vrot.slane %v1218_v21, 1  ;;  %2076 = vtanh.f32 %v1009_v27 }
 0x203   :  { %v1090_v11 = vmul.f32 %v2073_v56, %v2520_v3 }
 0x204   :  { %v1416_v25 = vrot.slane %v1415_v58, 4  ;;  %v1220_v36 = vmax.f32 %v1218_v21, %v1219_v26 }
 0x205   :  { %1143 = vadd.xlane.f32.xlu0 %v1090_v11 }
 0x206   :  { %v2075_v39 = vpop.eup %2074  ;;  %v1417_v44 = vadd.f32 %v1416_v25, %v1415_v58  ;;  %v1316_v53 = vsub.f32 %v1110_v22, %v1220_v36  ;;  %v1317_v4 = vsub.f32 %v1173_v24, %v1220_v36  ;;  %v1116_v5 = vpop.xlane.xlu2 %1115 }
 0x207   :  { %v1536_v51 = vmul.f32 %v2075_v39, %v2061_v15  ;;  %v1537_v59 = vmul.f32 %v2075_v39, %v2063_v19  ;;  %v1175_v10 = vsel %vm1167_vm2, %v1116_v5, -1e+30  ;;  %v1010_v37 = vpop.f32.mrf.mxu3 }
 0x208   :  { %v2077_v2 = vpop.eup %2076  ;;  %v1418_v18 = vrot.slane %v1417_v44, 2  ;;  %v1352_v47 = vmul.f32 1.442695, %v1316_v53  ;;  %v1354_v57 = vmul.f32 1.442695, %v1317_v4  ;;  %v1221_v27 = vmax.f32 %v2682_v20, %v1175_v10 }
 0x209   :  { %v1011_v21 = vadd.f32 %v2506_v38, %v1010_v37  ;;  %v1091_v56 = vmul.f32 %v2077_v2, %v2520_v3  ;;  %v1568_v15 = vmul.f32 %v1536_v51, %v2368_v6  ;;  %v1569_v19 = vmul.f32 %v1537_v59, %v2371_v7 }
 0x20a   :  { %v1419_v58 = vadd.f32 %v1418_v18, %v1417_v44  ;;  %2078 = vpow2.f32 %v1352_v47  ;;  %v1222_v22 = vrot.slane %v1221_v27, 4 }
 0x20b   :  { %2080 = vpow2.f32 %v1354_v57  ;;  %1145 = vadd.xlane.f32.xlu1 %v1091_v56  ;;  %v1600_v39 = vadd.f32 %v1569_v19, %v1568_v15 }
 0x20c   :  { %v1420_v24 = vrot.slane %v1419_v58, 1  ;;  %v1223_v26 = vmax.f32 %v1221_v27, %v1222_v22  ;;  %2082 = vtanh.f32 %v1011_v21 }
 0x20d   :  { %v1601_v37 = vrot.slane %v1600_v39, 4 }
 0x20e   :  { %v1421_v11 = vadd.f32 %v1420_v24, %v1419_v58  ;;  %v1224_v25 = vrot.slane %v1223_v26, 2  ;;  %v2696_v36 = vpop.xlane.xlu0 %1117 }
 0x20f   :  { %v1013_v53 = vpop.f32.mrf.mxu3  ;;  %v1602_v22 = vadd.f32 %v1601_v37, %v1600_v39 }
 0x210   :  { %v2698_v4 = vpop.eup %2078  ;;  %2084 = vrcp.f32 %v1421_v11  ;;  %v1225_v44 = vmax.f32 %v1223_v26, %v1224_v25  ;;  %v1014_v5 = vadd.f32 %v2506_v38, %v1013_v53 }
 0x211   :  { %v2701_v6 = vpop.eup %2080 }
 0x212   :  { %v2083_v7 = vpop.eup %2082  ;;  %v1422_v51 = vadd.f32 %v2701_v6, %v2698_v4  ;;  %v1226_v59 = vrot.slane %v1225_v44, 1  ;;  %2086 = vtanh.f32 %v1014_v5 }
 0x213   :  { %v1092_v2 = vmul.f32 %v2083_v7, %v2520_v3 }
 0x214   :  { %v1423_v18 = vrot.slane %v1422_v51, 4  ;;  %v1227_v47 = vmax.f32 %v1225_v44, %v1226_v59 }
 0x215   :  { %1147 = vadd.xlane.f32.xlu1 %v1092_v2 }
 0x216   :  { %v2085_v57 = vpop.eup %2084  ;;  %v1424_v27 = vadd.f32 %v1423_v18, %v1422_v51  ;;  %v1318_v21 = vsub.f32 %v2682_v20, %v1227_v47  ;;  %v1319_v56 = vsub.f32 %v1175_v10, %v1227_v47  ;;  %v1120_v58 = vpop.xlane.xlu0 %1119  ;;  %v1603_v51 = vrot.slane %v1602_v22, 2 }
 0x217   :  { %v1538_v15 = vmul.f32 %v2085_v57, %v2684_v41  ;;  %v1539_v19 = vmul.f32 %v2085_v57, %v2071_v62  ;;  %v1177_v24 = vsel %vm1167_vm2, %v1120_v58, -1e+30  ;;  %v1015_v26 = vpop.f32.mrf.mxu3 }
 0x218   :  { %v2087_v11 = vpop.eup %2086  ;;  %v1425_v25 = vrot.slane %v1424_v27, 2  ;;  %v1356_v53 = vmul.f32 1.442695, %v1318_v21  ;;  %v1358_v5 = vmul.f32 1.442695, %v1319_v56  ;;  %v1228_v44 = vmax.f32 %v2696_v36, %v1177_v24 }
 0x219   :  { %v1570_v7 = vmul.f32 %v1538_v15, %v2384_v28  ;;  %v1571_v20 = vmul.f32 %v1539_v19, %v2387_v29  ;;  %v1016_v10 = vadd.f32 %v2506_v38, %v1015_v26  ;;  %v1093_v39 = vmul.f32 %v2087_v11, %v2520_v3 }
 0x21a   :  { %v1426_v41 = vadd.f32 %v1425_v25, %v1424_v27  ;;  %2088 = vpow2.f32 %v1356_v53  ;;  %v1229_v62 = vrot.slane %v1228_v44, 4  ;;  %v1604_v28 = vadd.f32 %v1603_v51, %v1602_v22 }
 0x21b   :  { %v1607_v59 = vadd.f32 %v1571_v20, %v1570_v7  ;;  %2090 = vpow2.f32 %v1358_v5  ;;  %1149 = vadd.xlane.f32.xlu2 %v1093_v39 }
 0x21c   :  { %v1427_v37 = vrot.slane %v1426_v41, 1  ;;  %v1230_v2 = vmax.f32 %v1228_v44, %v1229_v62  ;;  %2092 = vtanh.f32 %v1016_v10  ;;  %v1605_v53 = vrot.slane %v1604_v28, 1 }
 0x21d   :  { %v1608_v18 = vrot.slane %v1607_v59, 4 }
 0x21e   :  { %v1428_v47 = vadd.f32 %v1427_v37, %v1426_v41  ;;  %v1231_v57 = vrot.slane %v1230_v2, 2  ;;  %v1606_v51 = vadd.f32 %v1605_v53, %v1604_v28 }
 0x21f   :  { %v1609_v21 = vadd.f32 %v1608_v18, %v1607_v59  ;;  %v1018_v29 = vpop.f32.mrf.mxu3 }
 0x220   :  { %v2715_v56 = vpop.eup %2088  ;;  %2094 = vrcp.f32 %v1428_v47  ;;  %v1232_v58 = vmax.f32 %v1230_v2, %v1231_v57  ;;  %v1019_v27 = vadd.f32 %v2506_v38, %v1018_v29 }
 0x221   :  { %v2718_v15 = vpop.eup %2090  ;;  %v1610_v19 = vrot.slane %v1609_v21, 2 }
 0x222   :  { %v2093_v26 = vpop.eup %2092  ;;  %v1429_v11 = vadd.f32 %v2718_v15, %v2715_v56  ;;  %v1233_v25 = vrot.slane %v1232_v58, 1  ;;  %2096 = vtanh.f32 %v1019_v27 }
 0x223   :  { %v1611_v5 = vadd.f32 %v1610_v19, %v1609_v21  ;;  %v1094_v22 = vmul.f32 %v2093_v26, %v2520_v3  ;;  %v989_v26 = vadd.f32 %v2506_v38, %v2656_v33 }
 0x224   :  { %v1430_v44 = vrot.slane %v1429_v11, 4  ;;  %v1234_v7 = vmax.f32 %v1232_v58, %v1233_v25 }
 0x225   :  { %v1612_v20 = vrot.slane %v1611_v5, 1  ;;  %1151 = vadd.xlane.f32.xlu2 %v1094_v22 }
 0x226   :  { %v2095_v10 = vpop.eup %2094  ;;  %v1431_v39 = vadd.f32 %v1430_v44, %v1429_v11  ;;  %v1320_v41 = vsub.f32 %v2696_v36, %v1234_v7  ;;  %v1321_v62 = vsub.f32 %v1177_v24, %v1234_v7 }
 0x227   :  { %v1613_v59 = vadd.f32 %v1612_v20, %v1611_v5  ;;  %v1540_v37 = vmul.f32 %v2095_v10, %v2698_v4  ;;  %v1541_v2 = vmul.f32 %v2095_v10, %v2701_v6  ;;  %v1020_v18 = vpop.f32.mrf.mxu3 }
 0x228   :  { %v2097_v47 = vpop.eup %2096  ;;  %v1432_v57 = vrot.slane %v1431_v39, 2  ;;  %v1360_v21 = vmul.f32 1.442695, %v1320_v41  ;;  %v1362_v29 = vmul.f32 1.442695, %v1321_v62  ;;  %v1021_v36 = vadd.f32 %v2506_v38, %v1020_v18 }
 0x229   :  { %v1729_v58 = vsel %vm1728_vm3, %v1613_v59, %v1606_v51  ;;  %v1572_v27 = vmul.f32 %v1540_v37, %v2400_v54  ;;  %v1573_v19 = vmul.f32 %v1541_v2, %v2403_v55  ;;  %v1095_v28 = vmul.f32 %v2097_v47, %v2520_v3 }
 0x22a   :  { %v1433_v24 = vadd.f32 %v1432_v57, %v1431_v39  ;;  %2098 = vpow2.f32 %v1360_v21 }
 0x22b   :  { %v1614_v4 = vadd.f32 %v1573_v19, %v1572_v27  ;;  %2100 = vpow2.f32 %v1362_v29  ;;  %1153 = vadd.xlane.f32.xlu0 %v1095_v28 }
 0x22c   :  { %v1434_v6 = vrot.slane %v1433_v24, 1  ;;  %2102 = vtanh.f32 %v1021_v36 }
 0x22d   :  { %v1615_v11 = vrot.slane %v1614_v4, 4 }
 0x22e   :  { %v1435_v25 = vadd.f32 %v1434_v6, %v1433_v24  ;;  %v2743_v6 = vpop.xlane.xlu1 %1121 }
 0x22f   :  { %v1616_v53 = vadd.f32 %v1615_v11, %v1614_v4  ;;  %v1023_v54 = vpop.f32.mrf.mxu3 }
 0x230   :  { %v2099_v5 = vpop.eup %2098  ;;  %2104 = vrcp.f32 %v1435_v25  ;;  %v1024_v55 = vadd.f32 %v2506_v38, %v1023_v54 }
 0x231   :  { %v2101_v22 = vpop.eup %2100  ;;  %2106 = vtanh.f32 %v989_v26  ;;  %v1617_v44 = vrot.slane %v1616_v53, 2 }
 0x232   :  { %v2103_v7 = vpop.eup %2102  ;;  %v1436_v20 = vadd.f32 %v2101_v22, %v2099_v5  ;;  %2108 = vtanh.f32 %v1024_v55 }
 0x233   :  { %v1618_v10 = vadd.f32 %v1617_v44, %v1616_v53  ;;  %v1096_v39 = vmul.f32 %v2103_v7, %v2520_v3 }
 0x234   :  { %v1437_v41 = vrot.slane %v1436_v20, 4 }
 0x235   :  { %v1619_v62 = vrot.slane %v1618_v10, 1  ;;  %1155 = vadd.xlane.f32.xlu0 %v1096_v39 }
 0x236   :  { %v2105_v33 = vpop.eup %2104  ;;  %v1438_v51 = vadd.f32 %v1437_v41, %v1436_v20  ;;  %v1124_v55 = vpop.xlane.xlu1 %1123  ;;  %v2184_v41 = vld [vmem:[%s2938_s4] ss:$0 sm:$0xff] }
 0x237   :  { %v2107_v59 = vpop.eup %2106  ;;  %v1620_v37 = vadd.f32 %v1619_v62, %v1618_v10  ;;  %v1542_v2 = vmul.f32 %v2105_v33, %v2715_v56  ;;  %v1543_v18 = vmul.f32 %v2105_v33, %v2718_v15  ;;  %v1025_v47 = vpop.f32.mrf.mxu3 }
 0x238   :  { %v2109_v57 = vpop.eup %2108  ;;  %v1439_v21 = vrot.slane %v1438_v51, 2  ;;  %v1026_v19 = vadd.f32 %v2506_v38, %v1025_v47  ;;  %v1083_v4 = vmul.f32 %v2107_v59, %v2520_v3 }
 0x239   :  { %v1574_v29 = vmul.f32 %v1542_v2, %v2416_v16  ;;  %v1575_v27 = vmul.f32 %v1543_v18, %v2419_v17  ;;  %v1097_v36 = vmul.f32 %v2109_v57, %v2520_v3  ;;  %v1731_v28 = vsel %vm1730_vm4, %v1620_v37, %v1729_v58 }
 0x23a   :  { %v1440_v24 = vadd.f32 %v1439_v21, %v1438_v51  ;;  %2110 = vtanh.f32 %v1026_v19 }
 0x23b   :  { %1157 = vadd.xlane.f32.xlu1 %v1097_v36  ;;  %v1621_v56 = vadd.f32 %v1575_v27, %v1574_v29  ;;  %v2185_v29 = vld [vmem:[%s2939_s5] ss:$0 sm:$0xff]  ;;  %v2756_v36 = vpop.xlane.xlu2 %1125  ;;  %s2293_s5 = smov [#allocation8]  }
 0x23c   :  { %v1441_v15 = vrot.slane %v1440_v24, 1  ;;  %s1757_s19 = sshll.u32 %s2293_s5, 4  ;;  %s1758_s19 = int_to_ptr.vmem [resolvable:$true] %s1757_s19 }
 0x23d   :  { %1129 = vadd.xlane.f32.xlu0 %v1083_v4  ;;  %v1622_v11 = vrot.slane %v1621_v56, 4 }
 0x23e   :  { %v1442_v26 = vadd.f32 %v1441_v15, %v1440_v24 }
 0x23f   :  { %v1028_v16 = vpop.f32.mrf.mxu3  ;;  %v1623_v58 = vadd.f32 %v1622_v11, %v1621_v56 }
 0x240   :  { %2112 = vrcp.f32 %v1442_v26  ;;  %v1029_v17 = vadd.f32 %v2506_v38, %v1028_v16  ;;  %v2111_v25 = vpop.eup %2110 }
 0x241   :  { %v1098_v53 = vmul.f32 %v2111_v25, %v2520_v3  ;;  %v1624_v39 = vrot.slane %v1623_v58, 2 }
 0x242   :  { %2114 = vtanh.f32 %v1029_v17 }
 0x243   :  { %1159 = vadd.xlane.f32.xlu1 %v1098_v53  ;;  %v1625_v37 = vadd.f32 %v1624_v39, %v1623_v58  ;;  %v1128_v25 = vpop.xlane.xlu2 %1127 }
 0x245   :  { %v1626_v18 = vrot.slane %v1625_v37, 1 }
 0x246   :  { %v2113_v54 = vpop.eup %2112 }
 0x247   :  { %v1544_v44 = vmul.f32 %v2113_v54, %v2099_v5  ;;  %v1545_v7 = vmul.f32 %v2113_v54, %v2101_v22  ;;  %v1030_v20 = vpop.f32.mrf.mxu3  ;;  %v1627_v27 = vadd.f32 %v1626_v18, %v1625_v37  ;;  %v2764_v54 = vpop.xlane.xlu0 %1131 }
 0x248   :  { %v2115_v10 = vpop.eup %2114  ;;  %v1031_v62 = vadd.f32 %v2184_v41, %v1030_v20 }
 0x249   :  { %v1576_v38 = vmul.f32 %v1544_v44, %v2432_v40  ;;  %v1577_v33 = vmul.f32 %v1545_v7, %v2435_v42  ;;  %v1099_v51 = vmul.f32 %v2115_v10, %v2520_v3  ;;  %v1733_v56 = vsel %vm1732_vm5, %v1627_v27, %v1731_v28 }
 0x24a   :  { %2116 = vtanh.f32 %v1031_v62 }
 0x24b   :  { %v1628_v59 = vadd.f32 %v1577_v33, %v1576_v38  ;;  %1161 = vadd.xlane.f32.xlu1 %v1099_v51 }
 0x24d   :  { %v1629_v2 = vrot.slane %v1628_v59, 4 }
 0x24e   :  { %v1134_v5 = vpop.xlane.xlu1 %1133 }
 0x24f   :  { %v1630_v22 = vadd.f32 %v1629_v2, %v1628_v59  ;;  %v2770_v59 = vsel %vm1167_vm2, %v1124_v55, -1e+30 }
 0x250   :  { %v2117_v57 = vpop.eup %2116 }
 0x251   :  { %v1631_v47 = vrot.slane %v1630_v22, 2  ;;  %v1100_v40 = vmul.f32 %v2185_v29, %v2117_v57 }
 0x253   :  { %v1632_v21 = vadd.f32 %v1631_v47, %v1630_v22  ;;  %1163 = vadd.xlane.f32.xlu2 %v1100_v40  ;;  %v1235_v22 = vmax.f32 %v2743_v6, %v2770_v59 }
 0x255   :  { %v1633_v42 = vrot.slane %v1632_v21, 1  ;;  %v1236_v29 = vrot.slane %v1235_v22, 4 }
 0x256   :  { %v1136_v3 = vpop.xlane.xlu1 %1135 }
 0x257   :  { %v1634_v19 = vadd.f32 %v1633_v42, %v1632_v21  ;;  %v1185_v24 = vsel %vm1167_vm2, %v1136_v3, -1e+30  ;;  %v2782_v21 = vsel %vm1167_vm2, %v1128_v25, -1e+30 }
 0x258   :  { %v1256_v4 = vmax.f32 %v1134_v5, %v1185_v24  ;;  %v1242_v27 = vmax.f32 %v2756_v36, %v2782_v21 }
 0x259   :  { %v2762_v15 = vsel %vm1734_vm6, %v1634_v19, %v1733_v56 }
 0x25a   :  { %v1257_v26 = vrot.slane %v1256_v4, 4 }
 0x25c   :  { %v1258_v16 = vmax.f32 %v1256_v4, %v1257_v26  ;;  %v1237_v4 = vmax.f32 %v1235_v22, %v1236_v29 }
 0x25e   :  { %v1259_v11 = vrot.slane %v1258_v16, 2  ;;  %v1138_v41 = vpop.xlane.xlu2 %1137 }
 0x260   :  { %v1260_v17 = vmax.f32 %v1258_v16, %v1259_v11 }
 0x262   :  { %v1261_v53 = vrot.slane %v1260_v17, 1 }
 0x264   :  { %v1262_v58 = vmax.f32 %v1260_v17, %v1261_v53  ;;  %v1243_v17 = vrot.slane %v1242_v27, 4  ;;  %v1238_v53 = vrot.slane %v1237_v4, 2 }
 0x266   :  { %v1328_v44 = vsub.f32 %v1134_v5, %v1262_v58  ;;  %v1329_v7 = vsub.f32 %v1185_v24, %v1262_v58 }
 0x268   :  { %v1376_v20 = vmul.f32 1.442695, %v1328_v44  ;;  %v1378_v10 = vmul.f32 1.442695, %v1329_v7  ;;  %v1140_v39 = vpop.xlane.xlu1 %1139 }
 0x269   :  { %v1187_v28 = vsel %vm1167_vm2, %v1140_v39, -1e+30 }
 0x26a   :  { %2118 = vpow2.f32 %v1376_v20  ;;  %v1263_v62 = vmax.f32 %v1138_v41, %v1187_v28  ;;  %v1244_v20 = vmax.f32 %v1242_v27, %v1243_v17 }
 0x26b   :  { %2120 = vpow2.f32 %v1378_v10 }
 0x26c   :  { %v1264_v38 = vrot.slane %v1263_v62, 4 }
 0x26e   :  { %v1265_v33 = vmax.f32 %v1263_v62, %v1264_v38  ;;  %v1142_v51 = vpop.xlane.xlu0 %1141 }
 0x270   :  { %v2772_v37 = vpop.eup %2118  ;;  %v1266_v2 = vrot.slane %v1265_v33, 2 }
 0x271   :  { %v2774_v5 = vpop.eup %2120 }
 0x272   :  { %v1267_v18 = vmax.f32 %v1265_v33, %v1266_v2  ;;  %v1464_v47 = vadd.f32 %v2774_v5, %v2772_v37  ;;  %v1245_v33 = vrot.slane %v1244_v20, 2 }
 0x274   :  { %v1268_v57 = vrot.slane %v1267_v18, 1  ;;  %v1465_v40 = vrot.slane %v1464_v47, 4 }
 0x276   :  { %v1269_v55 = vmax.f32 %v1267_v18, %v1268_v57  ;;  %v1466_v11 = vadd.f32 %v1465_v40, %v1464_v47 }
 0x278   :  { %v1330_v42 = vsub.f32 %v1138_v41, %v1269_v55  ;;  %v1331_v3 = vsub.f32 %v1187_v28, %v1269_v55  ;;  %v1144_v19 = vpop.xlane.xlu0 %1143  ;;  %v1467_v7 = vrot.slane %v1466_v11, 2  ;;  %v1239_v41 = vmax.f32 %v1237_v4, %v1238_v53 }
 0x279   :  { %v1189_v24 = vsel %vm1167_vm2, %v1144_v19, -1e+30  ;;  %v1246_v55 = vmax.f32 %v1244_v20, %v1245_v33 }
 0x27a   :  { %v1380_v56 = vmul.f32 1.442695, %v1330_v42  ;;  %v1382_v26 = vmul.f32 1.442695, %v1331_v3  ;;  %v1270_v16 = vmax.f32 %v1142_v51, %v1189_v24  ;;  %v1468_v38 = vadd.f32 %v1467_v7, %v1466_v11 }
 0x27b   :  { %v1240_v18 = vrot.slane %v1239_v41, 1  ;;  %v1247_v17 = vrot.slane %v1246_v55, 1 }
 0x27c   :  { %2122 = vpow2.f32 %v1380_v56  ;;  %v1271_v25 = vrot.slane %v1270_v16, 4  ;;  %v1469_v29 = vrot.slane %v1468_v38, 1 }
 0x27d   :  { %2124 = vpow2.f32 %v1382_v26  ;;  %v1241_v56 = vmax.f32 %v1239_v41, %v1240_v18  ;;  %v1248_v20 = vmax.f32 %v1246_v55, %v1247_v17 }
 0x27e   :  { %v1272_v58 = vmax.f32 %v1270_v16, %v1271_v25  ;;  %v2788_v44 = vpop.xlane.xlu1 %1145  ;;  %v1470_v4 = vadd.f32 %v1469_v29, %v1468_v38 }
 0x27f   :  { %v1322_v53 = vsub.f32 %v2743_v6, %v1241_v56  ;;  %v1323_v7 = vsub.f32 %v2770_v59, %v1241_v56  ;;  %v1325_v6 = vsub.f32 %v2782_v21, %v1248_v20 }
 0x280   :  { %v1273_v10 = vrot.slane %v1272_v58, 2 }
 0x281   :  { %v1370_v55 = vmul.f32 1.442695, %v1325_v6 }
 0x282   :  { %v2123_v39 = vpop.eup %2122  ;;  %v1274_v28 = vmax.f32 %v1272_v58, %v1273_v10 }
 0x283   :  { %v2125_v62 = vpop.eup %2124 }
 0x284   :  { %v1471_v2 = vadd.f32 %v2125_v62, %v2123_v39  ;;  %v1275_v22 = vrot.slane %v1274_v28, 1 }
 0x286   :  { %v1472_v47 = vrot.slane %v1471_v2, 4  ;;  %v1276_v57 = vmax.f32 %v1274_v28, %v1275_v22  ;;  %v1364_v28 = vmul.f32 1.442695, %v1322_v53  ;;  %v1324_v22 = vsub.f32 %v2756_v36, %v1248_v20 }
 0x288   :  { %v1473_v40 = vadd.f32 %v1472_v47, %v1471_v2  ;;  %v1332_v42 = vsub.f32 %v1142_v51, %v1276_v57  ;;  %v1333_v3 = vsub.f32 %v1189_v24, %v1276_v57  ;;  %v1148_v19 = vpop.xlane.xlu1 %1147  ;;  %v1366_v2 = vmul.f32 1.442695, %v1323_v7 }
 0x289   :  { %v2792_v11 = vsel %vm1167_vm2, %v1148_v19, -1e+30 }
 0x28a   :  { %v1474_v27 = vrot.slane %v1473_v40, 2  ;;  %v1384_v26 = vmul.f32 1.442695, %v1332_v42  ;;  %v1386_v16 = vmul.f32 1.442695, %v1333_v3  ;;  %v1277_v51 = vmax.f32 %v2788_v44, %v2792_v11 }
 0x28c   :  { %v1475_v25 = vadd.f32 %v1474_v27, %v1473_v40  ;;  %2126 = vpow2.f32 %v1384_v26  ;;  %v1278_v38 = vrot.slane %v1277_v51, 4  ;;  %v1368_v40 = vmul.f32 1.442695, %v1324_v22 }
 0x28d   :  { %2128 = vpow2.f32 %v1386_v16 }
 0x28e   :  { %v1476_v58 = vrot.slane %v1475_v25, 1  ;;  %v2797_v24 = vpop.xlane.xlu2 %1149  ;;  %2130 = vrcp.f32 %v1470_v4  ;;  %v1279_v29 = vmax.f32 %v1277_v51, %v1278_v38 }
 0x290   :  { %v1477_v10 = vadd.f32 %v1476_v58, %v1475_v25  ;;  %v1280_v16 = vrot.slane %v1279_v29, 2 }
 0x292   :  { %v2127_v41 = vpop.eup %2126  ;;  %2132 = vrcp.f32 %v1477_v10  ;;  %v1281_v7 = vmax.f32 %v1279_v29, %v1280_v16 }
 0x293   :  { %v2129_v33 = vpop.eup %2128  ;;  %2134 = vpow2.f32 %v1364_v28 }
 0x294   :  { %v1478_v18 = vadd.f32 %v2129_v33, %v2127_v41  ;;  %v2131_v47 = vpop.eup %2130  ;;  %2136 = vpow2.f32 %v1366_v2  ;;  %v1282_v6 = vrot.slane %v1281_v7, 1 }
 0x295   :  { %v1552_v42 = vmul.f32 %v2131_v47, %v2772_v37  ;;  %v1553_v56 = vmul.f32 %v2131_v47, %v2774_v5  ;;  %2138 = vpow2.f32 %v1368_v40 }
 0x296   :  { %v1479_v57 = vrot.slane %v1478_v18, 4  ;;  %2140 = vpow2.f32 %v1370_v55  ;;  %v1283_v40 = vmax.f32 %v1281_v7, %v1282_v6 }
 0x297   :  { %v1585_v58 = vmul.f32 %v1553_v56, %v2499_v31 }
 0x298   :  { %v2133_v59 = vpop.eup %2132  ;;  %v1480_v3 = vadd.f32 %v1479_v57, %v1478_v18  ;;  %v1152_v19 = vpop.xlane.xlu2 %1151 }
 0x299   :  { %v1554_v27 = vmul.f32 %v2133_v59, %v2123_v39  ;;  %v1555_v26 = vmul.f32 %v2133_v59, %v2125_v62  ;;  %v2806_v36 = vsel %vm1167_vm2, %v1152_v19, -1e+30  ;;  %v2812_v37 = vpop.eup %2134  ;;  %v1584_v62 = vmul.f32 %v1552_v42, %v2496_v30 }
 0x29a   :  { %v1481_v21 = vrot.slane %v1480_v3, 2  ;;  %v1284_v4 = vmax.f32 %v2797_v24, %v2806_v36  ;;  %v2814_v39 = vpop.eup %2136 }
 0x29b   :  { %v1586_v17 = vmul.f32 %v1554_v27, %v2524_v12  ;;  %v1587_v25 = vmul.f32 %v1555_v26, %v2527_v13  ;;  %v1656_v38 = vadd.f32 %v1585_v58, %v1584_v62  ;;  %v2820_v2 = vpop.eup %2138  ;;  %v1443_v22 = vadd.f32 %v2814_v39, %v2812_v37 }
 0x29c   :  { %v1482_v53 = vadd.f32 %v1481_v21, %v1480_v3  ;;  %v1285_v5 = vrot.slane %v1284_v4, 4  ;;  %v2824_v30 = vpop.eup %2140  ;;  %v1335_v58 = vsub.f32 %v2792_v11, %v1283_v40 }
 0x29d   :  { %v1663_v10 = vadd.f32 %v1587_v25, %v1586_v17  ;;  %v1657_v57 = vrot.slane %v1656_v38, 4  ;;  %v1444_v29 = vrot.slane %v1443_v22, 4  ;;  %v1450_v59 = vadd.f32 %v2824_v30, %v2820_v2 }
 0x29e   :  { %v1483_v51 = vrot.slane %v1482_v53, 1  ;;  %v1286_v20 = vmax.f32 %v1284_v4, %v1285_v5  ;;  %v2818_v28 = vpop.xlane.xlu0 %1153  ;;  %v1334_v17 = vsub.f32 %v2788_v44, %v1283_v40 }
 0x29f   :  { %v1664_v31 = vrot.slane %v1663_v10, 4  ;;  %v1658_v56 = vadd.f32 %v1657_v57, %v1656_v38  ;;  %v1445_v16 = vadd.f32 %v1444_v29, %v1443_v22  ;;  %v1451_v4 = vrot.slane %v1450_v59, 4 }
 0x2a0   :  { %v1484_v12 = vadd.f32 %v1483_v51, %v1482_v53  ;;  %v1287_v13 = vrot.slane %v1286_v20, 2 }
 0x2a1   :  { %v1665_v55 = vadd.f32 %v1664_v31, %v1663_v10  ;;  %v1446_v10 = vrot.slane %v1445_v16, 2 }
 0x2a2   :  { %2142 = vrcp.f32 %v1484_v12  ;;  %v1288_v18 = vmax.f32 %v1286_v20, %v1287_v13  ;;  %v1452_v12 = vadd.f32 %v1451_v4, %v1450_v59  ;;  %v1388_v13 = vmul.f32 1.442695, %v1334_v17 }
 0x2a3   :  { %v1666_v53 = vrot.slane %v1665_v55, 2  ;;  %v1447_v29 = vadd.f32 %v1446_v10, %v1445_v16 }
 0x2a4   :  { %v1289_v47 = vrot.slane %v1288_v18, 1  ;;  %v1453_v59 = vrot.slane %v1452_v12, 2  ;;  %2144 = vpow2.f32 %v1388_v13 }
 0x2a5   :  { %v1667_v22 = vadd.f32 %v1666_v53, %v1665_v55 }
 0x2a6   :  { %v1290_v3 = vmax.f32 %v1288_v18, %v1289_v47  ;;  %v1454_v4 = vadd.f32 %v1453_v59, %v1452_v12 }
 0x2a8   :  { %v2143_v42 = vpop.eup %2142  ;;  %v1156_v19 = vpop.xlane.xlu0 %1155  ;;  %v1336_v51 = vsub.f32 %v2797_v24, %v1290_v3  ;;  %v1337_v20 = vsub.f32 %v2806_v36, %v1290_v3  ;;  %v1455_v13 = vrot.slane %v1454_v4, 1 }
 0x2a9   :  { %v1556_v27 = vmul.f32 %v2143_v42, %v2127_v41  ;;  %v1557_v26 = vmul.f32 %v2143_v42, %v2129_v33  ;;  %v1195_v21 = vsel %vm1167_vm2, %v1156_v19, -1e+30  ;;  %v1659_v33 = vrot.slane %v1658_v56, 2 }
 0x2aa   :  { %v1291_v25 = vmax.f32 %v2818_v28, %v1195_v21  ;;  %v1392_v11 = vmul.f32 1.442695, %v1336_v51  ;;  %v1394_v57 = vmul.f32 1.442695, %v1337_v20  ;;  %v1668_v42 = vrot.slane %v1667_v22, 1  ;;  %v2842_v16 = vpop.eup %2144 }
 0x2ab   :  { %v1588_v5 = vmul.f32 %v1556_v27, %v2544_v60  ;;  %v1589_v62 = vmul.f32 %v1557_v26, %v2547_v45  ;;  %v1390_v60 = vmul.f32 1.442695, %v1335_v58  ;;  %v1183_v45 = vsel %vm1167_vm2, %v2764_v54, -1e+30 }
 0x2ac   :  { %v1292_v41 = vrot.slane %v1291_v25, 4  ;;  %v1660_v31 = vadd.f32 %v1659_v33, %v1658_v56  ;;  %v1448_v56 = vrot.slane %v1447_v29, 1 }
 0x2ad   :  { %v1670_v7 = vadd.f32 %v1589_v62, %v1588_v5  ;;  %2146 = vpow2.f32 %v1390_v60 }
 0x2ae   :  { %v1293_v44 = vmax.f32 %v1291_v25, %v1292_v41  ;;  %v2837_v38 = vpop.xlane.xlu1 %1157  ;;  %2148 = vpow2.f32 %v1392_v11  ;;  %v1661_v27 = vrot.slane %v1660_v31, 1  ;;  %v1669_v25 = vadd.f32 %v1668_v42, %v1667_v22 }
 0x2af   :  { %v1671_v6 = vrot.slane %v1670_v7, 4  ;;  %2150 = vpow2.f32 %v1394_v57  ;;  %v1449_v22 = vadd.f32 %v1448_v56, %v1447_v29  ;;  %v1456_v57 = vadd.f32 %v1455_v13, %v1454_v4 }
 0x2b0   :  { %v1294_v24 = vrot.slane %v1293_v44, 2  ;;  %v1130_v18 = vpop.xlane.xlu0 %1129  ;;  %v1662_v33 = vadd.f32 %v1661_v27, %v1660_v31 }
 0x2b1   :  { %v1672_v47 = vadd.f32 %v1671_v6, %v1670_v7  ;;  %v1249_v36 = vmax.f32 %v1130_v18, %v1183_v45 }
 0x2b2   :  { %v1295_v40 = vmax.f32 %v1293_v44, %v1294_v24  ;;  %v1742_v60 = vsel %vm1728_vm3, %v1669_v25, %v1662_v33 }
 0x2b3   :  { %v1673_v3 = vrot.slane %v1672_v47, 2  ;;  %v1250_v55 = vrot.slane %v1249_v36, 4  ;;  %v2845_v41 = vpop.eup %2146 }
 0x2b4   :  { %v1296_v19 = vrot.slane %v1295_v40, 1  ;;  %v2847_v10 = vpop.eup %2148 }
 0x2b5   :  { %v1674_v26 = vadd.f32 %v1673_v3, %v1672_v47  ;;  %v1251_v54 = vmax.f32 %v1249_v36, %v1250_v55  ;;  %v2849_v6 = vpop.eup %2150 }
 0x2b6   :  { %v1297_v17 = vmax.f32 %v1295_v40, %v1296_v19  ;;  %v1160_v51 = vpop.xlane.xlu1 %1159  ;;  %v1492_v36 = vadd.f32 %v2849_v6, %v2847_v10 }
 0x2b7   :  { %v1675_v53 = vrot.slane %v1674_v26, 1  ;;  %v1252_v5 = vrot.slane %v1251_v54, 2 }
 0x2b8   :  { %v1338_v62 = vsub.f32 %v2818_v28, %v1297_v17  ;;  %v1339_v58 = vsub.f32 %v1195_v21, %v1297_v17  ;;  %v1197_v28 = vsel %vm1167_vm2, %v1160_v51, -1e+30  ;;  %v1485_v21 = vadd.f32 %v2845_v41, %v2842_v16 }
 0x2b9   :  { %v1676_v7 = vadd.f32 %v1675_v53, %v1674_v26  ;;  %v1253_v20 = vmax.f32 %v1251_v54, %v1252_v5  ;;  %v1298_v24 = vmax.f32 %v2837_v38, %v1197_v28  ;;  %v1493_v26 = vrot.slane %v1492_v36, 4 }
 0x2ba   :  { %v1396_v12 = vmul.f32 1.442695, %v1338_v62  ;;  %v1398_v44 = vmul.f32 1.442695, %v1339_v58  ;;  %v1486_v42 = vrot.slane %v1485_v21, 4 }
 0x2bb   :  { %v1254_v11 = vrot.slane %v1253_v20, 1  ;;  %v2858_v31 = vsel %vm1730_vm4, %v1676_v7, %v1742_v60  ;;  %v1299_v29 = vrot.slane %v1298_v24, 4  ;;  %v1494_v25 = vadd.f32 %v1493_v26, %v1492_v36 }
 0x2bc   :  { %2152 = vpow2.f32 %v1396_v12  ;;  %v1487_v4 = vadd.f32 %v1486_v42, %v1485_v21 }
 0x2bd   :  { %2154 = vpow2.f32 %v1398_v44  ;;  %v1255_v47 = vmax.f32 %v1253_v20, %v1254_v11  ;;  %v1300_v3 = vmax.f32 %v1298_v24, %v1299_v29  ;;  %v1495_v60 = vrot.slane %v1494_v25, 2 }
 0x2be   :  { %2156 = vrcp.f32 %v1449_v22  ;;  %v1488_v58 = vrot.slane %v1487_v4, 2  ;;  %v1162_v12 = vpop.xlane.xlu1 %1161 }
 0x2bf   :  { %v1326_v59 = vsub.f32 %v1130_v18, %v1255_v47  ;;  %v1327_v40 = vsub.f32 %v1183_v45, %v1255_v47  ;;  %2158 = vrcp.f32 %v1456_v57  ;;  %v1301_v54 = vrot.slane %v1300_v3, 2 }
 0x2c0   :  { %v1489_v29 = vadd.f32 %v1488_v58, %v1487_v4 }
 0x2c1   :  { %v1372_v55 = vmul.f32 1.442695, %v1326_v59  ;;  %v1374_v19 = vmul.f32 1.442695, %v1327_v40  ;;  %v1302_v18 = vmax.f32 %v1300_v3, %v1301_v54 }
 0x2c2   :  { %v2862_v27 = vpop.eup %2152  ;;  %v1490_v54 = vrot.slane %v1489_v29, 1 }
 0x2c3   :  { %v2864_v17 = vpop.eup %2154  ;;  %2160 = vpow2.f32 %v1372_v55  ;;  %v1303_v5 = vrot.slane %v1302_v18, 1 }
 0x2c4   :  { %v1499_v56 = vadd.f32 %v2864_v17, %v2862_v27  ;;  %2162 = vpow2.f32 %v1374_v19  ;;  %v2157_v45 = vpop.eup %2156 }
 0x2c5   :  { %v2159_v62 = vpop.eup %2158  ;;  %v1304_v33 = vmax.f32 %v1302_v18, %v1303_v5  ;;  %v1546_v13 = vmul.f32 %v2157_v45, %v2812_v37  ;;  %v1547_v47 = vmul.f32 %v2157_v45, %v2814_v39 }
 0x2c6   :  { %v1500_v53 = vrot.slane %v1499_v56, 4  ;;  %v1164_v7 = vpop.xlane.xlu2 %1163  ;;  %v1548_v48 = vmul.f32 %v2159_v62, %v2820_v2  ;;  %v1549_v42 = vmul.f32 %v2159_v62, %v2824_v30  ;;  %v1491_v62 = vadd.f32 %v1490_v54, %v1489_v29 }
 0x2c7   :  { %v1199_v44 = vsel %vm1167_vm2, %v1164_v7, -1e+30  ;;  %v1340_v11 = vsub.f32 %v2837_v38, %v1304_v33  ;;  %v1341_v21 = vsub.f32 %v1197_v28, %v1304_v33  ;;  %v1578_v55 = vmul.f32 %v1546_v13, %v2448_v8 }
 0x2c8   :  { %v1501_v51 = vadd.f32 %v1500_v53, %v1499_v56  ;;  %v1305_v24 = vmax.f32 %v1162_v12, %v1199_v44  ;;  %v1496_v38 = vadd.f32 %v1495_v60, %v1494_v25  ;;  %v1579_v39 = vmul.f32 %v1547_v47, %v2451_v9 }
 0x2c9   :  { %v2868_v20 = vpop.eup %2160  ;;  %v1400_v59 = vmul.f32 1.442695, %v1340_v11  ;;  %v1402_v37 = vmul.f32 1.442695, %v1341_v21  ;;  %v1580_v56 = vmul.f32 %v1548_v48, %v2464_v34  ;;  %v1581_v18 = vmul.f32 %v1549_v42, %v2467_v35 }
 0x2ca   :  { %v2873_v22 = vpop.eup %2162  ;;  %v1502_v57 = vrot.slane %v1501_v51, 2  ;;  %v1306_v40 = vrot.slane %v1305_v24, 4  ;;  %v1497_v45 = vrot.slane %v1496_v38, 1  ;;  %v1635_v53 = vadd.f32 %v1579_v39, %v1578_v55 }
 0x2cb   :  { %v1457_v36 = vadd.f32 %v2873_v22, %v2868_v20  ;;  %2164 = vpow2.f32 %v1400_v59 }
 0x2cc   :  { %v1307_v28 = vmax.f32 %v1305_v24, %v1306_v40  ;;  %v1503_v19 = vadd.f32 %v1502_v57, %v1501_v51  ;;  %2166 = vpow2.f32 %v1402_v37  ;;  %v1642_v51 = vadd.f32 %v1581_v18, %v1580_v56 }
 0x2cd   :  { %v1458_v3 = vrot.slane %v1457_v36, 4  ;;  %v1498_v7 = vadd.f32 %v1497_v45, %v1496_v38  ;;  %v1636_v35 = vrot.slane %v1635_v53, 4  ;;  %2168 = vrcp.f32 %v1491_v62 }
 0x2ce   :  { %v1308_v4 = vrot.slane %v1307_v28, 2  ;;  %v1504_v5 = vrot.slane %v1503_v19, 1  ;;  %v1643_v57 = vrot.slane %v1642_v51, 4 }
 0x2cf   :  { %v1459_v26 = vadd.f32 %v1458_v3, %v1457_v36  ;;  %v1637_v37 = vadd.f32 %v1636_v35, %v1635_v53 }
 0x2d0   :  { %v1309_v30 = vmax.f32 %v1307_v28, %v1308_v4  ;;  %v1505_v60 = vadd.f32 %v1504_v5, %v1503_v19  ;;  %v1644_v48 = vadd.f32 %v1643_v57, %v1642_v51 }
 0x2d1   :  { %v1460_v2 = vrot.slane %v1459_v26, 2  ;;  %v2885_v25 = vpop.eup %2164  ;;  %v1638_v38 = vrot.slane %v1637_v37, 2 }
 0x2d2   :  { %v1310_v58 = vrot.slane %v1309_v30, 1  ;;  %v2887_v9 = vpop.eup %2166 }
 0x2d3   :  { %v1461_v8 = vadd.f32 %v1460_v2, %v1459_v26  ;;  %v1506_v34 = vadd.f32 %v2887_v9, %v2885_v25  ;;  %v2169_v42 = vpop.eup %2168  ;;  %v1645_v26 = vrot.slane %v1644_v48, 2  ;;  %v1639_v45 = vadd.f32 %v1638_v38, %v1637_v37 }
 0x2d4   :  { %v1311_v13 = vmax.f32 %v1309_v30, %v1310_v58  ;;  %v1558_v30 = vmul.f32 %v2169_v42, %v2842_v16  ;;  %v1559_v53 = vmul.f32 %v2169_v42, %v2845_v41 }
 0x2d5   :  { %v1462_v33 = vrot.slane %v1461_v8, 1  ;;  %v1507_v21 = vrot.slane %v1506_v34, 4 }
 0x2d6   :  { %v1342_v24 = vsub.f32 %v1162_v12, %v1311_v13  ;;  %v1343_v47 = vsub.f32 %v1199_v44, %v1311_v13  ;;  %v1590_v16 = vmul.f32 %v1558_v30, %v2564_v50  ;;  %v1591_v41 = vmul.f32 %v1559_v53, %v2567_v23 }
 0x2d7   :  { %v1463_v11 = vadd.f32 %v1462_v33, %v1461_v8  ;;  %v1508_v36 = vadd.f32 %v1507_v21, %v1506_v34  ;;  %v1640_v33 = vrot.slane %v1639_v45, 1 }
 0x2d8   :  { %v1404_v29 = vmul.f32 1.442695, %v1342_v24  ;;  %v1406_v59 = vmul.f32 1.442695, %v1343_v47  ;;  %v1677_v21 = vadd.f32 %v1591_v41, %v1590_v16 }
 0x2d9   :  { %2170 = vrcp.f32 %v1463_v11  ;;  %v1509_v40 = vrot.slane %v1508_v36, 2  ;;  %v1641_v23 = vadd.f32 %v1640_v33, %v1639_v45 }
 0x2da   :  { %2172 = vrcp.f32 %v1498_v7  ;;  %v1678_v37 = vrot.slane %v1677_v21, 4 }
 0x2db   :  { %2174 = vrcp.f32 %v1505_v60  ;;  %v1510_v3 = vadd.f32 %v1509_v40, %v1508_v36  ;;  %v1737_v42 = vsel %vm1736_vm7, %v1641_v23, %v2762_v15 }
 0x2dc   :  { %2176 = vpow2.f32 %v1404_v29 }
 0x2dd   :  { %2178 = vpow2.f32 %v1406_v59  ;;  %v1511_v39 = vrot.slane %v1510_v3, 1 }
 0x2df   :  { %v2171_v55 = vpop.eup %2170  ;;  %v1512_v18 = vadd.f32 %v1511_v39, %v1510_v3 }
 0x2e0   :  { %v2173_v28 = vpop.eup %2172  ;;  %v1550_v12 = vmul.f32 %v2171_v55, %v2868_v20  ;;  %v1551_v44 = vmul.f32 %v2171_v55, %v2873_v22 }
 0x2e1   :  { %v2175_v19 = vpop.eup %2174  ;;  %v1560_v20 = vmul.f32 %v2173_v28, %v2847_v10  ;;  %v1561_v22 = vmul.f32 %v2173_v28, %v2849_v6  ;;  %2180 = vrcp.f32 %v1512_v18 }
 0x2e2   :  { %v2893_v54 = vpop.eup %2176  ;;  %v1582_v4 = vmul.f32 %v1550_v12, %v2480_v0  ;;  %v1583_v56 = vmul.f32 %v1551_v44, %v2483_v1  ;;  %v1646_v0 = vadd.f32 %v1645_v26, %v1644_v48  ;;  %v1562_v1 = vmul.f32 %v2175_v19, %v2862_v27 }
 0x2e3   :  { %v2897_v2 = vpop.eup %2178  ;;  %v1563_v62 = vmul.f32 %v2175_v19, %v2864_v17  ;;  %v1592_v10 = vmul.f32 %v1560_v20, %v2584_v49  ;;  %v1593_v6 = vmul.f32 %v1561_v22, %v2587_v14 }
 0x2e4   :  { %v1649_v5 = vadd.f32 %v1583_v56, %v1582_v4  ;;  %v1513_v8 = vadd.f32 %v2897_v2, %v2893_v54  ;;  %v1647_v13 = vrot.slane %v1646_v0, 1  ;;  %v1594_v35 = vmul.f32 %v1562_v1, %v2604_v32 }
 0x2e5   :  { %v1595_v27 = vmul.f32 %v1563_v62, %v2607_v63  ;;  %v1684_v49 = vadd.f32 %v1593_v6, %v1592_v10 }
 0x2e6   :  { %v1650_v58 = vrot.slane %v1649_v5, 4  ;;  %v1514_v51 = vrot.slane %v1513_v8, 4  ;;  %v1648_v29 = vadd.f32 %v1647_v13, %v1646_v0 }
 0x2e7   :  { %v2181_v60 = vpop.eup %2180  ;;  %v1691_v57 = vadd.f32 %v1595_v27, %v1594_v35 }
 0x2e8   :  { %v1651_v7 = vadd.f32 %v1650_v58, %v1649_v5  ;;  %v1515_v34 = vadd.f32 %v1514_v51, %v1513_v8  ;;  %v1564_v24 = vmul.f32 %v2181_v60, %v2885_v25  ;;  %v1565_v50 = vmul.f32 %v2181_v60, %v2887_v9 }
 0x2e9   :  { %v1685_v25 = vrot.slane %v1684_v49, 4  ;;  %v1692_v3 = vrot.slane %v1691_v57, 4  ;;  %v1739_v55 = vsel %vm1738_vm8, %v1648_v29, %v1737_v42 }
 0x2ea   :  { %v1652_v17 = vrot.slane %v1651_v7, 2  ;;  %v1516_v11 = vrot.slane %v1515_v34, 2  ;;  %v1596_v36 = vmul.f32 %v1564_v24, %v2624_v46  ;;  %v1597_v32 = vmul.f32 %v1565_v50, %v2627_v61 }
 0x2eb   :  { %v1679_v61 = vadd.f32 %v1678_v37, %v1677_v21  ;;  %v1686_v28 = vadd.f32 %v1685_v25, %v1684_v49  ;;  %v1693_v12 = vadd.f32 %v1692_v3, %v1691_v57 }
 0x2ec   :  { %v1653_v47 = vadd.f32 %v1652_v17, %v1651_v7  ;;  %v1517_v14 = vadd.f32 %v1516_v11, %v1515_v34  ;;  %v1698_v40 = vadd.f32 %v1597_v32, %v1596_v36 }
 0x2ed   :  { %v1680_v39 = vrot.slane %v1679_v61, 2  ;;  %v1687_v26 = vrot.slane %v1686_v28, 2  ;;  %v1694_v4 = vrot.slane %v1693_v12, 2 }
 0x2ee   :  { %v1654_v63 = vrot.slane %v1653_v47, 1  ;;  %v1518_v59 = vrot.slane %v1517_v14, 1  ;;  %v1699_v38 = vrot.slane %v1698_v40, 4 }
 0x2ef   :  { %v1681_v45 = vadd.f32 %v1680_v39, %v1679_v61  ;;  %v1688_v20 = vadd.f32 %v1687_v26, %v1686_v28  ;;  %v1695_v22 = vadd.f32 %v1694_v4, %v1693_v12 }
 0x2f0   :  { %v1519_v48 = vadd.f32 %v1518_v59, %v1517_v14  ;;  %v1655_v9 = vadd.f32 %v1654_v63, %v1653_v47  ;;  %v1700_v44 = vadd.f32 %v1699_v38, %v1698_v40 }
 0x2f1   :  { %v1682_v0 = vrot.slane %v1681_v45, 1  ;;  %v1689_v62 = vrot.slane %v1688_v20, 1  ;;  %v1696_v58 = vrot.slane %v1695_v22, 1 }
 0x2f2   :  { %2182 = vrcp.f32 %v1519_v48  ;;  %v1741_v46 = vsel %vm1740_vm9, %v1655_v9, %v1739_v55  ;;  %v1701_v18 = vrot.slane %v1700_v44, 2 }
 0x2f3   :  { %1751 = vst [vmem:[#allocation8] sm:$0xff] %v1741_v46  ;;  %v1683_v16 = vadd.f32 %v1682_v0, %v1681_v45  ;;  %v1690_v41 = vadd.f32 %v1689_v62, %v1688_v20 }
 0x2f4   :  { %v1702_v8 = vadd.f32 %v1701_v18, %v1700_v44 }
 0x2f6   :  { %v1703_v33 = vrot.slane %v1702_v8, 1 }
 0x2f8   :  { %v2183_v19 = vpop.eup %2182  ;;  %v1704_v6 = vadd.f32 %v1703_v33, %v1702_v8 }
 0x2f9   :  { %v1566_v56 = vmul.f32 %v2183_v19, %v2893_v54  ;;  %v1567_v15 = vmul.f32 %v2183_v19, %v2897_v2  ;;  %v1697_v2 = vadd.f32 %v1696_v58, %v1695_v22 }
 0x2fb   :  { %v1598_v30 = vmul.f32 %v1566_v56, %v2647_v52  ;;  %v1599_v53 = vmul.f32 %v1567_v15, %v2650_v43  ;;  %v1744_v43 = vsel %vm1732_vm5, %v1683_v16, %v2858_v31 }
 0x2fc   :  { %v1745_v7 = vsel %vm1734_vm6, %v1690_v41, %v1744_v43 }
 0x2fd   :  { %v1705_v5 = vadd.f32 %v1599_v53, %v1598_v30  ;;  %v1746_v13 = vsel %vm1736_vm7, %v1697_v2, %v1745_v7 }
 0x2fe   :  { %v1747_v35 = vsel %vm1738_vm8, %v1704_v6, %v1746_v13 }
 0x2ff   :  { %v1706_v1 = vrot.slane %v1705_v5, 4 }
 0x301   :  { %v1707_v51 = vadd.f32 %v1706_v1, %v1705_v5 }
 0x303   :  { %v1708_v54 = vrot.slane %v1707_v51, 2 }
 0x305   :  { %v1709_v10 = vadd.f32 %v1708_v54, %v1707_v51 }
 0x307   :  { %v1710_v52 = vrot.slane %v1709_v10, 1 }
 0x309   :  { %v1711_v34 = vadd.f32 %v1710_v52, %v1709_v10 }
 0x30b   :  { %v1748_v27 = vsel %vm1740_vm9, %v1711_v34, %v1747_v35 }
 0x30c   :  { %1752 = vst [vmem:[#allocation8 + $0x8] sm:$0xff] %v1748_v27 }
 0x30d   :  { %1765 = dma.vmem_to_hbm [thread:$0]  %s1758_s19, 256, %s1760_s22, [#allocation4], %s2294_s23, %s2294_s23, %s2295_s24  }
 0x30e   :  { %2286 = dma.done.wait [#allocation4], 256  }
 0x30f   :  { %2287 = vsyncadd [#allocation4], 4294967040 }
 0x310   :  { %1770 = vsyncpa [#allocation3], 1 }
 0x311   :  { %1771 = vsyncpa [#allocation6], 1 }
 0x312   :  { %1772 = vsyncpa [#allocation4], 1 }

</bundles_post_ra>
